<compile_context>
chip_gen: v7x
topology: tpu7x:2x2x1
jax: 0.10.0
libtpu: 0.0.40
codegen_flags: <defaults>
</compile_context>

<pallas_src>
import functools

import jax
import jax.numpy as jnp
from jax.experimental import pallas as pl
from jax.experimental.pallas import tpu as pltpu


# 48 MiB scoped VMEM: safe on v7x (64 MiB/TC) and well under v5e/v6e physical.
_VMEM_LIMIT_BYTES = 48 * 1024 * 1024
# Per-tile f32 budget.  ~7x of this is live at once (2x dbl-buffered in,
# 2x dbl-buffered out, ~3 tile-sized f32 temps) -> ~28 MiB peak.
_TILE_BUDGET_BYTES = 4 * 1024 * 1024


def _saln_kernel(x_ref, g_ref, b_ref, o_ref, *, eps):
    # x_ref / o_ref: (1, T_TILE, C) tile.  g_ref / b_ref: full (B, 1, C),
    # VMEM-resident across the whole grid (constant block index).
    b = pl.program_id(0)

    # Statistics in f32, centered two-pass form (better conditioned than
    # E[x^2] - mean^2).  Keep the elementwise path f32 for f32 inputs.
    # TODO(synk): for bf16 activations on v6e/v7x, keep xc and the modulation
    # in bf16 (upcast only mean/var/rsqrt) to halve HBM traffic and VMEM
    # pressure; keep f32 on v5e (no bf16 VPU/EUP).
    xf = x_ref[...].astype(jnp.float32)                     # (1, Tt, C)
    mean = jnp.mean(xf, axis=-1, keepdims=True)             # (1, Tt, 1)
    xc = xf - mean                                          # (1, Tt, C)
    var = jnp.mean(xc * xc, axis=-1, keepdims=True)         # (1, Tt, 1)

    gamma = g_ref[pl.ds(b, 1)].astype(jnp.float32)          # (1, 1, C)
    beta = b_ref[pl.ds(b, 1)].astype(jnp.float32)           # (1, 1, C)

    # Fold normalize + modulate: o = xc * (gamma * rsqrt(var + eps)) + beta,
    # so no separate tile-sized `normed` temporary is created.
    o_ref[...] = (xc * (gamma * jax.lax.rsqrt(var + eps)) + beta).astype(o_ref.dtype)


def _pick_t_tile(T, C, *, tile_budget_bytes=_TILE_BUDGET_BYTES):
    """Sequence-tile rows sized by bytes (f32 path), multiple of 8, capped at T."""
    rows = max(8, tile_budget_bytes // (4 * C))
    if rows >= T:
        return T  # block dim == full array dim is always a legal block shape
    return max(8, (rows // 8) * 8)


def style_adaptive_layer_norm(x, style_code, weight, bias, *, eps=1e-5,
                              t_tile=None):
    """x: (B, T, C), style_code: (B, S), weight: (2C, S) [PyTorch layout], bias: (2C,)."""
    B, T, C = x.shape
    S = style_code.shape[-1]
    assert weight.shape == (2 * C, S)
    assert bias.shape == (2 * C,)

    # Hoisted style projection: one (B,S)x(S,2C) GEMM via dot_general (contract
    # over S, no transposed weight copy), done once in XLA instead of a
    # degenerate M=1 matmul per grid step.
    style = jax.lax.dot_general(
        style_code.astype(jnp.float32), weight.astype(jnp.float32),
        dimension_numbers=(((1,), (1,)), ((), ())),
        preferred_element_type=jnp.float32,
    ) + bias.astype(jnp.float32)[None, :]                   # (B, 2C)
    gamma = style[:, :C].reshape(B, 1, C)                   # (B, 1, C)
    beta = style[:, C:].reshape(B, 1, C)                    # (B, 1, C)

    if t_tile is None:
        t_tile = _pick_t_tile(T, C)
    grid = (B, pl.cdiv(T, t_tile))

    kernel = functools.partial(_saln_kernel, eps=eps)

    return pl.pallas_call(
        kernel,
        out_shape=jax.ShapeDtypeStruct((B, T, C), x.dtype),
        grid_spec=pltpu.PrefetchScalarGridSpec(
            num_scalar_prefetch=0,
            grid=grid,
            in_specs=[
                # x: one (1, T_TILE, C) tile per (batch, seq-tile) grid point.
                pl.BlockSpec((1, t_tile, C), lambda b, t: (b, t, 0)),
                # gamma/beta: full-array blocks with a constant block index ->
                # VMEM-resident for the whole grid, no per-step DMA and no
                # sub-(8,128) block-shape hazard.
                pl.BlockSpec((B, 1, C), lambda b, t: (0, 0, 0)),
                pl.BlockSpec((B, 1, C), lambda b, t: (0, 0, 0)),
            ],
            out_specs=pl.BlockSpec((1, t_tile, C), lambda b, t: (b, t, 0)),
        ),
        compiler_params=pltpu.CompilerParams(
            dimension_semantics=("parallel", "parallel"),
            vmem_limit_bytes=_VMEM_LIMIT_BYTES,
        ),
    )(x, gamma, beta)


if __name__ == "__main__":
    # Small demo shapes with lane-dense channels (C = 128) and enough sequence
    # length to exercise the (batch, seq-tile) grid.
    B, T, C, S = 2, 1024, 128, 32

    key = jax.random.PRNGKey(0)
    k_x, k_s, k_w = jax.random.split(key, 3)

    x = jax.random.normal(k_x, (B, T, C), dtype=jnp.float32)
    style_code = jax.random.normal(k_s, (B, S), dtype=jnp.float32)

    # nn.Linear(style_dim, 2*C) parameters; bias init as in the module:
    # first C entries 1 (gamma offset), last C entries 0 (beta offset).
    weight = 0.02 * jax.random.normal(k_w, (2 * C, S), dtype=jnp.float32)
    bias = jnp.concatenate([jnp.ones((C,), jnp.float32),
                            jnp.zeros((C,), jnp.float32)])

    out = jax.block_until_ready(
        style_adaptive_layer_norm(x, style_code, weight, bias))

    # Pure-JAX reference (same semantics as the PyTorch forward).
    style = style_code @ weight.T + bias                    # (B, 2C)
    gamma_r, beta_r = style[:, None, :C], style[:, None, C:]
    mean = jnp.mean(x, axis=-1, keepdims=True)
    var = jnp.mean(jnp.square(x - mean), axis=-1, keepdims=True)
    ref = gamma_r * ((x - mean) / jnp.sqrt(var + 1e-5)) + beta_r
    assert jnp.allclose(out, ref, atol=1e-5, rtol=1e-5), "mismatch vs reference"

    # Also exercise the multi-seq-tile path (explicit small tile).
    out_tiled = jax.block_until_ready(
        style_adaptive_layer_norm(x, style_code, weight, bias, t_tile=256))
    assert jnp.allclose(out_tiled, ref, atol=1e-5, rtol=1e-5), "tiled mismatch"

    print("KERNEL_OK")
</pallas_src>

<mosaic_0001>
module attributes {stable_mosaic.version = 11 : i64} {
  func.func @_saln_kernel(%arg0: i32, %arg1: i32, %arg2: memref<1x1024x128xf32, #tpu.memory_space<vmem>>, %arg3: memref<2x1x128xf32, #tpu.memory_space<vmem>>, %arg4: memref<2x1x128xf32, #tpu.memory_space<vmem>>, %arg5: memref<1x1024x128xf32, #tpu.memory_space<vmem>>) attributes {dimension_semantics = [#tpu.dimension_semantics<parallel>, #tpu.dimension_semantics<parallel>], iteration_bounds = array<i64: 2, 1>, scalar_prefetch = 0 : i64, scratch_operands = 0 : i64, tpu.core_type = #tpu.core_type<tc>, window_params = [{transform_indices = @transform_0, window_bounds = array<i64: 1, 1024, 128>}, {pipeline_mode = #tpu.pipeline_mode<synchronous>, transform_indices = @transform_1, window_bounds = array<i64: 2, 1, 128>}, {pipeline_mode = #tpu.pipeline_mode<synchronous>, transform_indices = @transform_2, window_bounds = array<i64: 2, 1, 128>}, {transform_indices = @transform_3, window_bounds = array<i64: 1, 1024, 128>}]} {
    %c0 = arith.constant 0 : index
    %c0_0 = arith.constant 0 : index
    %c0_1 = arith.constant 0 : index
    %0 = vector.load %arg2[%c0, %c0_0, %c0_1] : memref<1x1024x128xf32, #tpu.memory_space<vmem>>, vector<1x1024x128xf32>
    %cst = arith.constant dense<0.000000e+00> : vector<1x1024xf32>
    %1 = vector.multi_reduction <add>, %0, %cst [2] : vector<1x1024x128xf32> to vector<1x1024xf32>
    %2 = vector.shape_cast %1 : vector<1x1024xf32> to vector<1x1024x1xf32>
    %cst_2 = arith.constant 1.280000e+02 : f32
    %3 = vector.broadcast %cst_2 : f32 to vector<1x1024x1xf32>
    %4 = arith.divf %2, %3 : vector<1x1024x1xf32>
    %5 = vector.broadcast %4 : vector<1x1024x1xf32> to vector<1x1024x128xf32>
    %6 = arith.subf %0, %5 : vector<1x1024x128xf32>
    %7 = arith.mulf %6, %6 : vector<1x1024x128xf32>
    %cst_3 = arith.constant dense<0.000000e+00> : vector<1x1024xf32>
    %8 = vector.multi_reduction <add>, %7, %cst_3 [2] : vector<1x1024x128xf32> to vector<1x1024xf32>
    %9 = vector.shape_cast %8 : vector<1x1024xf32> to vector<1x1024x1xf32>
    %cst_4 = arith.constant 1.280000e+02 : f32
    %10 = vector.broadcast %cst_4 : f32 to vector<1x1024x1xf32>
    %11 = arith.divf %9, %10 : vector<1x1024x1xf32>
    %12 = arith.index_cast %arg0 : i32 to index
    %c0_5 = arith.constant 0 : index
    %c0_6 = arith.constant 0 : index
    %13 = vector.load %arg3[%12, %c0_5, %c0_6] : memref<2x1x128xf32, #tpu.memory_space<vmem>>, vector<1x1x128xf32>
    %14 = arith.index_cast %arg0 : i32 to index
    %c0_7 = arith.constant 0 : index
    %c0_8 = arith.constant 0 : index
    %15 = vector.load %arg4[%14, %c0_7, %c0_8] : memref<2x1x128xf32, #tpu.memory_space<vmem>>, vector<1x1x128xf32>
    %cst_9 = arith.constant 9.99999974E-6 : f32
    %16 = vector.broadcast %cst_9 : f32 to vector<1x1024x1xf32>
    %17 = arith.addf %11, %16 : vector<1x1024x1xf32>
    %18 = math.rsqrt %17 : vector<1x1024x1xf32>
    %19 = vector.broadcast %13 : vector<1x1x128xf32> to vector<1x1024x128xf32>
    %20 = vector.broadcast %18 : vector<1x1024x1xf32> to vector<1x1024x128xf32>
    %21 = arith.mulf %19, %20 : vector<1x1024x128xf32>
    %22 = arith.mulf %6, %21 : vector<1x1024x128xf32>
    %23 = vector.broadcast %15 : vector<1x1x128xf32> to vector<1x1024x128xf32>
    %24 = arith.addf %22, %23 : vector<1x1024x128xf32>
    %c0_10 = arith.constant 0 : index
    %c0_11 = arith.constant 0 : index
    %c0_12 = arith.constant 0 : index
    %25 = vector.load %arg5[%c0_10, %c0_11, %c0_12] : memref<1x1024x128xf32, #tpu.memory_space<vmem>>, vector<1x1024x128xf32>
    tpu.vector_store %arg5[%c0_10, %c0_11, %c0_12], %24 {strides = array<i32>} : memref<1x1024x128xf32, #tpu.memory_space<vmem>>, vector<1x1024x128xf32>,
    return
  }
  func.func @transform_0(%arg0: i32, %arg1: i32) -> (i32, i32, i32) {
    %c0_i32 = arith.constant 0 : i32
    %c0_i32_0 = arith.constant 0 : i32
    return %arg0, %arg1, %c0_i32 : i32, i32, i32
  }
  func.func @transform_1(%arg0: i32, %arg1: i32) -> (i32, i32, i32) {
    %c0_i32 = arith.constant 0 : i32
    %c0_i32_0 = arith.constant 0 : i32
    %c0_i32_1 = arith.constant 0 : i32
    %c0_i32_2 = arith.constant 0 : i32
    return %c0_i32, %c0_i32_0, %c0_i32_1 : i32, i32, i32
  }
  func.func @transform_2(%arg0: i32, %arg1: i32) -> (i32, i32, i32) {
    %c0_i32 = arith.constant 0 : i32
    %c0_i32_0 = arith.constant 0 : i32
    %c0_i32_1 = arith.constant 0 : i32
    %c0_i32_2 = arith.constant 0 : i32
    return %c0_i32, %c0_i32_0, %c0_i32_1 : i32, i32, i32
  }
  func.func @transform_3(%arg0: i32, %arg1: i32) -> (i32, i32, i32) {
    %c0_i32 = arith.constant 0 : i32
    %c0_i32_0 = arith.constant 0 : i32
    return %arg0, %arg1, %c0_i32 : i32, i32, i32
  }
}

</mosaic_0001>

<bundles_post_ra>
// kernel: tpu_custom_call.1
= control target key start
LH: loop header
LB: loop body
LE: loop exit
PB: predicated region body
PF: predicated region fallthrough
CT: control target
= control target key end

     0   :  { %8 = vsyncpa [#allocation3], 0  ;;  %s5012_s0 = inlined_call_operand.hbm [shape: f32[2,1024,128], index: 0, kind: input, shape index: {}]   ;;  %s5013_s1 = inlined_call_operand.vmem [shape: f32[2,1,128], index: 1, kind: input, shape index: {}]   ;;  %s5014_s2 = inlined_call_operand.vmem [shape: f32[2,1,128], index: 2, kind: input, shape index: {}]   ;;  %s5015_s3 = inlined_call_operand.hbm [shape: f32[2,1024,128], index: 3, kind: output, shape index: {}]  }
   0x1   :  { %10 = vsyncpa [#allocation3 + $0x1], 0 }
   0x2   :  { %11 = vsyncpa [#allocation4], 0 }
   0x3   :  { %13 = vsyncpa [#allocation4 + $0x1], 0  ;;  %s2795_s12 = smov 0   ;;  %s2797_s13 = smov 0  }
   0x4   :  { %s2799_s14 = smov 0   ;;  %s2801_s15 = smov 0  }
   0x5   :  { %s2803_s16 = smov 0   ;;  %s2805_s17 = smov 0  }
   0x6 LB: > { %s2251_s18 = sadd.s32 4294967295, %s2767_s17   ;;  %s2252_s19 = sadd.s32 4294967294, %s2767_s17   ;;  %s2767_s17 = sphi %s2805_s17, %s19_s17   ;;  %s2763_s16 = sphi %s2803_s16, %s5526_s16   ;;  %s2759_s15 = sphi %s2801_s15, %s5525_s15   ;;  %s2755_s14 = sphi %s2799_s14, %s5524_s14   ;;  %s2751_s13 = sphi %s2797_s13, %s5523_s13   ;;  %s2747_s12 = sphi %s2795_s12, %s5522_s12  }
   0x7   : > { %s31_s20 = sadd.s32 1, %s2763_s16  ;;  %s40_s21 = sadd.s32 1, %s2755_s14 }
   0x8   : > { %p33_p0 = scmp.ge.s32.totalorder %s31_s20, 2  ;;  %p47_p1 = scmp.ne.s32.totalorder %s2755_s14, %s2751_s13 }
   0x9   : > { %p48_p2 = scmp.eq.s32.totalorder %s2767_s17, 0  ;;  %p53_p3 = scmp.ne.s32.totalorder %s2751_s13, %s2747_s12 }
   0xa   : > { %s5528_s20 = smov (%p33_p0, %s31_s20), 0  ;;  %p54_p5 = scmp.eq.s32.totalorder %s2251_s18, 0 }
   0xb   : > { %p2836_p4 = por %p48_p2, %p47_p1  ;;  %s35_s23 = ssub.s32 %s2763_s16, %s5528_s20 }
   0xc   : > { %p121_p6 = scmp.eq.s32.totalorder %s2251_s18, 1  ;;  %p38_p7 = scmp.eq.s32.totalorder %s35_s23, 0 }
   0xd   : > { %p2842_p8 = por %p54_p5, %p53_p3  ;;  %p127_p10 = scmp.eq.s32.totalorder %s2252_s19, 1 }
   0xe   : > { %p2846_p9 = por %p121_p6, %p47_p1  ;;  %p2282_p13 = scmp.lt.s32.totalorder %s2767_s17, 2 }
   0xf   : > { %s2851_s26 = scalar_select %p38_p7, %s2755_s14, %s40_s21  }
  0x10   : > { %s5163_s25 = scalar_select %p2846_p9, 1, 0 }
  0x11   : > { %p2853_p11 = por %p127_p10, %p53_p3  ;;  %s153_s28 = sand.u32 1, %s2755_s14  }
  0x12   : > { %s2255_s29 = sshll.u32 %s153_s28, 10  ;;  %s2268_s30 = sshll.u32 %s2763_s16, 14 }
  0x13   : > { %s5164_s27 = scalar_select %p2853_p11, 1, 0 }
  0x14   : > { %s2864_s6 = scalar_lea.hbm %s5012_s0, %s2268_s30  ;;  %s157_s7 = scalar_lea.vmem [#allocation2], %s2255_s29 }
  0x15   : > { %s166_s8 = sshll.u32 %s157_s7, 4  ;;  %p2870_p0 = pnand %p2282_p13, %p2836_p4  ;;  %s2866_s8 = int_to_ptr.vmem [resolvable:$true] %s166_s8 }
  0x16   : > { %s2875_s10 = scalar_lea.sflag [#allocation3], %s153_s28  ;;  %s2655_s11 = scalar_lea.hbm %s2864_s6, 16384 }
  0x17   : > { %p2656_p2 = scmp.ne.s32.totalorder %s2864_s6, %s2655_s11  ;;  %p2657_p3 = pneg %p2870_p0 }
  0x18   : > { %s2660_s21 = scalar_lea.hbm %s5012_s0, 32768  ;;  %p2661_p4 = scmp.lt.u32.totalorder %s2864_s6, %s5012_s0 }
  0x19   : > { %p2658_p5 = pnand %p2657_p3, %p2656_p2  ;;  %p2662_p7 = scmp.lt.u32.totalorder %s2660_s21, %s2655_s11 }
  0x1a   : > { %p2664_p13 = scmp.lt.u32.totalorder %s2655_s11, %s2864_s6 }
  0x1b   : > { %p2659_p6 = pneg %p2658_p5  ;;  %p2663_p10 = por %p2662_p7, %p2661_p4 }
  0x1d   : > { %p2665_p12 = por %p2664_p13, %p2663_p10 }
  0x1f   : > { %p2666_p1 = pnand %p2665_p12, %p2659_p6 }
  0x21   : > { %2669 = shalt.err (!%p2666_p1)
}
  0x22   : > { %s2670_s28 = scalar_lea.vmem %s2866_s8, 16384  ;;  %s2769_s29 = smov [#allocation2]  }
  0x23   : > { %p2671_p2 = scmp.ne.s32.totalorder %s2866_s8, %s2670_s28  ;;  %s2675_s30 = sshll.u32 %s2769_s29, 4  ;;  %s2676_s30 = int_to_ptr.vmem [resolvable:$false] %s2675_s30 }
  0x24   : > { %s2677_s4 = scalar_lea.vmem %s2676_s30, 32768  ;;  %p2678_p9 = scmp.lt.s32.totalorder %s2866_s8, %s2676_s30 }
  0x25   : > { %p2673_p5 = pnand %p2671_p2, %p2657_p3  ;;  %p2679_p4 = scmp.lt.s32.totalorder %s2677_s4, %s2670_s28 }
  0x27   : > { %p2674_p11 = pneg %p2673_p5  ;;  %p2680_p7 = por %p2679_p4, %p2678_p9 }
  0x29   : > { %p2681_p10 = pnand %p2680_p7, %p2674_p11 }
  0x2b   : > { %2684 = shalt.err (!%p2681_p10)
}
  0x2c   : > { %s2770_s5 = smov 128   ;;  %s2771_s7 = smov 8  }
  0x2d   : > { %2277 = dma.hbm_to_vmem [thread:$0]  (!%p2870_p0), %s2864_s6, 16384, %s2866_s8, %s2875_s10, %s2770_s5, %s2770_s5, %s2771_s7  }
  0x2e   : > { %p174_p12 = scmp.lt.s32.totalorder %s2767_s17, 3  ;;  %p5166_p1 = scmp.ge.s32.totalorder %s2767_s17, 1 }
  0x30   : > { %p175_p3 = pnand %p5166_p1, %p174_p12 }
  0x32   : > { %178 = sbr.rel (%p175_p3) target bundleno = 749 (0x2ed), region = 32 }
  0x39   : > { %s2907_s11 = sand.u32 1, %s2751_s13  }
  0x3a   : > { %s2259_s18 = sshll.u32 %s2907_s11, 10  ;;  %s181_s19 = scalar_lea.sflag [#allocation3], %s2907_s11 }
  0x3b   : > { %s2913_s21 = scalar_lea.vmem [#allocation2], %s2259_s18 }
  0x3c   : > { %2738 = dma.done.wait (%p2842_p8), %s181_s19, 16384  }
  0x3d   : > { %2740 = vsyncadd (%p2842_p8), %s181_s19, 4294950912  ;;  %v2920_v0 = vld [vmem:[%s2913_s21 + $0x10] sm:$0xff]  ;;  %v2923_v1 = vld [vmem:[%s2913_s21] sm:$0xff]  ;;  %s4090_s8 = scalar_lea.vmem %s5013_s1, %s2759_s15  ;;  %s4130_s22 = scalar_lea.vmem %s5014_s2, %s2759_s15 }
  0x3e   : > { %341 = vadd.xlane.f32.xlu1 %v2920_v0  ;;  %337 = vadd.xlane.f32.xlu0 %v2923_v1  ;;  %v2928_v2 = vld [vmem:[%s2913_s21 + $0x18] sm:$0xff]  ;;  %v2931_v3 = vld [vmem:[%s2913_s21 + $0x8] sm:$0xff]  ;;  %v2939_v5 = vld [vmem:[%s2913_s21 + $0x20] sm:$0xff]  ;;  %s4185_s23 = scalar_lea.vmem [#allocation5], %s2259_s18  ;;  %s2269_s28 = sshll.u32 %s2759_s15, 14 }
  0x3f   : > { %v2936_v4 = vld [vmem:[%s2913_s21 + $0x28] sm:$0xff]  ;;  %v2944_v6 = vld [vmem:[%s2913_s21 + $0x38] sm:$0xff]  ;;  %v2947_v7 = vld [vmem:[%s2913_s21 + $0x30] sm:$0xff]  ;;  %s2162_s29 = sshll.u32 %s4185_s23, 4  ;;  %s4958_s5 = scalar_lea.hbm %s5015_s3, %s2269_s28  ;;  %s4960_s29 = int_to_ptr.vmem [resolvable:$true] %s2162_s29 }
  0x40   : > { %v2952_v8 = vld [vmem:[%s2913_s21 + $0x48] sm:$0xff]  ;;  %v2955_v9 = vld [vmem:[%s2913_s21 + $0x40] sm:$0xff]  ;;  %v2960_v10 = vld [vmem:[%s2913_s21 + $0x58] sm:$0xff]  ;;  %s2147_s15 = scalar_lea.sflag [#allocation4], %s2907_s11  ;;  %s2685_s7 = scalar_lea.vmem %s4960_s29, 16384 }
  0x41   : > { %v2963_v11 = vld [vmem:[%s2913_s21 + $0x50] sm:$0xff]  ;;  %v2968_v12 = vld [vmem:[%s2913_s21 + $0x68] sm:$0xff]  ;;  %v2971_v13 = vld [vmem:[%s2913_s21 + $0x60] sm:$0xff]  ;;  %p2686_p8 = scmp.ne.s32.totalorder %s4960_s29, %s2685_s7  ;;  %p5519_p9 = scmp.ne.s32.totalorder %s5163_s25, 0 }
  0x42   : > { %343 = vadd.xlane.f32.xlu1 %v2928_v2  ;;  %339 = vadd.xlane.f32.xlu0 %v2931_v3  ;;  %v2976_v14 = vld [vmem:[%s2913_s21 + $0x78] sm:$0xff]  ;;  %v2979_v15 = vld [vmem:[%s2913_s21 + $0x70] sm:$0xff]  ;;  %v2984_v16 = vld [vmem:[%s2913_s21 + $0x88] sm:$0xff]  ;;  %s2772_s18 = smov [#allocation5]  }
  0x43   : > { %v2987_v17 = vld [vmem:[%s2913_s21 + $0x80] sm:$0xff]  ;;  %v2992_v18 = vld [vmem:[%s2913_s21 + $0x98] sm:$0xff]  ;;  %v2995_v19 = vld [vmem:[%s2913_s21 + $0x90] sm:$0xff]  ;;  %p2687_p11 = pnand %p2686_p8, %p5519_p9  ;;  %s2689_s19 = sshll.u32 %s2772_s18, 4  ;;  %s2690_s19 = int_to_ptr.vmem [resolvable:$false] %s2689_s19 }
  0x44   : > { %v3000_v20 = vld [vmem:[%s2913_s21 + $0xa8] sm:$0xff]  ;;  %v3003_v21 = vld [vmem:[%s2913_s21 + $0xa0] sm:$0xff]  ;;  %v3008_v22 = vld [vmem:[%s2913_s21 + $0xb8] sm:$0xff]  ;;  %p2692_p6 = scmp.lt.s32.totalorder %s4960_s29, %s2690_s19 }
  0x45   : > { %v3011_v23 = vld [vmem:[%s2913_s21 + $0xb0] sm:$0xff]  ;;  %v3016_v24 = vld [vmem:[%s2913_s21 + $0xc8] sm:$0xff]  ;;  %v3019_v25 = vld [vmem:[%s2913_s21 + $0xc0] sm:$0xff]  ;;  %p2688_p0 = pneg %p2687_p11 }
  0x46   : > { %347 = vadd.xlane.f32.xlu1 %v2936_v4  ;;  %345 = vadd.xlane.f32.xlu0 %v2939_v5  ;;  %5167 = vst [vmem:[#allocation8_spill] sm:$0xff] %v3016_v24  ;;  %5168 = vst [vmem:[#allocation9_spill] sm:$0xff] %v3019_v25  ;;  %v3024_v26 = vld [vmem:[%s2913_s21 + $0xd8] sm:$0xff]  ;;  %v3027_v27 = vld [vmem:[%s2913_s21 + $0xd0] sm:$0xff] }
  0x47   : > { %5169 = vst [vmem:[#allocation10_spill] sm:$0xff] %v3024_v26  ;;  %5170 = vst [vmem:[#allocation11_spill] sm:$0xff] %v3027_v27  ;;  %v3032_v28 = vld [vmem:[%s2913_s21 + $0xe8] sm:$0xff]  ;;  %v3035_v29 = vld [vmem:[%s2913_s21 + $0xe0] sm:$0xff] }
  0x48   : > { %5171 = vst [vmem:[#allocation12_spill] sm:$0xff] %v3032_v28  ;;  %5172 = vst [vmem:[#allocation13_spill] sm:$0xff] %v3035_v29  ;;  %v3040_v30 = vld [vmem:[%s2913_s21 + $0xf8] sm:$0xff]  ;;  %v3043_v31 = vld [vmem:[%s2913_s21 + $0xf0] sm:$0xff] }
  0x49   : > { %5173 = vst [vmem:[#allocation14_spill] sm:$0xff] %v3040_v30  ;;  %5174 = vst [vmem:[#allocation15_spill] sm:$0xff] %v3043_v31  ;;  %v3048_v32 = vld [vmem:[%s2913_s21 + $0x108] sm:$0xff]  ;;  %v3051_v33 = vld [vmem:[%s2913_s21 + $0x100] sm:$0xff] }
  0x4a   : > { %351 = vadd.xlane.f32.xlu1 %v2944_v6  ;;  %349 = vadd.xlane.f32.xlu0 %v2947_v7  ;;  %5175 = vst [vmem:[#allocation16_spill] sm:$0xff] %v3048_v32  ;;  %5176 = vst [vmem:[#allocation17_spill] sm:$0xff] %v3051_v33  ;;  %v3056_v34 = vld [vmem:[%s2913_s21 + $0x118] sm:$0xff]  ;;  %v3059_v35 = vld [vmem:[%s2913_s21 + $0x110] sm:$0xff] }
  0x4b   : > { %5177 = vst [vmem:[#allocation18_spill] sm:$0xff] %v3056_v34  ;;  %5178 = vst [vmem:[#allocation19_spill] sm:$0xff] %v3059_v35  ;;  %v3064_v36 = vld [vmem:[%s2913_s21 + $0x128] sm:$0xff]  ;;  %v3067_v37 = vld [vmem:[%s2913_s21 + $0x120] sm:$0xff] }
  0x4c   : > { %5179 = vst [vmem:[#allocation20_spill] sm:$0xff] %v3064_v36  ;;  %5180 = vst [vmem:[#allocation21_spill] sm:$0xff] %v3067_v37  ;;  %v3072_v38 = vld [vmem:[%s2913_s21 + $0x138] sm:$0xff]  ;;  %v3075_v39 = vld [vmem:[%s2913_s21 + $0x130] sm:$0xff] }
  0x4d   : > { %5181 = vst [vmem:[#allocation22_spill] sm:$0xff] %v3072_v38  ;;  %5182 = vst [vmem:[#allocation23_spill] sm:$0xff] %v3075_v39  ;;  %v3080_v40 = vld [vmem:[%s2913_s21 + $0x148] sm:$0xff]  ;;  %v3083_v41 = vld [vmem:[%s2913_s21 + $0x140] sm:$0xff] }
  0x4e   : > { %355 = vadd.xlane.f32.xlu1 %v2952_v8  ;;  %353 = vadd.xlane.f32.xlu0 %v2955_v9  ;;  %5183 = vst [vmem:[#allocation24_spill] sm:$0xff] %v3080_v40  ;;  %5184 = vst [vmem:[#allocation25_spill] sm:$0xff] %v3083_v41  ;;  %v3088_v42 = vld [vmem:[%s2913_s21 + $0x158] sm:$0xff]  ;;  %v3091_v43 = vld [vmem:[%s2913_s21 + $0x150] sm:$0xff] }
  0x4f   : > { %5185 = vst [vmem:[#allocation26_spill] sm:$0xff] %v3088_v42  ;;  %5186 = vst [vmem:[#allocation27_spill] sm:$0xff] %v3091_v43  ;;  %v3096_v44 = vld [vmem:[%s2913_s21 + $0x168] sm:$0xff]  ;;  %v3099_v45 = vld [vmem:[%s2913_s21 + $0x160] sm:$0xff] }
  0x50   : > { %5187 = vst [vmem:[#allocation28_spill] sm:$0xff] %v3096_v44  ;;  %5188 = vst [vmem:[#allocation29_spill] sm:$0xff] %v3099_v45  ;;  %v3104_v46 = vld [vmem:[%s2913_s21 + $0x178] sm:$0xff]  ;;  %v3107_v47 = vld [vmem:[%s2913_s21 + $0x170] sm:$0xff] }
  0x51   : > { %5189 = vst [vmem:[#allocation30_spill] sm:$0xff] %v3104_v46  ;;  %5190 = vst [vmem:[#allocation31_spill] sm:$0xff] %v3107_v47  ;;  %v3112_v48 = vld [vmem:[%s2913_s21 + $0x188] sm:$0xff]  ;;  %v3115_v49 = vld [vmem:[%s2913_s21 + $0x180] sm:$0xff] }
  0x52   : > { %359 = vadd.xlane.f32.xlu1 %v2960_v10  ;;  %357 = vadd.xlane.f32.xlu0 %v2963_v11  ;;  %5191 = vst [vmem:[#allocation32_spill] sm:$0xff] %v3112_v48  ;;  %5192 = vst [vmem:[#allocation33_spill] sm:$0xff] %v3115_v49  ;;  %v3120_v50 = vld [vmem:[%s2913_s21 + $0x198] sm:$0xff]  ;;  %v3123_v51 = vld [vmem:[%s2913_s21 + $0x190] sm:$0xff] }
  0x53   : > { %5193 = vst [vmem:[#allocation34_spill] sm:$0xff] %v3120_v50  ;;  %5194 = vst [vmem:[#allocation35_spill] sm:$0xff] %v3123_v51  ;;  %v3128_v52 = vld [vmem:[%s2913_s21 + $0x1a8] sm:$0xff]  ;;  %v3131_v53 = vld [vmem:[%s2913_s21 + $0x1a0] sm:$0xff] }
  0x54   : > { %5195 = vst [vmem:[#allocation36_spill] sm:$0xff] %v3128_v52  ;;  %5196 = vst [vmem:[#allocation37_spill] sm:$0xff] %v3131_v53  ;;  %v3136_v54 = vld [vmem:[%s2913_s21 + $0x1b8] sm:$0xff]  ;;  %v3139_v55 = vld [vmem:[%s2913_s21 + $0x1b0] sm:$0xff] }
  0x55   : > { %5197 = vst [vmem:[#allocation38_spill] sm:$0xff] %v3136_v54  ;;  %5198 = vst [vmem:[#allocation39_spill] sm:$0xff] %v3139_v55  ;;  %v3144_v56 = vld [vmem:[%s2913_s21 + $0x1c8] sm:$0xff]  ;;  %v3147_v57 = vld [vmem:[%s2913_s21 + $0x1c0] sm:$0xff] }
  0x56   : > { %363 = vadd.xlane.f32.xlu1 %v2968_v12  ;;  %361 = vadd.xlane.f32.xlu0 %v2971_v13  ;;  %5199 = vst [vmem:[#allocation40_spill] sm:$0xff] %v3144_v56  ;;  %5200 = vst [vmem:[#allocation41_spill] sm:$0xff] %v3147_v57  ;;  %v3152_v58 = vld [vmem:[%s2913_s21 + $0x1d8] sm:$0xff]  ;;  %v3155_v59 = vld [vmem:[%s2913_s21 + $0x1d0] sm:$0xff] }
  0x57   : > { %5201 = vst [vmem:[#allocation42_spill] sm:$0xff] %v3152_v58  ;;  %5202 = vst [vmem:[#allocation43_spill] sm:$0xff] %v3155_v59  ;;  %v3160_v60 = vld [vmem:[%s2913_s21 + $0x1e8] sm:$0xff]  ;;  %v3163_v61 = vld [vmem:[%s2913_s21 + $0x1e0] sm:$0xff] }
  0x58   : > { %5203 = vst [vmem:[#allocation44_spill] sm:$0xff] %v3160_v60  ;;  %5204 = vst [vmem:[#allocation45_spill] sm:$0xff] %v3163_v61  ;;  %v3168_v62 = vld [vmem:[%s2913_s21 + $0x1f8] sm:$0xff]  ;;  %v3171_v63 = vld [vmem:[%s2913_s21 + $0x1f0] sm:$0xff] }
  0x59   : > { %5205 = vst [vmem:[#allocation46_spill] sm:$0xff] %v3168_v62  ;;  %5206 = vst [vmem:[#allocation47_spill] sm:$0xff] %v3171_v63 }
  0x5a   : > { %367 = vadd.xlane.f32.xlu1 %v2976_v14  ;;  %365 = vadd.xlane.f32.xlu0 %v2979_v15 }
  0x5e   : > { %371 = vadd.xlane.f32.xlu1 %v2984_v16  ;;  %369 = vadd.xlane.f32.xlu0 %v2987_v17 }
  0x62   : > { %375 = vadd.xlane.f32.xlu1 %v2992_v18  ;;  %373 = vadd.xlane.f32.xlu0 %v2995_v19 }
  0x66   : > { %379 = vadd.xlane.f32.xlu1 %v3000_v20  ;;  %377 = vadd.xlane.f32.xlu0 %v3003_v21 }
  0x6a   : > { %383 = vadd.xlane.f32.xlu1 %v3008_v22  ;;  %381 = vadd.xlane.f32.xlu0 %v3011_v23 }
  0x6e   : > { %387 = vadd.xlane.f32.xlu1 %v3016_v24  ;;  %385 = vadd.xlane.f32.xlu0 %v3019_v25 }
  0x72   : > { %391 = vadd.xlane.f32.xlu1 %v3024_v26  ;;  %389 = vadd.xlane.f32.xlu0 %v3027_v27  ;;  %v312_v27 = vld [vmem:[%s2913_s21 + $0x338] sm:$0xff]  ;;  %v311_v26 = vld [vmem:[%s2913_s21 + $0x330] sm:$0xff] }
  0x76   : > { %395 = vadd.xlane.f32.xlu1 %v3032_v28  ;;  %393 = vadd.xlane.f32.xlu0 %v3035_v29  ;;  %v310_v29 = vld [vmem:[%s2913_s21 + $0x328] sm:$0xff]  ;;  %v309_v28 = vld [vmem:[%s2913_s21 + $0x320] sm:$0xff] }
  0x7a   : > { %399 = vadd.xlane.f32.xlu1 %v3040_v30  ;;  %397 = vadd.xlane.f32.xlu0 %v3043_v31  ;;  %v308_v31 = vld [vmem:[%s2913_s21 + $0x318] sm:$0xff]  ;;  %v307_v30 = vld [vmem:[%s2913_s21 + $0x310] sm:$0xff] }
  0x7e   : > { %403 = vadd.xlane.f32.xlu1 %v3048_v32  ;;  %401 = vadd.xlane.f32.xlu0 %v3051_v33  ;;  %v306_v33 = vld [vmem:[%s2913_s21 + $0x308] sm:$0xff]  ;;  %v305_v32 = vld [vmem:[%s2913_s21 + $0x300] sm:$0xff] }
  0x82   : > { %407 = vadd.xlane.f32.xlu1 %v3056_v34  ;;  %405 = vadd.xlane.f32.xlu0 %v3059_v35  ;;  %v304_v35 = vld [vmem:[%s2913_s21 + $0x2f8] sm:$0xff]  ;;  %v303_v34 = vld [vmem:[%s2913_s21 + $0x2f0] sm:$0xff] }
  0x86   : > { %411 = vadd.xlane.f32.xlu1 %v3064_v36  ;;  %409 = vadd.xlane.f32.xlu0 %v3067_v37  ;;  %v302_v37 = vld [vmem:[%s2913_s21 + $0x2e8] sm:$0xff]  ;;  %v301_v36 = vld [vmem:[%s2913_s21 + $0x2e0] sm:$0xff] }
  0x8a   : > { %415 = vadd.xlane.f32.xlu1 %v3072_v38  ;;  %413 = vadd.xlane.f32.xlu0 %v3075_v39  ;;  %v300_v39 = vld [vmem:[%s2913_s21 + $0x2d8] sm:$0xff]  ;;  %v299_v38 = vld [vmem:[%s2913_s21 + $0x2d0] sm:$0xff] }
  0x8e   : > { %419 = vadd.xlane.f32.xlu1 %v3080_v40  ;;  %417 = vadd.xlane.f32.xlu0 %v3083_v41  ;;  %v298_v41 = vld [vmem:[%s2913_s21 + $0x2c8] sm:$0xff]  ;;  %v297_v40 = vld [vmem:[%s2913_s21 + $0x2c0] sm:$0xff] }
  0x92   : > { %423 = vadd.xlane.f32.xlu1 %v3088_v42  ;;  %421 = vadd.xlane.f32.xlu0 %v3091_v43  ;;  %v296_v43 = vld [vmem:[%s2913_s21 + $0x2b8] sm:$0xff]  ;;  %v295_v42 = vld [vmem:[%s2913_s21 + $0x2b0] sm:$0xff] }
  0x96   : > { %427 = vadd.xlane.f32.xlu1 %v3096_v44  ;;  %425 = vadd.xlane.f32.xlu0 %v3099_v45  ;;  %v294_v45 = vld [vmem:[%s2913_s21 + $0x2a8] sm:$0xff]  ;;  %v293_v44 = vld [vmem:[%s2913_s21 + $0x2a0] sm:$0xff] }
  0x9a   : > { %431 = vadd.xlane.f32.xlu1 %v3104_v46  ;;  %429 = vadd.xlane.f32.xlu0 %v3107_v47  ;;  %v292_v47 = vld [vmem:[%s2913_s21 + $0x298] sm:$0xff]  ;;  %v291_v46 = vld [vmem:[%s2913_s21 + $0x290] sm:$0xff] }
  0x9e   : > { %435 = vadd.xlane.f32.xlu1 %v3112_v48  ;;  %433 = vadd.xlane.f32.xlu0 %v3115_v49  ;;  %v290_v49 = vld [vmem:[%s2913_s21 + $0x288] sm:$0xff]  ;;  %v289_v48 = vld [vmem:[%s2913_s21 + $0x280] sm:$0xff] }
  0xa2   : > { %439 = vadd.xlane.f32.xlu1 %v3120_v50  ;;  %437 = vadd.xlane.f32.xlu0 %v3123_v51  ;;  %v288_v51 = vld [vmem:[%s2913_s21 + $0x278] sm:$0xff]  ;;  %v287_v50 = vld [vmem:[%s2913_s21 + $0x270] sm:$0xff] }
  0xa6   : > { %443 = vadd.xlane.f32.xlu1 %v3128_v52  ;;  %441 = vadd.xlane.f32.xlu0 %v3131_v53  ;;  %v286_v53 = vld [vmem:[%s2913_s21 + $0x268] sm:$0xff]  ;;  %v285_v52 = vld [vmem:[%s2913_s21 + $0x260] sm:$0xff] }
  0xaa   : > { %447 = vadd.xlane.f32.xlu1 %v3136_v54  ;;  %445 = vadd.xlane.f32.xlu0 %v3139_v55  ;;  %v283_v54 = vld [vmem:[%s2913_s21 + $0x250] sm:$0xff] }
  0xae   : > { %451 = vadd.xlane.f32.xlu1 %v3144_v56  ;;  %449 = vadd.xlane.f32.xlu0 %v3147_v57  ;;  %v279_v57 = vld [vmem:[%s2913_s21 + $0x230] sm:$0xff] }
  0xb2   : > { %455 = vadd.xlane.f32.xlu1 %v3152_v58  ;;  %453 = vadd.xlane.f32.xlu0 %v3155_v59  ;;  %v3176_v59 = vld [vmem:[%s2913_s21 + $0x208] sm:$0xff]  ;;  %v3179_v58 = vld [vmem:[%s2913_s21 + $0x200] sm:$0xff] }
  0xb3   : > { %5207 = vst [vmem:[#allocation48_spill] sm:$0xff] %v3176_v59  ;;  %5208 = vst [vmem:[#allocation49_spill] sm:$0xff] %v3179_v58 }
  0xb6   : > { %459 = vadd.xlane.f32.xlu1 %v3160_v60  ;;  %457 = vadd.xlane.f32.xlu0 %v3163_v61  ;;  %v3184_v61 = vld [vmem:[%s2913_s21 + $0x218] sm:$0xff]  ;;  %v3187_v60 = vld [vmem:[%s2913_s21 + $0x210] sm:$0xff] }
  0xb7   : > { %5209 = vst [vmem:[#allocation50_spill] sm:$0xff] %v3184_v61  ;;  %5210 = vst [vmem:[#allocation51_spill] sm:$0xff] %v3187_v60 }
  0xba   : > { %463 = vadd.xlane.f32.xlu1 %v3168_v62  ;;  %461 = vadd.xlane.f32.xlu0 %v3171_v63  ;;  %v3192_v62 = vld [vmem:[%s2913_s21 + $0x228] sm:$0xff]  ;;  %v277_v63 = vld [vmem:[%s2913_s21 + $0x220] sm:$0xff] }
  0xbb   : > { %5211 = vst [vmem:[#allocation52_spill] sm:$0xff] %v3192_v62 }
  0xbe   : > { %467 = vadd.xlane.f32.xlu1 %v3176_v59  ;;  %465 = vadd.xlane.f32.xlu0 %v3179_v58  ;;  %v280_v59 = vld [vmem:[%s2913_s21 + $0x238] sm:$0xff] }
  0xc2   : > { %471 = vadd.xlane.f32.xlu1 %v3184_v61  ;;  %469 = vadd.xlane.f32.xlu0 %v3187_v60  ;;  %v282_v61 = vld [vmem:[%s2913_s21 + $0x248] sm:$0xff]  ;;  %v281_v60 = vld [vmem:[%s2913_s21 + $0x240] sm:$0xff] }
  0xc6   : > { %475 = vadd.xlane.f32.xlu1 %v3192_v62  ;;  %473 = vadd.xlane.f32.xlu0 %v277_v63  ;;  %v284_v63 = vld [vmem:[%s2913_s21 + $0x258] sm:$0xff] }
  0xca   : > { %479 = vadd.xlane.f32.xlu1 %v280_v59  ;;  %477 = vadd.xlane.f32.xlu0 %v279_v57 }
  0xcb   : > { %v3198_v58 = vpop.xlane.xlu1 %341  ;;  %v3200_v56 = vpop.xlane.xlu0 %337 }
  0xcc   : > { %v594_v25 = vmul.f32 0.0078125, %v3200_v56 }
  0xce   : > { %483 = vadd.xlane.f32.xlu1 %v282_v61  ;;  %481 = vadd.xlane.f32.xlu0 %v281_v60 }
  0xcf   : > { %v3204_v55 = vpop.xlane.xlu1 %343  ;;  %v3206_v62 = vpop.xlane.xlu0 %339 }
  0xd2   : > { %487 = vadd.xlane.f32.xlu1 %v284_v63  ;;  %485 = vadd.xlane.f32.xlu0 %v283_v54 }
  0xd3   : > { %v3210_v57 = vpop.xlane.xlu1 %347  ;;  %v3212_v59 = vpop.xlane.xlu0 %345 }
  0xd6   : > { %491 = vadd.xlane.f32.xlu1 %v286_v53  ;;  %489 = vadd.xlane.f32.xlu0 %v285_v52 }
  0xd7   : > { %v3216_v60 = vpop.xlane.xlu1 %351  ;;  %v3218_v61 = vpop.xlane.xlu0 %349 }
  0xda   : > { %495 = vadd.xlane.f32.xlu1 %v288_v51  ;;  %493 = vadd.xlane.f32.xlu0 %v287_v50 }
  0xdb   : > { %v3222_v54 = vpop.xlane.xlu1 %355  ;;  %v3224_v63 = vpop.xlane.xlu0 %353 }
  0xde   : > { %499 = vadd.xlane.f32.xlu1 %v290_v49  ;;  %497 = vadd.xlane.f32.xlu0 %v289_v48 }
  0xdf   : > { %v3228_v52 = vpop.xlane.xlu1 %359  ;;  %v3230_v53 = vpop.xlane.xlu0 %357 }
  0xe2   : > { %503 = vadd.xlane.f32.xlu1 %v292_v47  ;;  %501 = vadd.xlane.f32.xlu0 %v291_v46 }
  0xe3   : > { %v3234_v50 = vpop.xlane.xlu1 %363  ;;  %v3236_v51 = vpop.xlane.xlu0 %361 }
  0xe6   : > { %507 = vadd.xlane.f32.xlu1 %v294_v45  ;;  %505 = vadd.xlane.f32.xlu0 %v293_v44 }
  0xe7   : > { %v3240_v48 = vpop.xlane.xlu1 %367  ;;  %v3242_v49 = vpop.xlane.xlu0 %365 }
  0xea   : > { %511 = vadd.xlane.f32.xlu1 %v296_v43  ;;  %509 = vadd.xlane.f32.xlu0 %v295_v42 }
  0xeb   : > { %v3246_v46 = vpop.xlane.xlu1 %371  ;;  %v3248_v47 = vpop.xlane.xlu0 %369 }
  0xee   : > { %515 = vadd.xlane.f32.xlu1 %v298_v41  ;;  %513 = vadd.xlane.f32.xlu0 %v297_v40 }
  0xef   : > { %v3252_v44 = vpop.xlane.xlu1 %375  ;;  %v3254_v45 = vpop.xlane.xlu0 %373 }
  0xf2   : > { %519 = vadd.xlane.f32.xlu1 %v300_v39  ;;  %517 = vadd.xlane.f32.xlu0 %v299_v38 }
  0xf3   : > { %v3258_v42 = vpop.xlane.xlu1 %379  ;;  %v3260_v43 = vpop.xlane.xlu0 %377 }
  0xf6   : > { %523 = vadd.xlane.f32.xlu1 %v302_v37  ;;  %521 = vadd.xlane.f32.xlu0 %v301_v36 }
  0xf7   : > { %v3264_v40 = vpop.xlane.xlu1 %383  ;;  %v3266_v41 = vpop.xlane.xlu0 %381 }
  0xfa   : > { %527 = vadd.xlane.f32.xlu1 %v304_v35  ;;  %525 = vadd.xlane.f32.xlu0 %v303_v34 }
  0xfb   : > { %v3270_v38 = vpop.xlane.xlu1 %387  ;;  %v3272_v39 = vpop.xlane.xlu0 %385 }
  0xfe   : > { %531 = vadd.xlane.f32.xlu1 %v306_v33  ;;  %529 = vadd.xlane.f32.xlu0 %v305_v32 }
  0xff   : > { %v3276_v36 = vpop.xlane.xlu1 %391  ;;  %v3278_v37 = vpop.xlane.xlu0 %389 }
 0x102   : > { %535 = vadd.xlane.f32.xlu1 %v308_v31  ;;  %533 = vadd.xlane.f32.xlu0 %v307_v30 }
 0x103   : > { %v3282_v34 = vpop.xlane.xlu1 %395  ;;  %v3284_v35 = vpop.xlane.xlu0 %393 }
 0x104   : > { %5212 = vst [vmem:[#allocation53_spill] sm:$0xff] %v3282_v34  ;;  %5213 = vst [vmem:[#allocation54_spill] sm:$0xff] %v3284_v35  ;;  %v314_v35 = vld [vmem:[%s2913_s21 + $0x348] sm:$0xff]  ;;  %v313_v34 = vld [vmem:[%s2913_s21 + $0x340] sm:$0xff] }
 0x106   : > { %539 = vadd.xlane.f32.xlu1 %v310_v29  ;;  %537 = vadd.xlane.f32.xlu0 %v309_v28 }
 0x107   : > { %v3288_v32 = vpop.xlane.xlu1 %399  ;;  %v3290_v33 = vpop.xlane.xlu0 %397 }
 0x108   : > { %5214 = vst [vmem:[#allocation55_spill] sm:$0xff] %v3288_v32  ;;  %5215 = vst [vmem:[#allocation56_spill] sm:$0xff] %v3290_v33  ;;  %v316_v33 = vld [vmem:[%s2913_s21 + $0x358] sm:$0xff]  ;;  %v315_v32 = vld [vmem:[%s2913_s21 + $0x350] sm:$0xff] }
 0x10a   : > { %543 = vadd.xlane.f32.xlu1 %v312_v27  ;;  %541 = vadd.xlane.f32.xlu0 %v311_v26 }
 0x10b   : > { %v3294_v30 = vpop.xlane.xlu1 %403  ;;  %v3296_v31 = vpop.xlane.xlu0 %401 }
 0x10c   : > { %5216 = vst [vmem:[#allocation57_spill] sm:$0xff] %v3294_v30  ;;  %5217 = vst [vmem:[#allocation58_spill] sm:$0xff] %v3296_v31  ;;  %v318_v31 = vld [vmem:[%s2913_s21 + $0x368] sm:$0xff]  ;;  %v317_v30 = vld [vmem:[%s2913_s21 + $0x360] sm:$0xff] }
 0x10e   : > { %547 = vadd.xlane.f32.xlu1 %v314_v35  ;;  %545 = vadd.xlane.f32.xlu0 %v313_v34 }
 0x10f   : > { %v3300_v28 = vpop.xlane.xlu1 %407  ;;  %v3302_v29 = vpop.xlane.xlu0 %405 }
 0x110   : > { %5218 = vst [vmem:[#allocation59_spill] sm:$0xff] %v3300_v28  ;;  %5219 = vst [vmem:[#allocation60_spill] sm:$0xff] %v3302_v29  ;;  %v320_v29 = vld [vmem:[%s2913_s21 + $0x378] sm:$0xff]  ;;  %v319_v28 = vld [vmem:[%s2913_s21 + $0x370] sm:$0xff] }
 0x112   : > { %551 = vadd.xlane.f32.xlu1 %v316_v33  ;;  %549 = vadd.xlane.f32.xlu0 %v315_v32 }
 0x113   : > { %v3306_v26 = vpop.xlane.xlu1 %411  ;;  %v3308_v27 = vpop.xlane.xlu0 %409 }
 0x114   : > { %5220 = vst [vmem:[#allocation61_spill] sm:$0xff] %v3306_v26  ;;  %5221 = vst [vmem:[#allocation62_spill] sm:$0xff] %v3308_v27  ;;  %v322_v27 = vld [vmem:[%s2913_s21 + $0x388] sm:$0xff]  ;;  %v321_v26 = vld [vmem:[%s2913_s21 + $0x380] sm:$0xff] }
 0x116   : > { %555 = vadd.xlane.f32.xlu1 %v318_v31  ;;  %553 = vadd.xlane.f32.xlu0 %v317_v30 }
 0x117   : > { %v3312_v34 = vpop.xlane.xlu1 %415  ;;  %v3314_v35 = vpop.xlane.xlu0 %413 }
 0x118   : > { %5222 = vst [vmem:[#allocation63_spill] sm:$0xff] %v3312_v34  ;;  %5223 = vst [vmem:[#allocation64_spill] sm:$0xff] %v3314_v35  ;;  %v324_v35 = vld [vmem:[%s2913_s21 + $0x398] sm:$0xff]  ;;  %v323_v34 = vld [vmem:[%s2913_s21 + $0x390] sm:$0xff] }
 0x11a   : > { %559 = vadd.xlane.f32.xlu1 %v320_v29  ;;  %557 = vadd.xlane.f32.xlu0 %v319_v28 }
 0x11b   : > { %v3318_v32 = vpop.xlane.xlu1 %419  ;;  %v3320_v33 = vpop.xlane.xlu0 %417 }
 0x11c   : > { %5224 = vst [vmem:[#allocation65_spill] sm:$0xff] %v3318_v32  ;;  %5225 = vst [vmem:[#allocation66_spill] sm:$0xff] %v3320_v33  ;;  %v326_v33 = vld [vmem:[%s2913_s21 + $0x3a8] sm:$0xff]  ;;  %v325_v32 = vld [vmem:[%s2913_s21 + $0x3a0] sm:$0xff] }
 0x11e   : > { %563 = vadd.xlane.f32.xlu1 %v322_v27  ;;  %561 = vadd.xlane.f32.xlu0 %v321_v26 }
 0x11f   : > { %v3324_v30 = vpop.xlane.xlu1 %423  ;;  %v3326_v31 = vpop.xlane.xlu0 %421 }
 0x120   : > { %5226 = vst [vmem:[#allocation67_spill] sm:$0xff] %v3324_v30  ;;  %5227 = vst [vmem:[#allocation68_spill] sm:$0xff] %v3326_v31  ;;  %v328_v31 = vld [vmem:[%s2913_s21 + $0x3b8] sm:$0xff]  ;;  %v327_v30 = vld [vmem:[%s2913_s21 + $0x3b0] sm:$0xff] }
 0x122   : > { %567 = vadd.xlane.f32.xlu1 %v324_v35  ;;  %565 = vadd.xlane.f32.xlu0 %v323_v34 }
 0x123   : > { %v3330_v28 = vpop.xlane.xlu1 %427  ;;  %v3332_v29 = vpop.xlane.xlu0 %425 }
 0x124   : > { %5228 = vst [vmem:[#allocation69_spill] sm:$0xff] %v3330_v28  ;;  %5229 = vst [vmem:[#allocation70_spill] sm:$0xff] %v3332_v29  ;;  %v330_v29 = vld [vmem:[%s2913_s21 + $0x3c8] sm:$0xff]  ;;  %v329_v28 = vld [vmem:[%s2913_s21 + $0x3c0] sm:$0xff] }
 0x126   : > { %571 = vadd.xlane.f32.xlu1 %v326_v33  ;;  %569 = vadd.xlane.f32.xlu0 %v325_v32 }
 0x127   : > { %v3336_v26 = vpop.xlane.xlu1 %431  ;;  %v3338_v27 = vpop.xlane.xlu0 %429 }
 0x128   : > { %5230 = vst [vmem:[#allocation71_spill] sm:$0xff] %v3336_v26  ;;  %5231 = vst [vmem:[#allocation72_spill] sm:$0xff] %v3338_v27  ;;  %v332_v26 = vld [vmem:[%s2913_s21 + $0x3d8] sm:$0xff]  ;;  %v331_v27 = vld [vmem:[%s2913_s21 + $0x3d0] sm:$0xff] }
 0x12a   : > { %575 = vadd.xlane.f32.xlu1 %v328_v31  ;;  %573 = vadd.xlane.f32.xlu0 %v327_v30 }
 0x12b   : > { %v3342_v34 = vpop.xlane.xlu1 %435  ;;  %v3344_v35 = vpop.xlane.xlu0 %433 }
 0x12c   : > { %5232 = vst [vmem:[#allocation73_spill] sm:$0xff] %v3342_v34  ;;  %5233 = vst [vmem:[#allocation74_spill] sm:$0xff] %v3344_v35  ;;  %v334_v34 = vld [vmem:[%s2913_s21 + $0x3e8] sm:$0xff]  ;;  %v333_v35 = vld [vmem:[%s2913_s21 + $0x3e0] sm:$0xff] }
 0x12e   : > { %579 = vadd.xlane.f32.xlu1 %v330_v29  ;;  %577 = vadd.xlane.f32.xlu0 %v329_v28  ;;  %v595_v28 = vmul.f32 0.0078125, %v3206_v62  ;;  %v596_v29 = vmul.f32 0.0078125, %v3198_v58 }
 0x12f   : > { %v3348_v32 = vpop.xlane.xlu1 %439  ;;  %v3350_v33 = vpop.xlane.xlu0 %437 }
 0x130   : > { %5234 = vst [vmem:[#allocation75_spill] sm:$0xff] %v3348_v32  ;;  %5235 = vst [vmem:[#allocation76_spill] sm:$0xff] %v3350_v33  ;;  %v597_v33 = vmul.f32 0.0078125, %v3204_v55  ;;  %v3374_v24 = vsub.f32 %v2931_v3, %v595_v28  ;;  %v3377_v56 = vsub.f32 %v2920_v0, %v596_v29  ;;  %v600_v28 = vmul.f32 0.0078125, %v3218_v61 }
 0x131   : > { %v603_v29 = vmul.f32 0.0078125, %v3222_v54 }
 0x132   : > { %583 = vadd.xlane.f32.xlu1 %v332_v26  ;;  %581 = vadd.xlane.f32.xlu0 %v331_v27  ;;  %v336_v27 = vld [vmem:[%s2913_s21 + $0x3f8] sm:$0xff]  ;;  %5239 = vst [vmem:[#allocation80_spill] sm:$0xff] %v3374_v24  ;;  %5240 = vst [vmem:[#allocation81_spill] sm:$0xff] %v3377_v56  ;;  %v3380_v58 = vsub.f32 %v2928_v2, %v597_v33  ;;  %v851_v3 = vmul.f32 %v3374_v24, %v3374_v24 }
 0x133   : > { %v3354_v30 = vpop.xlane.xlu1 %443  ;;  %v3356_v31 = vpop.xlane.xlu0 %441  ;;  %v3425_v54 = vsub.f32 %v2952_v8, %v603_v29  ;;  %v607_v29 = vmul.f32 0.0078125, %v3234_v50 }
 0x134   : > { %5236 = vst [vmem:[#allocation77_spill] sm:$0xff] %v3354_v30  ;;  %5237 = vst [vmem:[#allocation78_spill] sm:$0xff] %v3356_v31  ;;  %v335_v30 = vld [vmem:[%s2913_s21 + $0x3f0] sm:$0xff]  ;;  %v3371_v31 = vsub.f32 %v2923_v1, %v594_v25  ;;  %v598_v1 = vmul.f32 0.0078125, %v3212_v59 }
 0x135   : > { %5241 = vst [vmem:[#allocation82_spill] sm:$0xff] %v3380_v58  ;;  %5246 = vst [vmem:[#allocation87_spill] sm:$0xff] %v3425_v54 }
 0x136   : > { %587 = vadd.xlane.f32.xlu1 %v334_v34  ;;  %585 = vadd.xlane.f32.xlu0 %v333_v35  ;;  %5238 = vst [vmem:[#allocation79_spill] sm:$0xff] %v3371_v31  ;;  %v599_v34 = vmul.f32 0.0078125, %v3210_v57  ;;  %v850_v25 = vmul.f32 %v3371_v31, %v3371_v31  ;;  %v853_v35 = vmul.f32 %v3380_v58, %v3380_v58 }
 0x137   : > { %v3364_v32 = vpop.xlane.xlu1 %447  ;;  %v3366_v26 = vpop.xlane.xlu0 %445  ;;  %v852_v57 = vmul.f32 %v3377_v56, %v3377_v56  ;;  %v3404_v33 = vsub.f32 %v2939_v5, %v598_v1  ;;  %v3418_v5 = vsub.f32 %v2947_v7, %v600_v28  ;;  %v605_v7 = vmul.f32 0.0078125, %v3228_v52  ;;  %v5336_v31 = vld [vmem:[#allocation76_spill] sm:$0xff] }
 0x138   : > { %v3401_v59 = vsub.f32 %v2936_v4, %v599_v34  ;;  %v604_v1 = vmul.f32 0.0078125, %v3230_v53  ;;  %v644_v24 = vmul.f32 0.0078125, %v5336_v31 }
 0x139   : > { %5243 = vst [vmem:[#allocation84_spill] sm:$0xff] %v3404_v33  ;;  %5245 = vst [vmem:[#allocation86_spill] sm:$0xff] %v3418_v5  ;;  %v854_v61 = vmul.f32 %v3404_v33, %v3404_v33  ;;  %v3449_v53 = vsub.f32 %v2960_v10, %v605_v7  ;;  %v3463_v10 = vsub.f32 %v2968_v12, %v607_v29  ;;  %v5315_v33 = vld [vmem:[#allocation70_spill] sm:$0xff] }
 0x13a   : > { %591 = vadd.xlane.f32.xlu1 %v336_v27  ;;  %589 = vadd.xlane.f32.xlu0 %v335_v30  ;;  %5242 = vst [vmem:[#allocation83_spill] sm:$0xff] %v3401_v59  ;;  %v601_v30 = vmul.f32 0.0078125, %v3216_v60  ;;  %v602_v27 = vmul.f32 0.0078125, %v3224_v63  ;;  %v855_v60 = vmul.f32 %v3401_v59, %v3401_v59  ;;  %v3452_v28 = vsub.f32 %v2963_v11, %v604_v1 }
 0x13b   : > { %v3382_v55 = vpop.xlane.xlu1 %451  ;;  %v3384_v62 = vpop.xlane.xlu0 %449  ;;  %5248 = vst [vmem:[#allocation89_spill] sm:$0xff] %v3449_v53  ;;  %5250 = vst [vmem:[#allocation91_spill] sm:$0xff] %v3463_v10  ;;  %v861_v50 = vmul.f32 %v3449_v53, %v3449_v53  ;;  %v610_v1 = vmul.f32 0.0078125, %v3248_v47  ;;  %v638_v59 = vmul.f32 0.0078125, %v5315_v33 }
 0x13c   : > { %v3415_v4 = vsub.f32 %v2944_v6, %v601_v30  ;;  %v3428_v63 = vsub.f32 %v2955_v9, %v602_v27  ;;  %v859_v30 = vmul.f32 %v3425_v54, %v3425_v54  ;;  %5249 = vst [vmem:[#allocation90_spill] sm:$0xff] %v3452_v28  ;;  %v606_v27 = vmul.f32 0.0078125, %v3236_v51 }
 0x13d   : > { %v860_v51 = vmul.f32 %v3452_v28, %v3452_v28  ;;  %v5297_v28 = vld [vmem:[#allocation64_spill] sm:$0xff] }
 0x13e   : > { %980 = vadd.xlane.f32.xlu1 %v851_v3  ;;  %978 = vadd.xlane.f32.xlu0 %v850_v25  ;;  %5244 = vst [vmem:[#allocation85_spill] sm:$0xff] %v3415_v4  ;;  %5247 = vst [vmem:[#allocation88_spill] sm:$0xff] %v3428_v63  ;;  %v858_v52 = vmul.f32 %v3428_v63, %v3428_v63  ;;  %v3466_v11 = vsub.f32 %v2971_v13, %v606_v27  ;;  %v611_v13 = vmul.f32 0.0078125, %v3246_v46 }
 0x13f   : > { %v3392_v0 = vpop.xlane.xlu1 %455  ;;  %v3394_v2 = vpop.xlane.xlu0 %453  ;;  %v3500_v27 = vsub.f32 %v2987_v17, %v610_v1  ;;  %v616_v1 = vmul.f32 0.0078125, %v3266_v41  ;;  %v632_v53 = vmul.f32 0.0078125, %v5297_v28 }
 0x140   : > { %5251 = vst [vmem:[#allocation92_spill] sm:$0xff] %v3466_v11  ;;  %v3497_v47 = vsub.f32 %v2984_v16, %v611_v13 }
 0x141   : > { %5255 = vst [vmem:[#allocation96_spill] sm:$0xff] %v3500_v27 }
 0x142   : > { %984 = vadd.xlane.f32.xlu1 %v853_v35  ;;  %982 = vadd.xlane.f32.xlu0 %v852_v57  ;;  %v857_v35 = vmul.f32 %v3415_v4, %v3415_v4  ;;  %v856_v57 = vmul.f32 %v3418_v5, %v3418_v5  ;;  %5254 = vst [vmem:[#allocation95_spill] sm:$0xff] %v3497_v47  ;;  %v5314_v5 = vld [vmem:[#allocation69_spill] sm:$0xff] }
 0x143   : > { %v3410_v3 = vpop.xlane.xlu1 %459  ;;  %v3412_v25 = vpop.xlane.xlu0 %457  ;;  %v639_v4 = vmul.f32 0.0078125, %v5314_v5  ;;  %v5320_v5 = vld [vmem:[#allocation28_spill] sm:$0xff] }
 0x145   : > { %v3713_v33 = vsub.f32 %v5320_v5, %v639_v4 }
 0x146   : > { %988 = vadd.xlane.f32.xlu1 %v855_v60  ;;  %986 = vadd.xlane.f32.xlu0 %v854_v61  ;;  %v609_v60 = vmul.f32 0.0078125, %v3240_v48  ;;  %v608_v61 = vmul.f32 0.0078125, %v3242_v49 }
 0x147   : > { %v3430_v34 = vpop.xlane.xlu1 %463  ;;  %v3432_v6 = vpop.xlane.xlu0 %461 }
 0x148   : > { %v3473_v48 = vsub.f32 %v2976_v14, %v609_v60  ;;  %v3476_v49 = vsub.f32 %v2979_v15, %v608_v61  ;;  %v613_v60 = vmul.f32 0.0078125, %v3252_v44  ;;  %v612_v61 = vmul.f32 0.0078125, %v3254_v45 }
 0x149   : > { %v867_v44 = vmul.f32 %v3497_v47, %v3497_v47  ;;  %v866_v45 = vmul.f32 %v3500_v27, %v3500_v27  ;;  %v5279_v27 = vld [vmem:[#allocation58_spill] sm:$0xff] }
 0x14a   : > { %992 = vadd.xlane.f32.xlu1 %v857_v35  ;;  %990 = vadd.xlane.f32.xlu0 %v856_v57  ;;  %5252 = vst [vmem:[#allocation93_spill] sm:$0xff] %v3473_v48  ;;  %5253 = vst [vmem:[#allocation94_spill] sm:$0xff] %v3476_v49  ;;  %v865_v29 = vmul.f32 %v3473_v48, %v3473_v48  ;;  %v864_v46 = vmul.f32 %v3476_v49, %v3476_v49  ;;  %v626_v47 = vmul.f32 0.0078125, %v5279_v27 }
 0x14b   : > { %v3440_v8 = vpop.xlane.xlu1 %467  ;;  %v3442_v9 = vpop.xlane.xlu0 %465  ;;  %v3511_v16 = vsub.f32 %v2992_v18, %v613_v60  ;;  %v3514_v17 = vsub.f32 %v2995_v19, %v612_v61  ;;  %v617_v19 = vmul.f32 0.0078125, %v3264_v40  ;;  %v3548_v61 = vsub.f32 %v3011_v23, %v616_v1  ;;  %v5268_v1 = vld [vmem:[#allocation11_spill] sm:$0xff] }
 0x14d   : > { %5256 = vst [vmem:[#allocation97_spill] sm:$0xff] %v3511_v16  ;;  %5257 = vst [vmem:[#allocation98_spill] sm:$0xff] %v3514_v17  ;;  %v3545_v41 = vsub.f32 %v3008_v22, %v617_v19  ;;  %v5264_v19 = vld [vmem:[#allocation9_spill] sm:$0xff] }
 0x14e   : > { %996 = vadd.xlane.f32.xlu1 %v859_v30  ;;  %994 = vadd.xlane.f32.xlu0 %v858_v52  ;;  %v863_v30 = vmul.f32 %v3463_v10, %v3463_v10  ;;  %v862_v52 = vmul.f32 %v3466_v11, %v3466_v11  ;;  %5261 = vst [vmem:[#allocation102_spill] sm:$0xff] %v3548_v61  ;;  %v5296_v11 = vld [vmem:[#allocation63_spill] sm:$0xff] }
 0x14f   : > { %v3458_v35 = vpop.xlane.xlu1 %471  ;;  %v3460_v57 = vpop.xlane.xlu0 %469  ;;  %5260 = vst [vmem:[#allocation101_spill] sm:$0xff] %v3545_v41  ;;  %v633_v10 = vmul.f32 0.0078125, %v5296_v11  ;;  %v5302_v11 = vld [vmem:[#allocation22_spill] sm:$0xff] }
 0x151   : > { %v3665_v28 = vsub.f32 %v5302_v11, %v633_v10 }
 0x152   : > { %1000 = vadd.xlane.f32.xlu1 %v861_v50  ;;  %998 = vadd.xlane.f32.xlu0 %v860_v51  ;;  %v615_v50 = vmul.f32 0.0078125, %v3258_v42  ;;  %v614_v51 = vmul.f32 0.0078125, %v3260_v43 }
 0x153   : > { %v3478_v7 = vpop.xlane.xlu1 %475  ;;  %v3480_v12 = vpop.xlane.xlu0 %473 }
 0x154   : > { %v3521_v42 = vsub.f32 %v3000_v20, %v615_v50  ;;  %v3524_v43 = vsub.f32 %v3003_v21, %v614_v51  ;;  %v619_v50 = vmul.f32 0.0078125, %v3270_v38  ;;  %v618_v51 = vmul.f32 0.0078125, %v3272_v39 }
 0x155   : > { %v873_v38 = vmul.f32 %v3545_v41, %v3545_v41  ;;  %v872_v39 = vmul.f32 %v3548_v61, %v3548_v61  ;;  %v5276_v61 = vld [vmem:[#allocation55_spill] sm:$0xff] }
 0x156   : > { %1004 = vadd.xlane.f32.xlu1 %v863_v30  ;;  %1002 = vadd.xlane.f32.xlu0 %v862_v52  ;;  %5258 = vst [vmem:[#allocation99_spill] sm:$0xff] %v3521_v42  ;;  %5259 = vst [vmem:[#allocation100_spill] sm:$0xff] %v3524_v43  ;;  %v871_v60 = vmul.f32 %v3521_v42, %v3521_v42  ;;  %v870_v40 = vmul.f32 %v3524_v43, %v3524_v43  ;;  %v5262_v43 = vld [vmem:[#allocation8_spill] sm:$0xff] }
 0x157   : > { %v3488_v14 = vpop.xlane.xlu1 %479  ;;  %v3490_v15 = vpop.xlane.xlu0 %477  ;;  %v3559_v22 = vsub.f32 %v5262_v43, %v619_v50  ;;  %v3562_v23 = vsub.f32 %v5264_v19, %v618_v51  ;;  %v5270_v50 = vld [vmem:[#allocation53_spill] sm:$0xff]  ;;  %v5271_v19 = vld [vmem:[#allocation54_spill] sm:$0xff] }
 0x158   : > { %v623_v51 = vmul.f32 0.0078125, %v5270_v50  ;;  %v622_v42 = vmul.f32 0.0078125, %v5271_v19  ;;  %v5274_v19 = vld [vmem:[#allocation13_spill] sm:$0xff] }
 0x159   : > { %5263 = vst [vmem:[#allocation8_spill] sm:$0xff] %v3559_v22  ;;  %5265 = vst [vmem:[#allocation9_spill] sm:$0xff] %v3562_v23  ;;  %v875_v41 = vmul.f32 %v3559_v22, %v3559_v22 }
 0x15a   : > { %1008 = vadd.xlane.f32.xlu1 %v865_v29  ;;  %1006 = vadd.xlane.f32.xlu0 %v864_v46  ;;  %v869_v29 = vmul.f32 %v3511_v16, %v3511_v16  ;;  %v868_v46 = vmul.f32 %v3514_v17, %v3514_v17  ;;  %v3596_v22 = vsub.f32 %v5274_v19, %v622_v42  ;;  %v5278_v17 = vld [vmem:[#allocation57_spill] sm:$0xff] }
 0x15b   : > { %v3506_v30 = vpop.xlane.xlu1 %483  ;;  %v3508_v52 = vpop.xlane.xlu0 %481  ;;  %v627_v16 = vmul.f32 0.0078125, %v5278_v17  ;;  %v5284_v17 = vld [vmem:[#allocation16_spill] sm:$0xff] }
 0x15c   : > { %5275 = vst [vmem:[#allocation54_spill] sm:$0xff] %v3596_v22  ;;  %5303 = vst [vmem:[#allocation16_spill] sm:$0xff] %v3665_v28 }
 0x15d   : > { %v3617_v27 = vsub.f32 %v5284_v17, %v627_v16 }
 0x15e   : > { %1012 = vadd.xlane.f32.xlu1 %v867_v44  ;;  %1010 = vadd.xlane.f32.xlu0 %v866_v45  ;;  %v621_v44 = vmul.f32 0.0078125, %v3276_v36  ;;  %v620_v45 = vmul.f32 0.0078125, %v3278_v37  ;;  %v5266_v36 = vld [vmem:[#allocation10_spill] sm:$0xff] }
 0x15f   : > { %v3526_v13 = vpop.xlane.xlu1 %487  ;;  %v3528_v18 = vpop.xlane.xlu0 %485  ;;  %5285 = vst [vmem:[#allocation55_spill] sm:$0xff] %v3617_v27 }
 0x160   : > { %v3569_v37 = vsub.f32 %v5266_v36, %v621_v44 }
 0x162   : > { %1016 = vadd.xlane.f32.xlu1 %v869_v29  ;;  %1014 = vadd.xlane.f32.xlu0 %v868_v46  ;;  %5267 = vst [vmem:[#allocation10_spill] sm:$0xff] %v3569_v37 }
 0x163   : > { %v3536_v20 = vpop.xlane.xlu1 %491  ;;  %v3538_v21 = vpop.xlane.xlu0 %489 }
 0x166   : > { %1020 = vadd.xlane.f32.xlu1 %v871_v60  ;;  %1018 = vadd.xlane.f32.xlu0 %v870_v40  ;;  %v3572_v60 = vsub.f32 %v5268_v1, %v620_v45  ;;  %v5272_v1 = vld [vmem:[#allocation12_spill] sm:$0xff] }
 0x167   : > { %v3554_v29 = vpop.xlane.xlu1 %495  ;;  %v3556_v46 = vpop.xlane.xlu0 %493  ;;  %v3593_v50 = vsub.f32 %v5272_v1, %v623_v51  ;;  %v5282_v1 = vld [vmem:[#allocation15_spill] sm:$0xff] }
 0x168   : > { %5269 = vst [vmem:[#allocation11_spill] sm:$0xff] %v3572_v60  ;;  %v876_v36 = vmul.f32 %v3572_v60, %v3572_v60  ;;  %v5280_v60 = vld [vmem:[#allocation14_spill] sm:$0xff] }
 0x169   : > { %5273 = vst [vmem:[#allocation53_spill] sm:$0xff] %v3593_v50 }
 0x16a   : > { %1024 = vadd.xlane.f32.xlu1 %v873_v38  ;;  %1022 = vadd.xlane.f32.xlu0 %v872_v39  ;;  %v874_v38 = vmul.f32 %v3562_v23, %v3562_v23  ;;  %v877_v39 = vmul.f32 %v3569_v37, %v3569_v37  ;;  %v625_v23 = vmul.f32 0.0078125, %v5276_v61  ;;  %v879_v61 = vmul.f32 %v3593_v50, %v3593_v50 }
 0x16b   : > { %v3574_v40 = vpop.xlane.xlu1 %499  ;;  %v3576_v43 = vpop.xlane.xlu0 %497 }
 0x16c   : > { %v3607_v51 = vsub.f32 %v5280_v60, %v625_v23  ;;  %v5288_v60 = vld [vmem:[#allocation59_spill] sm:$0xff] }
 0x16e   : > { %1028 = vadd.xlane.f32.xlu1 %v875_v41  ;;  %1026 = vadd.xlane.f32.xlu0 %v874_v38  ;;  %v5277_v41 = vld [vmem:[#allocation56_spill] sm:$0xff]  ;;  %5281 = vst [vmem:[#allocation12_spill] sm:$0xff] %v3607_v51  ;;  %v881_v50 = vmul.f32 %v3607_v51, %v3607_v51 }
 0x16f   : > { %v3584_v44 = vpop.xlane.xlu1 %503  ;;  %v3586_v45 = vpop.xlane.xlu0 %501  ;;  %v624_v38 = vmul.f32 0.0078125, %v5277_v41 }
 0x171   : > { %v3610_v42 = vsub.f32 %v5282_v1, %v624_v38  ;;  %v629_v38 = vmul.f32 0.0078125, %v5288_v60  ;;  %v5289_v1 = vld [vmem:[#allocation60_spill] sm:$0xff] }
 0x172   : > { %1032 = vadd.xlane.f32.xlu1 %v877_v39  ;;  %1030 = vadd.xlane.f32.xlu0 %v876_v36  ;;  %v878_v39 = vmul.f32 %v3596_v22, %v3596_v22  ;;  %v5286_v36 = vld [vmem:[#allocation17_spill] sm:$0xff]  ;;  %v628_v48 = vmul.f32 0.0078125, %v5289_v1  ;;  %v5292_v1 = vld [vmem:[#allocation19_spill] sm:$0xff] }
 0x173   : > { %v3602_v37 = vpop.xlane.xlu1 %507  ;;  %v3604_v49 = vpop.xlane.xlu0 %505  ;;  %5283 = vst [vmem:[#allocation13_spill] sm:$0xff] %v3610_v42  ;;  %v3620_v19 = vsub.f32 %v5286_v36, %v626_v47  ;;  %v5290_v36 = vld [vmem:[#allocation18_spill] sm:$0xff]  ;;  %v5294_v22 = vld [vmem:[#allocation61_spill] sm:$0xff] }
 0x174   : > { %v3641_v60 = vsub.f32 %v5290_v36, %v629_v38  ;;  %v3644_v51 = vsub.f32 %v5292_v1, %v628_v48  ;;  %v5300_v36 = vld [vmem:[#allocation21_spill] sm:$0xff]  ;;  %5321 = vst [vmem:[#allocation61_spill] sm:$0xff] %v3713_v33 }
 0x175   : > { %5287 = vst [vmem:[#allocation56_spill] sm:$0xff] %v3620_v19  ;;  %v882_v17 = vmul.f32 %v3620_v19, %v3620_v19  ;;  %v5298_v19 = vld [vmem:[#allocation20_spill] sm:$0xff] }
 0x176   : > { %1036 = vadd.xlane.f32.xlu1 %v879_v61  ;;  %1034 = vadd.xlane.f32.xlu0 %v878_v39  ;;  %v880_v61 = vmul.f32 %v3610_v42, %v3610_v42  ;;  %v883_v39 = vmul.f32 %v3617_v27, %v3617_v27  ;;  %5291 = vst [vmem:[#allocation57_spill] sm:$0xff] %v3641_v60  ;;  %5293 = vst [vmem:[#allocation58_spill] sm:$0xff] %v3644_v51  ;;  %v631_v42 = vmul.f32 0.0078125, %v5294_v22 }
 0x177   : > { %v3622_v41 = vpop.xlane.xlu1 %511  ;;  %v3624_v23 = vpop.xlane.xlu0 %509  ;;  %v885_v22 = vmul.f32 %v3641_v60, %v3641_v60 }
 0x178   : > { %v3655_v38 = vsub.f32 %v5298_v19, %v631_v42  ;;  %v5306_v19 = vld [vmem:[#allocation65_spill] sm:$0xff] }
 0x17a   : > { %1040 = vadd.xlane.f32.xlu1 %v881_v50  ;;  %1038 = vadd.xlane.f32.xlu0 %v880_v61  ;;  %v5295_v50 = vld [vmem:[#allocation62_spill] sm:$0xff]  ;;  %5299 = vst [vmem:[#allocation14_spill] sm:$0xff] %v3655_v38  ;;  %v887_v60 = vmul.f32 %v3655_v38, %v3655_v38 }
 0x17b   : > { %v3632_v16 = vpop.xlane.xlu1 %515  ;;  %v3634_v47 = vpop.xlane.xlu0 %513  ;;  %v630_v61 = vmul.f32 0.0078125, %v5295_v50 }
 0x17d   : > { %v3658_v48 = vsub.f32 %v5300_v36, %v630_v61  ;;  %v635_v61 = vmul.f32 0.0078125, %v5306_v19  ;;  %v5307_v36 = vld [vmem:[#allocation66_spill] sm:$0xff] }
 0x17e   : > { %1044 = vadd.xlane.f32.xlu1 %v883_v39  ;;  %1042 = vadd.xlane.f32.xlu0 %v882_v17  ;;  %v884_v39 = vmul.f32 %v3644_v51, %v3644_v51  ;;  %v5304_v17 = vld [vmem:[#allocation23_spill] sm:$0xff]  ;;  %v634_v54 = vmul.f32 0.0078125, %v5307_v36  ;;  %v5310_v36 = vld [vmem:[#allocation25_spill] sm:$0xff] }
 0x17f   : > { %v3650_v27 = vpop.xlane.xlu1 %519  ;;  %v3652_v63 = vpop.xlane.xlu0 %517  ;;  %5301 = vst [vmem:[#allocation15_spill] sm:$0xff] %v3658_v48  ;;  %v3668_v1 = vsub.f32 %v5304_v17, %v632_v53  ;;  %v5308_v17 = vld [vmem:[#allocation24_spill] sm:$0xff]  ;;  %v5312_v51 = vld [vmem:[#allocation67_spill] sm:$0xff] }
 0x180   : > { %v3689_v19 = vsub.f32 %v5308_v17, %v635_v61  ;;  %v3692_v38 = vsub.f32 %v5310_v36, %v634_v54  ;;  %v5318_v17 = vld [vmem:[#allocation27_spill] sm:$0xff] }
 0x181   : > { %5305 = vst [vmem:[#allocation17_spill] sm:$0xff] %v3668_v1  ;;  %v888_v11 = vmul.f32 %v3668_v1, %v3668_v1  ;;  %v5316_v1 = vld [vmem:[#allocation26_spill] sm:$0xff] }
 0x182   : > { %1048 = vadd.xlane.f32.xlu1 %v885_v22  ;;  %1046 = vadd.xlane.f32.xlu0 %v884_v39  ;;  %v886_v22 = vmul.f32 %v3658_v48, %v3658_v48  ;;  %v889_v39 = vmul.f32 %v3665_v28, %v3665_v28  ;;  %5309 = vst [vmem:[#allocation59_spill] sm:$0xff] %v3689_v19  ;;  %5311 = vst [vmem:[#allocation60_spill] sm:$0xff] %v3692_v38  ;;  %v637_v48 = vmul.f32 0.0078125, %v5312_v51 }
 0x183   : > { %v3670_v50 = vpop.xlane.xlu1 %523  ;;  %v3672_v42 = vpop.xlane.xlu0 %521  ;;  %v891_v51 = vmul.f32 %v3689_v19, %v3689_v19 }
 0x184   : > { %v3703_v61 = vsub.f32 %v5316_v1, %v637_v48  ;;  %v5325_v1 = vld [vmem:[#allocation71_spill] sm:$0xff] }
 0x186   : > { %1052 = vadd.xlane.f32.xlu1 %v887_v60  ;;  %1050 = vadd.xlane.f32.xlu0 %v886_v22  ;;  %v5313_v60 = vld [vmem:[#allocation68_spill] sm:$0xff]  ;;  %5317 = vst [vmem:[#allocation18_spill] sm:$0xff] %v3703_v61  ;;  %v893_v19 = vmul.f32 %v3703_v61, %v3703_v61 }
 0x187   : > { %v3680_v10 = vpop.xlane.xlu1 %527  ;;  %v3682_v53 = vpop.xlane.xlu0 %525  ;;  %v636_v22 = vmul.f32 0.0078125, %v5313_v60 }
 0x189   : > { %v3706_v54 = vsub.f32 %v5318_v17, %v636_v22  ;;  %v641_v22 = vmul.f32 0.0078125, %v5325_v1  ;;  %v5326_v17 = vld [vmem:[#allocation72_spill] sm:$0xff] }
 0x18a   : > { %1056 = vadd.xlane.f32.xlu1 %v889_v39  ;;  %1054 = vadd.xlane.f32.xlu0 %v888_v11  ;;  %v890_v39 = vmul.f32 %v3692_v38, %v3692_v38  ;;  %v5322_v11 = vld [vmem:[#allocation29_spill] sm:$0xff]  ;;  %v640_v58 = vmul.f32 0.0078125, %v5326_v17  ;;  %v5331_v17 = vld [vmem:[#allocation31_spill] sm:$0xff] }
 0x18b   : > { %v3698_v28 = vpop.xlane.xlu1 %531  ;;  %v3700_v56 = vpop.xlane.xlu0 %529  ;;  %5319 = vst [vmem:[#allocation19_spill] sm:$0xff] %v3706_v54  ;;  %v3716_v36 = vsub.f32 %v5322_v11, %v638_v59  ;;  %v5329_v11 = vld [vmem:[#allocation30_spill] sm:$0xff]  ;;  %v5333_v38 = vld [vmem:[#allocation73_spill] sm:$0xff] }
 0x18c   : > { %v3737_v1 = vsub.f32 %v5329_v11, %v641_v22  ;;  %v3740_v61 = vsub.f32 %v5331_v17, %v640_v58  ;;  %v5340_v11 = vld [vmem:[#allocation33_spill] sm:$0xff] }
 0x18d   : > { %5323 = vst [vmem:[#allocation62_spill] sm:$0xff] %v3716_v36  ;;  %v894_v5 = vmul.f32 %v3716_v36, %v3716_v36  ;;  %v5338_v36 = vld [vmem:[#allocation32_spill] sm:$0xff] }
 0x18e   : > { %1060 = vadd.xlane.f32.xlu1 %v891_v51  ;;  %1058 = vadd.xlane.f32.xlu0 %v890_v39  ;;  %v892_v51 = vmul.f32 %v3706_v54, %v3706_v54  ;;  %v895_v39 = vmul.f32 %v3713_v33, %v3713_v33  ;;  %5330 = vst [vmem:[#allocation21_spill] sm:$0xff] %v3737_v1  ;;  %5332 = vst [vmem:[#allocation22_spill] sm:$0xff] %v3740_v61  ;;  %v643_v54 = vmul.f32 0.0078125, %v5333_v38 }
 0x18f   : > { %v3718_v60 = vpop.xlane.xlu1 %535  ;;  %v3720_v48 = vpop.xlane.xlu0 %533  ;;  %v897_v38 = vmul.f32 %v3737_v1, %v3737_v1 }
 0x190   : > { %5324 = vst [vmem:[#allocation63_spill] sm:$0xff] %v3720_v48  ;;  %v3751_v22 = vsub.f32 %v5338_v36, %v643_v54  ;;  %v5346_v36 = vld [vmem:[#allocation77_spill] sm:$0xff] }
 0x192   : > { %1064 = vadd.xlane.f32.xlu1 %v893_v19  ;;  %1062 = vadd.xlane.f32.xlu0 %v892_v51  ;;  %v5334_v19 = vld [vmem:[#allocation74_spill] sm:$0xff]  ;;  %5339 = vst [vmem:[#allocation65_spill] sm:$0xff] %v3751_v22  ;;  %v899_v1 = vmul.f32 %v3751_v22, %v3751_v22 }
 0x193   : > { %v3728_v4 = vpop.xlane.xlu1 %539  ;;  %v3730_v59 = vpop.xlane.xlu0 %537  ;;  %v642_v51 = vmul.f32 0.0078125, %v5334_v19 }
 0x194   : > { %5327 = vst [vmem:[#allocation64_spill] sm:$0xff] %v3728_v4  ;;  %5328 = vst [vmem:[#allocation20_spill] sm:$0xff] %v3730_v59  ;;  %v5335_v4 = vld [vmem:[#allocation75_spill] sm:$0xff] }
 0x195   : > { %v645_v59 = vmul.f32 0.0078125, %v5335_v4  ;;  %v3754_v58 = vsub.f32 %v5340_v11, %v642_v51  ;;  %v5342_v4 = vld [vmem:[#allocation34_spill] sm:$0xff]  ;;  %v647_v51 = vmul.f32 0.0078125, %v5346_v36 }
 0x196   : > { %1068 = vadd.xlane.f32.xlu1 %v895_v39  ;;  %1066 = vadd.xlane.f32.xlu0 %v894_v5  ;;  %v896_v39 = vmul.f32 %v3740_v61, %v3740_v61  ;;  %v5344_v5 = vld [vmem:[#allocation35_spill] sm:$0xff]  ;;  %v5347_v11 = vld [vmem:[#allocation78_spill] sm:$0xff]  ;;  %v650_v61 = vmul.f32 0.0078125, %v3384_v62 }
 0x197   : > { %v3746_v33 = vpop.xlane.xlu1 %543  ;;  %v3748_v48 = vpop.xlane.xlu0 %541  ;;  %5341 = vst [vmem:[#allocation66_spill] sm:$0xff] %v3754_v58  ;;  %v3761_v31 = vsub.f32 %v5342_v4, %v645_v59  ;;  %v3764_v17 = vsub.f32 %v5344_v5, %v644_v24  ;;  %v5349_v5 = vld [vmem:[#allocation36_spill] sm:$0xff] }
 0x198   : > { %5337 = vst [vmem:[#allocation23_spill] sm:$0xff] %v3748_v48  ;;  %v646_v48 = vmul.f32 0.0078125, %v5347_v11  ;;  %v3785_v36 = vsub.f32 %v5349_v5, %v647_v51  ;;  %v5351_v11 = vld [vmem:[#allocation37_spill] sm:$0xff]  ;;  %v5355_v5 = vld [vmem:[#allocation39_spill] sm:$0xff] }
 0x199   : > { %5343 = vst [vmem:[#allocation24_spill] sm:$0xff] %v3761_v31  ;;  %5345 = vst [vmem:[#allocation25_spill] sm:$0xff] %v3764_v17  ;;  %v900_v4 = vmul.f32 %v3764_v17, %v3764_v17  ;;  %v5353_v17 = vld [vmem:[#allocation38_spill] sm:$0xff] }
 0x19a   : > { %1072 = vadd.xlane.f32.xlu1 %v897_v38  ;;  %1070 = vadd.xlane.f32.xlu0 %v896_v39  ;;  %v898_v38 = vmul.f32 %v3754_v58, %v3754_v58  ;;  %v901_v39 = vmul.f32 %v3761_v31, %v3761_v31  ;;  %5350 = vst [vmem:[#allocation68_spill] sm:$0xff] %v3785_v36  ;;  %v649_v58 = vmul.f32 0.0078125, %v3364_v32 }
 0x19b   : > { %v3766_v19 = vpop.xlane.xlu1 %547  ;;  %v3768_v54 = vpop.xlane.xlu0 %545  ;;  %v3788_v22 = vsub.f32 %v5351_v11, %v646_v48  ;;  %v903_v32 = vmul.f32 %v3785_v36, %v3785_v36 }
 0x19c   : > { %v3799_v51 = vsub.f32 %v5353_v17, %v649_v58  ;;  %v653_v17 = vmul.f32 0.0078125, %v3392_v0 }
 0x19d   : > { %5352 = vst [vmem:[#allocation69_spill] sm:$0xff] %v3788_v22 }
 0x19e   : > { %1076 = vadd.xlane.f32.xlu1 %v899_v1  ;;  %1074 = vadd.xlane.f32.xlu0 %v898_v38  ;;  %v648_v1 = vmul.f32 0.0078125, %v3366_v26  ;;  %v651_v38 = vmul.f32 0.0078125, %v3382_v55  ;;  %5354 = vst [vmem:[#allocation70_spill] sm:$0xff] %v3799_v51  ;;  %v902_v26 = vmul.f32 %v3788_v22, %v3788_v22  ;;  %v5357_v55 = vld [vmem:[#allocation40_spill] sm:$0xff]  ;;  %v656_v22 = vmul.f32 0.0078125, %v3432_v6 }
 0x19f   : > { %v3776_v59 = vpop.xlane.xlu1 %551  ;;  %v3778_v24 = vpop.xlane.xlu0 %549 }
 0x1a0   : > { %5348 = vst [vmem:[#allocation67_spill] sm:$0xff] %v3778_v24  ;;  %v3802_v48 = vsub.f32 %v5355_v5, %v648_v1  ;;  %v3809_v62 = vsub.f32 %v5357_v55, %v651_v38  ;;  %v652_v1 = vmul.f32 0.0078125, %v3394_v2  ;;  %v905_v5 = vmul.f32 %v3799_v51, %v3799_v51  ;;  %v5361_v55 = vld [vmem:[#allocation42_spill] sm:$0xff] }
 0x1a1   : > { %v3833_v2 = vsub.f32 %v5361_v55, %v653_v17  ;;  %v5367_v55 = vld [vmem:[#allocation45_spill] sm:$0xff] }
 0x1a2   : > { %1080 = vadd.xlane.f32.xlu1 %v901_v39  ;;  %1078 = vadd.xlane.f32.xlu0 %v900_v4  ;;  %5356 = vst [vmem:[#allocation26_spill] sm:$0xff] %v3802_v48  ;;  %5358 = vst [vmem:[#allocation27_spill] sm:$0xff] %v3809_v62  ;;  %v5359_v39 = vld [vmem:[#allocation41_spill] sm:$0xff] }
 0x1a3   : > { %v3794_v31 = vpop.xlane.xlu1 %555  ;;  %v3796_v24 = vpop.xlane.xlu0 %553  ;;  %v3812_v4 = vsub.f32 %v5359_v39, %v650_v61  ;;  %5362 = vst [vmem:[#allocation29_spill] sm:$0xff] %v3833_v2  ;;  %v5363_v39 = vld [vmem:[#allocation43_spill] sm:$0xff] }
 0x1a4   : > { %v3836_v51 = vsub.f32 %v5363_v39, %v652_v1 }
 0x1a5   : > { %5360 = vst [vmem:[#allocation28_spill] sm:$0xff] %v3812_v4  ;;  %v906_v0 = vmul.f32 %v3812_v4, %v3812_v4  ;;  %v5365_v4 = vld [vmem:[#allocation44_spill] sm:$0xff] }
 0x1a6   : > { %1084 = vadd.xlane.f32.xlu1 %v903_v32  ;;  %1082 = vadd.xlane.f32.xlu0 %v902_v26  ;;  %v904_v32 = vmul.f32 %v3802_v48, %v3802_v48  ;;  %v907_v26 = vmul.f32 %v3809_v62, %v3809_v62  ;;  %5364 = vst [vmem:[#allocation71_spill] sm:$0xff] %v3836_v51  ;;  %v655_v48 = vmul.f32 0.0078125, %v3410_v3 }
 0x1a7   : > { %v3814_v11 = vpop.xlane.xlu1 %559  ;;  %v3816_v58 = vpop.xlane.xlu0 %557  ;;  %v909_v3 = vmul.f32 %v3833_v2, %v3833_v2 }
 0x1a8   : > { %v3847_v17 = vsub.f32 %v5365_v4, %v655_v48  ;;  %v659_v4 = vmul.f32 0.0078125, %v3440_v8 }
 0x1aa   : > { %1088 = vadd.xlane.f32.xlu1 %v905_v5  ;;  %1086 = vadd.xlane.f32.xlu0 %v904_v32  ;;  %v654_v5 = vmul.f32 0.0078125, %v3412_v25  ;;  %v657_v32 = vmul.f32 0.0078125, %v3430_v34  ;;  %5366 = vst [vmem:[#allocation72_spill] sm:$0xff] %v3847_v17  ;;  %v908_v25 = vmul.f32 %v3836_v51, %v3836_v51  ;;  %v5369_v34 = vld [vmem:[#allocation46_spill] sm:$0xff] }
 0x1ab   : > { %v3824_v38 = vpop.xlane.xlu1 %563  ;;  %v3826_v61 = vpop.xlane.xlu0 %561 }
 0x1ac   : > { %v3850_v1 = vsub.f32 %v5367_v55, %v654_v5  ;;  %v3857_v6 = vsub.f32 %v5369_v34, %v657_v32  ;;  %v658_v5 = vmul.f32 0.0078125, %v3442_v9  ;;  %v911_v55 = vmul.f32 %v3847_v17, %v3847_v17  ;;  %v5373_v34 = vld [vmem:[#allocation48_spill] sm:$0xff] }
 0x1ad   : > { %v3881_v9 = vsub.f32 %v5373_v34, %v659_v4  ;;  %v5377_v4 = vld [vmem:[#allocation50_spill] sm:$0xff] }
 0x1ae   : > { %1092 = vadd.xlane.f32.xlu1 %v907_v26  ;;  %1090 = vadd.xlane.f32.xlu0 %v906_v0  ;;  %5368 = vst [vmem:[#allocation30_spill] sm:$0xff] %v3850_v1  ;;  %5370 = vst [vmem:[#allocation31_spill] sm:$0xff] %v3857_v6  ;;  %v5371_v26 = vld [vmem:[#allocation47_spill] sm:$0xff] }
 0x1af   : > { %v3842_v62 = vpop.xlane.xlu1 %567  ;;  %v3844_v36 = vpop.xlane.xlu0 %565  ;;  %v3860_v0 = vsub.f32 %v5371_v26, %v656_v22  ;;  %5374 = vst [vmem:[#allocation74_spill] sm:$0xff] %v3881_v9  ;;  %v5375_v26 = vld [vmem:[#allocation49_spill] sm:$0xff] }
 0x1b0   : > { %v3884_v17 = vsub.f32 %v5375_v26, %v658_v5  ;;  %v5379_v5 = vld [vmem:[#allocation51_spill] sm:$0xff] }
 0x1b1   : > { %5372 = vst [vmem:[#allocation73_spill] sm:$0xff] %v3860_v0  ;;  %v912_v8 = vmul.f32 %v3860_v0, %v3860_v0 }
 0x1b2   : > { %1096 = vadd.xlane.f32.xlu1 %v909_v3  ;;  %1094 = vadd.xlane.f32.xlu0 %v908_v25  ;;  %v910_v3 = vmul.f32 %v3850_v1, %v3850_v1  ;;  %v913_v25 = vmul.f32 %v3857_v6, %v3857_v6  ;;  %5376 = vst [vmem:[#allocation75_spill] sm:$0xff] %v3884_v17  ;;  %v661_v1 = vmul.f32 0.0078125, %v3458_v35  ;;  %v662_v6 = vmul.f32 0.0078125, %v3480_v12  ;;  %v5381_v12 = vld [vmem:[#allocation52_spill] sm:$0xff] }
 0x1b3   : > { %v3862_v39 = vpop.xlane.xlu1 %571  ;;  %v3864_v48 = vpop.xlane.xlu0 %569  ;;  %v915_v35 = vmul.f32 %v3881_v9, %v3881_v9 }
 0x1b4   : > { %v3895_v34 = vsub.f32 %v5377_v4, %v661_v1  ;;  %v2592_v1 = vld [vmem:[%s2913_s21 + $0x220] sm:$0xff]  ;;  %v667_v4 = vmul.f32 0.0078125, %v3506_v30  ;;  %v2594_v30 = vld [vmem:[%s2913_s21 + $0x230] sm:$0xff] }
 0x1b6   : > { %1100 = vadd.xlane.f32.xlu1 %v911_v55  ;;  %1098 = vadd.xlane.f32.xlu0 %v910_v3  ;;  %v660_v55 = vmul.f32 0.0078125, %v3460_v57  ;;  %v663_v3 = vmul.f32 0.0078125, %v3478_v7  ;;  %5378 = vst [vmem:[#allocation76_spill] sm:$0xff] %v3895_v34  ;;  %v914_v57 = vmul.f32 %v3884_v17, %v3884_v17  ;;  %v665_v7 = vmul.f32 0.0078125, %v3488_v14 }
 0x1b7   : > { %v3872_v32 = vpop.xlane.xlu1 %575  ;;  %v3874_v22 = vpop.xlane.xlu0 %573  ;;  %v666_v14 = vmul.f32 0.0078125, %v3508_v52  ;;  %v669_v17 = vmul.f32 0.0078125, %v3526_v13  ;;  %v671_v52 = vmul.f32 0.0078125, %v3536_v20  ;;  %v2596_v20 = vld [vmem:[%s2913_s21 + $0x240] sm:$0xff] }
 0x1b8   : > { %v3898_v26 = vsub.f32 %v5379_v5, %v660_v55  ;;  %v3910_v55 = vsub.f32 %v2592_v1, %v662_v6  ;;  %v2595_v1 = vld [vmem:[%s2913_s21 + $0x248] sm:$0xff] }
 0x1ba   : > { %1104 = vadd.xlane.f32.xlu1 %v913_v25  ;;  %1102 = vadd.xlane.f32.xlu0 %v912_v8  ;;  %5380 = vst [vmem:[#allocation32_spill] sm:$0xff] %v3898_v26  ;;  %v3906_v25 = vsub.f32 %v5381_v12, %v663_v3  ;;  %v664_v8 = vmul.f32 0.0078125, %v3490_v15  ;;  %5383 = vst [vmem:[#allocation34_spill] sm:$0xff] %v3910_v55  ;;  %v917_v3 = vmul.f32 %v3895_v34, %v3895_v34 }
 0x1bb   : > { %v3890_v51 = vpop.xlane.xlu1 %579  ;;  %v3892_v0 = vpop.xlane.xlu0 %577  ;;  %v916_v15 = vmul.f32 %v3898_v26, %v3898_v26  ;;  %v668_v12 = vmul.f32 0.0078125, %v3528_v18  ;;  %v3934_v26 = vsub.f32 %v2595_v1, %v667_v4  ;;  %v918_v18 = vmul.f32 %v3910_v55, %v3910_v55  ;;  %v2598_v55 = vld [vmem:[%s2913_s21 + $0x250] sm:$0xff] }
 0x1bc   : > { %5382 = vst [vmem:[#allocation33_spill] sm:$0xff] %v3906_v25  ;;  %v919_v13 = vmul.f32 %v3906_v25, %v3906_v25  ;;  %v675_v4 = vmul.f32 0.0078125, %v3574_v40  ;;  %v677_v1 = vmul.f32 0.0078125, %v3584_v44  ;;  %v2600_v40 = vld [vmem:[%s2913_s21 + $0x260] sm:$0xff]  ;;  %v2601_v44 = vld [vmem:[%s2913_s21 + $0x278] sm:$0xff] }
 0x1bd   : > { %5386 = vst [vmem:[#allocation78_spill] sm:$0xff] %v3934_v26 }
 0x1be   : > { %1108 = vadd.xlane.f32.xlu1 %v915_v35  ;;  %1106 = vadd.xlane.f32.xlu0 %v914_v57  ;;  %v2593_v35 = vld [vmem:[%s2913_s21 + $0x238] sm:$0xff]  ;;  %v3927_v57 = vsub.f32 %v2594_v30, %v664_v8 }
 0x1bf   : > { %v3913_v5 = vpop.xlane.xlu1 %583  ;;  %v3915_v9 = vpop.xlane.xlu0 %581  ;;  %v3924_v6 = vsub.f32 %v2593_v35, %v665_v7  ;;  %v670_v7 = vmul.f32 0.0078125, %v3538_v21  ;;  %v673_v35 = vmul.f32 0.0078125, %v3554_v29  ;;  %v672_v21 = vmul.f32 0.0078125, %v3556_v46 }
 0x1c0   : > { %5385 = vst [vmem:[#allocation77_spill] sm:$0xff] %v3927_v57  ;;  %v674_v29 = vmul.f32 0.0078125, %v3576_v43  ;;  %v920_v46 = vmul.f32 %v3927_v57, %v3927_v57  ;;  %v2605_v57 = vld [vmem:[%s2913_s21 + $0x298] sm:$0xff] }
 0x1c1   : > { %5384 = vst [vmem:[#allocation35_spill] sm:$0xff] %v3924_v6  ;;  %v921_v34 = vmul.f32 %v3924_v6, %v3924_v6  ;;  %v3966_v43 = vsub.f32 %v2600_v40, %v670_v7  ;;  %v3969_v6 = vsub.f32 %v2601_v44, %v673_v35  ;;  %v2604_v40 = vld [vmem:[%s2913_s21 + $0x280] sm:$0xff]  ;;  %v3992_v2 = vsub.f32 %v2605_v57, %v677_v1  ;;  %v2607_v57 = vld [vmem:[%s2913_s21 + $0x2a8] sm:$0xff] }
 0x1c2   : > { %1112 = vadd.xlane.f32.xlu1 %v917_v3  ;;  %1110 = vadd.xlane.f32.xlu0 %v916_v15  ;;  %v3945_v3 = vsub.f32 %v2596_v20, %v666_v14  ;;  %v2597_v15 = vld [vmem:[%s2913_s21 + $0x258] sm:$0xff]  ;;  %v3957_v14 = vsub.f32 %v2598_v55, %v668_v12  ;;  %v2599_v20 = vld [vmem:[%s2913_s21 + $0x268] sm:$0xff]  ;;  %v679_v55 = vmul.f32 0.0078125, %v3602_v37  ;;  %v3989_v44 = vsub.f32 %v2604_v40, %v674_v29 }
 0x1c3   : > { %v3938_v8 = vpop.xlane.xlu1 %587  ;;  %v3940_v30 = vpop.xlane.xlu0 %585  ;;  %v3948_v25 = vsub.f32 %v2597_v15, %v669_v17  ;;  %v3960_v17 = vsub.f32 %v2599_v20, %v671_v52  ;;  %v676_v15 = vmul.f32 0.0078125, %v3586_v45  ;;  %5390 = vst [vmem:[#allocation39_spill] sm:$0xff] %v3966_v43  ;;  %5391 = vst [vmem:[#allocation40_spill] sm:$0xff] %v3969_v6  ;;  %v923_v45 = vmul.f32 %v3934_v26, %v3934_v26  ;;  %v2603_v20 = vld [vmem:[%s2913_s21 + $0x288] sm:$0xff] }
 0x1c4   : > { %5388 = vst [vmem:[#allocation37_spill] sm:$0xff] %v3957_v14  ;;  %v3982_v7 = vsub.f32 %v2603_v20, %v675_v4  ;;  %v922_v35 = vmul.f32 %v3945_v3, %v3945_v3  ;;  %5395 = vst [vmem:[#allocation44_spill] sm:$0xff] %v3989_v44  ;;  %v678_v26 = vmul.f32 0.0078125, %v3604_v49  ;;  %v924_v4 = vmul.f32 %v3957_v14, %v3957_v14 }
 0x1c5   : > { %5387 = vst [vmem:[#allocation36_spill] sm:$0xff] %v3948_v25  ;;  %5389 = vst [vmem:[#allocation38_spill] sm:$0xff] %v3960_v17  ;;  %v925_v37 = vmul.f32 %v3948_v25, %v3948_v25  ;;  %v4003_v29 = vmul.f32 %v3960_v17, %v3960_v17  ;;  %v4006_v1 = vsub.f32 %v2607_v57, %v679_v55  ;;  %v680_v49 = vmul.f32 0.0078125, %v3624_v23  ;;  %v2608_v55 = vld [vmem:[%s2913_s21 + $0x2a0] sm:$0xff] }
 0x1c6   : > { %1116 = vadd.xlane.f32.xlu1 %v919_v13  ;;  %1114 = vadd.xlane.f32.xlu0 %v918_v18  ;;  %v2602_v13 = vld [vmem:[%s2913_s21 + $0x270] sm:$0xff]  ;;  %5394 = vst [vmem:[#allocation43_spill] sm:$0xff] %v3982_v7  ;;  %5396 = vst [vmem:[#allocation45_spill] sm:$0xff] %v3992_v2  ;;  %v4023_v23 = vmul.f32 %v3982_v7, %v3982_v7  ;;  %v4026_v57 = vsub.f32 %v2608_v55, %v678_v26  ;;  %v682_v55 = vmul.f32 0.0078125, %v3634_v47 }
 0x1c7   : > { %v3972_v12 = vpop.xlane.xlu1 %591  ;;  %v3974_v52 = vpop.xlane.xlu0 %589  ;;  %v3979_v18 = vsub.f32 %v2602_v13, %v672_v21  ;;  %v681_v21 = vmul.f32 0.0078125, %v3622_v41  ;;  %v2606_v13 = vld [vmem:[%s2913_s21 + $0x290] sm:$0xff]  ;;  %5398 = vst [vmem:[#allocation47_spill] sm:$0xff] %v4006_v1 }
 0x1c8   : > { %5392 = vst [vmem:[#allocation41_spill] sm:$0xff] %v3974_v52  ;;  %v3997_v52 = vsub.f32 %v2606_v13, %v676_v15  ;;  %v4011_v15 = vmul.f32 %v3966_v43, %v3966_v43  ;;  %5399 = vst [vmem:[#allocation48_spill] sm:$0xff] %v4026_v57  ;;  %v2609_v43 = vld [vmem:[%s2913_s21 + $0x2b8] sm:$0xff]  ;;  %v4057_v47 = vmul.f32 %v4026_v57, %v4026_v57 }
 0x1c9   : > { %5393 = vst [vmem:[#allocation42_spill] sm:$0xff] %v3979_v18  ;;  %v4019_v13 = vmul.f32 %v3979_v18, %v3979_v18  ;;  %v4029_v17 = vsub.f32 %v2609_v43, %v681_v21  ;;  %v2610_v43 = vld [vmem:[%s2913_s21 + $0x2b0] sm:$0xff] }
 0x1ca   : > { %5397 = vst [vmem:[#allocation46_spill] sm:$0xff] %v3997_v52  ;;  %1120 = vadd.xlane.f32.xlu1 %v921_v34  ;;  %1118 = vadd.xlane.f32.xlu0 %v920_v46  ;;  %v4015_v34 = vmul.f32 %v3969_v6, %v3969_v6  ;;  %v4033_v6 = vmul.f32 %v3989_v44, %v3989_v44  ;;  %v685_v44 = vmul.f32 0.0078125, %v3650_v27 }
 0x1cb   : > { %v981_v41 = vpop.xlane.xlu1 %980  ;;  %v979_v20 = vpop.xlane.xlu0 %978  ;;  %5400 = vst [vmem:[#allocation49_spill] sm:$0xff] %v4029_v17  ;;  %v4042_v26 = vmul.f32 %v3997_v52, %v3997_v52  ;;  %v4045_v21 = vsub.f32 %v2610_v43, %v680_v49  ;;  %v687_v49 = vmul.f32 0.0078125, %v3670_v50  ;;  %v4061_v27 = vmul.f32 %v4029_v17, %v4029_v17  ;;  %v2612_v50 = vld [vmem:[%s2913_s21 + $0x2c0] sm:$0xff] }
 0x1cc   : > { %v1235_v46 = vmul.f32 0.0078125, %v981_v41  ;;  %v1234_v40 = vmul.f32 0.0078125, %v979_v20  ;;  %v4037_v41 = vmul.f32 %v3992_v2, %v3992_v2  ;;  %v683_v20 = vmul.f32 0.0078125, %v3632_v16 }
 0x1cd   : > { %5401 = vst [vmem:[#allocation50_spill] sm:$0xff] %v4045_v21  ;;  %v4051_v16 = vmul.f32 %v4006_v1, %v4006_v1  ;;  %v689_v17 = vmul.f32 0.0078125, %v3680_v10  ;;  %v691_v10 = vmul.f32 0.0078125, %v3698_v28 }
 0x1ce   : > { %v1367_v18 = vadd.f32 1e-05, %v1235_v46  ;;  %v1366_v14 = vadd.f32 1e-05, %v1234_v40  ;;  %1124 = vadd.xlane.f32.xlu1 %v923_v45  ;;  %1122 = vadd.xlane.f32.xlu0 %v922_v35  ;;  %v684_v45 = vmul.f32 0.0078125, %v3652_v63  ;;  %v2611_v40 = vld [vmem:[%s2913_s21 + $0x2c8] sm:$0xff] }
 0x1cf   : > { %v985_v2 = vpop.xlane.xlu1 %984  ;;  %v983_v7 = vpop.xlane.xlu0 %982  ;;  %v4064_v43 = vsub.f32 %v2611_v40, %v683_v20  ;;  %v686_v63 = vmul.f32 0.0078125, %v3672_v42  ;;  %v4076_v42 = vmul.f32 %v4045_v21, %v4045_v21 }
 0x1d0   : > { %2336 = vrsqrt.f32 %v1367_v18  ;;  %v1237_v35 = vmul.f32 0.0078125, %v985_v2  ;;  %v1236_v46 = vmul.f32 0.0078125, %v983_v7  ;;  %v2613_v7 = vld [vmem:[%s2913_s21 + $0x2d8] sm:$0xff] }
 0x1d1   : > { %2338 = vrsqrt.f32 %v1366_v14  ;;  %5402 = vst [vmem:[#allocation51_spill] sm:$0xff] %v4064_v43  ;;  %v4068_v14 = vsub.f32 %v2612_v50, %v682_v55  ;;  %v4071_v57 = vsub.f32 %v2613_v7, %v685_v44  ;;  %v2615_v55 = vld [vmem:[%s2913_s21 + $0x2e8] sm:$0xff]  ;;  %v688_v44 = vmul.f32 0.0078125, %v3682_v53  ;;  %v2617_v53 = vld [vmem:[%s2913_s21 + $0x2f8] sm:$0xff] }
 0x1d2   : > { %v1369_v18 = vadd.f32 1e-05, %v1237_v35  ;;  %v1368_v2 = vadd.f32 1e-05, %v1236_v46  ;;  %1128 = vadd.xlane.f32.xlu1 %v925_v37  ;;  %1126 = vadd.xlane.f32.xlu0 %v924_v4  ;;  %v2614_v35 = vld [vmem:[%s2913_s21 + $0x2d0] sm:$0xff]  ;;  %v4082_v40 = vsub.f32 %v2615_v55, %v687_v49  ;;  %v4099_v28 = vmul.f32 %v4064_v43, %v4064_v43  ;;  %v2619_v55 = vld [vmem:[%s2913_s21 + $0x308] sm:$0xff] }
 0x1d3   : > { %5403 = vst [vmem:[#allocation52_spill] sm:$0xff] %v4068_v14  ;;  %5404 = vst [vmem:[#allocation103_spill] sm:$0xff] %v4071_v57  ;;  %v989_v1 = vpop.xlane.xlu1 %988  ;;  %v987_v20 = vpop.xlane.xlu0 %986  ;;  %v4079_v46 = vsub.f32 %v2614_v35, %v684_v45  ;;  %v2616_v45 = vld [vmem:[%s2913_s21 + $0x2e0] sm:$0xff]  ;;  %v4102_v49 = vsub.f32 %v2617_v53, %v689_v17  ;;  %v2621_v43 = vld [vmem:[%s2913_s21 + $0x318] sm:$0xff] }
 0x1d4   : > { %2340 = vrsqrt.f32 %v1369_v18  ;;  %v1239_v37 = vmul.f32 0.0078125, %v989_v1  ;;  %v1238_v4 = vmul.f32 0.0078125, %v987_v20  ;;  %5406 = vst [vmem:[#allocation105_spill] sm:$0xff] %v4082_v40  ;;  %v4093_v50 = vsub.f32 %v2616_v45, %v686_v63 }
 0x1d5   : > { %5405 = vst [vmem:[#allocation104_spill] sm:$0xff] %v4079_v46  ;;  %2342 = vrsqrt.f32 %v1368_v2  ;;  %5408 = vst [vmem:[#allocation107_spill] sm:$0xff] %v4102_v49  ;;  %v690_v2 = vmul.f32 0.0078125, %v3700_v56  ;;  %v4107_v20 = vmul.f32 %v4068_v14, %v4068_v14  ;;  %v4118_v17 = vmul.f32 %v4079_v46, %v4079_v46  ;;  %v2618_v56 = vld [vmem:[%s2913_s21 + $0x2f0] sm:$0xff] }
 0x1d6   : > { %5407 = vst [vmem:[#allocation106_spill] sm:$0xff] %v4093_v50  ;;  %v1371_v18 = vadd.f32 1e-05, %v1239_v37  ;;  %v1370_v1 = vadd.f32 1e-05, %v1238_v4  ;;  %1132 = vadd.xlane.f32.xlu1 %v4003_v29  ;;  %1130 = vadd.xlane.f32.xlu0 %v4011_v15  ;;  %v4111_v29 = vmul.f32 %v4071_v57, %v4071_v57  ;;  %v4121_v4 = vsub.f32 %v2618_v56, %v688_v44 }
 0x1d7   : > { %v993_v63 = vpop.xlane.xlu1 %992  ;;  %v991_v7 = vpop.xlane.xlu0 %990  ;;  %v4114_v15 = vld [vmem:[%s4090_s8] ss:$0 sm:$0xff]  ;;  %v4124_v45 = vsub.f32 %v2619_v55, %v691_v10  ;;  %v4141_v10 = vmul.f32 %v4093_v50, %v4093_v50 }
 0x1d8   : > { %2344 = vrsqrt.f32 %v1371_v18  ;;  %v1241_v35 = vmul.f32 0.0078125, %v993_v63  ;;  %v1240_v37 = vmul.f32 0.0078125, %v991_v7  ;;  %5409 = vst [vmem:[#allocation108_spill] sm:$0xff] %v4121_v4  ;;  %v4134_v18 = vmul.f32 %v4082_v40, %v4082_v40  ;;  %v5412_v40 = vld [vmem:[#allocation63_spill] sm:$0xff] }
 0x1d9   : > { %5410 = vst [vmem:[#allocation109_spill] sm:$0xff] %v4124_v45  ;;  %2346 = vrsqrt.f32 %v1370_v1  ;;  %v693_v63 = vmul.f32 0.0078125, %v3718_v60  ;;  %v2620_v1 = vld [vmem:[%s2913_s21 + $0x300] sm:$0xff]  ;;  %v692_v46 = vmul.f32 0.0078125, %v5412_v40  ;;  %v4159_v40 = vmul.f32 %v4121_v4, %v4121_v4 }
 0x1da   : > { %v2337_v53 = vpop.eup %2336  ;;  %v1373_v7 = vadd.f32 1e-05, %v1241_v35  ;;  %v1372_v44 = vadd.f32 1e-05, %v1240_v37  ;;  %1136 = vadd.xlane.f32.xlu1 %v4015_v34  ;;  %1134 = vadd.xlane.f32.xlu0 %v4019_v13  ;;  %v4144_v55 = vsub.f32 %v2620_v1, %v690_v2  ;;  %v4150_v34 = vmul.f32 %v4102_v49, %v4102_v49  ;;  %v4153_v13 = vld [vmem:[%s4130_s22] ss:$0 sm:$0xff] }
 0x1db   : > { %v2339_v56 = vpop.eup %2338  ;;  %v1629_v57 = vmul.f32 %v2337_v53, %v4114_v15  ;;  %v997_v60 = vpop.xlane.xlu1 %996  ;;  %v5413_v1 = vld [vmem:[#allocation80_spill] sm:$0xff]  ;;  %v4163_v53 = vmul.f32 %v4124_v45, %v4124_v45  ;;  %v4166_v21 = vsub.f32 %v2621_v43, %v693_v63 }
 0x1dc   : > { %5411 = vst [vmem:[#allocation110_spill] sm:$0xff] %v4144_v55  ;;  %v995_v35 = vpop.xlane.xlu0 %994  ;;  %v1628_v37 = vmul.f32 %v2339_v56, %v4114_v15  ;;  %2348 = vrsqrt.f32 %v1373_v7  ;;  %v1243_v50 = vmul.f32 0.0078125, %v997_v60  ;;  %v5415_v56 = vld [vmem:[#allocation79_spill] sm:$0xff]  ;;  %v4178_v63 = vmul.f32 %v4144_v55, %v4144_v55 }
 0x1dd   : > { %v1242_v2 = vmul.f32 0.0078125, %v995_v35  ;;  %v1757_v14 = vmul.f32 %v1629_v57, %v5413_v1  ;;  %2350 = vrsqrt.f32 %v1372_v44  ;;  %5414 = vst [vmem:[#allocation63_spill] sm:$0xff] %v4166_v21  ;;  %v2622_v44 = vld [vmem:[%s2913_s21 + $0x310] sm:$0xff] }
 0x1de   : > { %v2341_v49 = vpop.eup %2340  ;;  %v1756_v7 = vmul.f32 %v1628_v37, %v5415_v56  ;;  %v1375_v52 = vadd.f32 1e-05, %v1243_v50  ;;  %1140 = vadd.xlane.f32.xlu1 %v4023_v23  ;;  %1138 = vadd.xlane.f32.xlu0 %v4033_v6  ;;  %v4172_v35 = vsub.f32 %v2622_v44, %v692_v46  ;;  %v5417_v37 = vld [vmem:[#allocation64_spill] sm:$0xff] }
 0x1df   : > { %v1374_v60 = vadd.f32 1e-05, %v1242_v2  ;;  %v2343_v57 = vpop.eup %2342  ;;  %v1891_v1 = vadd.f32 %v4153_v13, %v1757_v14  ;;  %v1631_v45 = vmul.f32 %v2341_v49, %v4114_v15  ;;  %v1001_v4 = vpop.xlane.xlu1 %1000  ;;  %v695_v2 = vmul.f32 0.0078125, %v5417_v37  ;;  %v5418_v14 = vld [vmem:[#allocation82_spill] sm:$0xff]  ;;  %v5419_v44 = vld [vmem:[#allocation20_spill] sm:$0xff] }
 0x1e0   : > { %5416 = vst [vmem:[#allocation80_spill] sm:$0xff] %v4172_v35  ;;  %v999_v43 = vpop.xlane.xlu0 %998  ;;  %v1890_v50 = vadd.f32 %v4153_v13, %v1756_v7  ;;  %v1630_v23 = vmul.f32 %v2343_v57, %v4114_v15  ;;  %2352 = vrsqrt.f32 %v1375_v52  ;;  %v1245_v6 = vmul.f32 0.0078125, %v1001_v4  ;;  %v5420_v7 = vld [vmem:[#allocation81_spill] sm:$0xff] }
 0x1e1   : > { %2019 = vst [vmem:[%s4185_s23 + $0x8] sm:$0xff] %v1891_v1  ;;  %v1759_v46 = vmul.f32 %v1631_v45, %v5418_v14  ;;  %2354 = vrsqrt.f32 %v1374_v60  ;;  %v1244_v49 = vmul.f32 0.0078125, %v999_v43  ;;  %v694_v55 = vmul.f32 0.0078125, %v5419_v44  ;;  %v2623_v14 = vld [vmem:[%s2913_s21 + $0x328] sm:$0xff] }
 0x1e2   : > { %v2345_v56 = vpop.eup %2344  ;;  %2018 = vst [vmem:[%s4185_s23] sm:$0xff] %v1890_v50  ;;  %v1758_v57 = vmul.f32 %v1630_v23, %v5420_v7  ;;  %v1377_v52 = vadd.f32 1e-05, %v1245_v6  ;;  %1144 = vadd.xlane.f32.xlu1 %v4037_v41  ;;  %1142 = vadd.xlane.f32.xlu0 %v4042_v26  ;;  %v4196_v4 = vmul.f32 %v4166_v21, %v4166_v21  ;;  %v2624_v21 = vld [vmem:[%s2913_s21 + $0x320] sm:$0xff] }
 0x1e3   : > { %v2347_v45 = vpop.eup %2346  ;;  %v1893_v60 = vadd.f32 %v4153_v13, %v1759_v46  ;;  %v1633_v1 = vmul.f32 %v2345_v56, %v4114_v15  ;;  %v1376_v43 = vadd.f32 1e-05, %v1244_v49  ;;  %v1005_v50 = vpop.xlane.xlu1 %1004  ;;  %v4202_v41 = vmul.f32 %v4172_v35, %v4172_v35  ;;  %v5421_v46 = vld [vmem:[#allocation83_spill] sm:$0xff] }
 0x1e4   : > { %v1003_v23 = vpop.xlane.xlu0 %1002  ;;  %v1892_v26 = vadd.f32 %v4153_v13, %v1758_v57  ;;  %v1632_v6 = vmul.f32 %v2347_v45, %v4114_v15  ;;  %2356 = vrsqrt.f32 %v1377_v52  ;;  %v1247_v37 = vmul.f32 0.0078125, %v1005_v50  ;;  %v5422_v57 = vld [vmem:[#allocation84_spill] sm:$0xff] }
 0x1e5   : > { %v4207_v44 = vsub.f32 %v2623_v14, %v695_v2  ;;  %2021 = vst [vmem:[%s4185_s23 + $0x18] sm:$0xff] %v1893_v60  ;;  %v1761_v56 = vmul.f32 %v1633_v1, %v5421_v46  ;;  %2358 = vrsqrt.f32 %v1376_v43  ;;  %v1246_v49 = vmul.f32 0.0078125, %v1003_v23  ;;  %v5423_v60 = vld [vmem:[#allocation23_spill] sm:$0xff] }
 0x1e6   : > { %v2349_v7 = vpop.eup %2348  ;;  %v4212_v25 = vsub.f32 %v2624_v21, %v694_v55  ;;  %v697_v35 = vmul.f32 0.0078125, %v3746_v33  ;;  %2020 = vst [vmem:[%s4185_s23 + $0x10] sm:$0xff] %v1892_v26  ;;  %v1760_v45 = vmul.f32 %v1632_v6, %v5422_v57  ;;  %v1379_v52 = vadd.f32 1e-05, %v1247_v37  ;;  %1148 = vadd.xlane.f32.xlu1 %v4051_v16  ;;  %1146 = vadd.xlane.f32.xlu0 %v4057_v47  ;;  %v5424_v47 = vld [vmem:[#allocation85_spill] sm:$0xff] }
 0x1e7   : > { %v2351_v2 = vpop.eup %2350  ;;  %v696_v1 = vmul.f32 0.0078125, %v5423_v60  ;;  %v1895_v43 = vadd.f32 %v4153_v13, %v1761_v56  ;;  %v1635_v21 = vmul.f32 %v2349_v7, %v4114_v15  ;;  %v1378_v55 = vadd.f32 1e-05, %v1246_v49  ;;  %v1009_v33 = vpop.xlane.xlu1 %1008  ;;  %v2625_v56 = vld [vmem:[%s2913_s21 + $0x338] sm:$0xff]  ;;  %v5425_v7 = vld [vmem:[#allocation86_spill] sm:$0xff] }
 0x1e8   : > { %v1007_v50 = vpop.xlane.xlu0 %1006  ;;  %v1894_v23 = vadd.f32 %v4153_v13, %v1760_v45  ;;  %v1634_v26 = vmul.f32 %v2351_v2, %v4114_v15  ;;  %2360 = vrsqrt.f32 %v1379_v52  ;;  %v1249_v16 = vmul.f32 0.0078125, %v1009_v33  ;;  %v2626_v60 = vld [vmem:[%s2913_s21 + $0x330] sm:$0xff] }
 0x1e9   : > { %2023 = vst [vmem:[%s4185_s23 + $0x28] sm:$0xff] %v1895_v43  ;;  %v1763_v6 = vmul.f32 %v1635_v21, %v5424_v47  ;;  %2362 = vrsqrt.f32 %v1378_v55  ;;  %v1248_v37 = vmul.f32 0.0078125, %v1007_v50  ;;  %v4228_v14 = vmul.f32 %v4207_v44, %v4207_v44 }
 0x1ea   : > { %v2353_v46 = vpop.eup %2352  ;;  %v4231_v49 = vsub.f32 %v2625_v56, %v697_v35  ;;  %2022 = vst [vmem:[%s4185_s23 + $0x20] sm:$0xff] %v1894_v23  ;;  %v1762_v57 = vmul.f32 %v1634_v26, %v5425_v7  ;;  %v1381_v45 = vadd.f32 1e-05, %v1249_v16  ;;  %1152 = vadd.xlane.f32.xlu1 %v4061_v27  ;;  %1150 = vadd.xlane.f32.xlu0 %v4076_v42  ;;  %v699_v26 = vmul.f32 0.0078125, %v3766_v19  ;;  %v5426_v16 = vld [vmem:[#allocation87_spill] sm:$0xff] }
 0x1eb   : > { %v4239_v52 = vmul.f32 %v4212_v25, %v4212_v25  ;;  %v2355_v2 = vpop.eup %2354  ;;  %v4242_v43 = vsub.f32 %v2626_v60, %v696_v1  ;;  %v1897_v35 = vadd.f32 %v4153_v13, %v1763_v6  ;;  %v1637_v21 = vmul.f32 %v2353_v46, %v4114_v15  ;;  %v1013_v33 = vpop.xlane.xlu1 %1012 }
 0x1ec   : > { %v1380_v55 = vadd.f32 1e-05, %v1248_v37  ;;  %v1011_v50 = vpop.xlane.xlu0 %1010  ;;  %v1896_v27 = vadd.f32 %v4153_v13, %v1762_v57  ;;  %v1636_v42 = vmul.f32 %v2355_v2, %v4114_v15  ;;  %2364 = vrsqrt.f32 %v1381_v45  ;;  %v5427_v37 = vld [vmem:[#allocation88_spill] sm:$0xff] }
 0x1ed   : > { %v1251_v23 = vmul.f32 0.0078125, %v1013_v33  ;;  %2025 = vst [vmem:[%s4185_s23 + $0x38] sm:$0xff] %v1897_v35  ;;  %v1765_v1 = vmul.f32 %v1637_v21, %v5426_v16  ;;  %v1250_v47 = vmul.f32 0.0078125, %v1011_v50  ;;  %v698_v56 = vmul.f32 0.0078125, %v3768_v54  ;;  %v2627_v33 = vld [vmem:[%s2913_s21 + $0x348] sm:$0xff] }
 0x1ee   : > { %2366 = vrsqrt.f32 %v1380_v55  ;;  %v2357_v6 = vpop.eup %2356  ;;  %2024 = vst [vmem:[%s4185_s23 + $0x30] sm:$0xff] %v1896_v27  ;;  %v1764_v46 = vmul.f32 %v1636_v42, %v5427_v37  ;;  %1156 = vadd.xlane.f32.xlu1 %v4099_v28  ;;  %1154 = vadd.xlane.f32.xlu0 %v4107_v20  ;;  %v4258_v19 = vmul.f32 %v4231_v49, %v4231_v49  ;;  %v5428_v27 = vld [vmem:[#allocation89_spill] sm:$0xff]  ;;  %v5429_v37 = vld [vmem:[#allocation90_spill] sm:$0xff] }
 0x1ef   : > { %v1383_v7 = vadd.f32 1e-05, %v1251_v23  ;;  %v2359_v57 = vpop.eup %2358  ;;  %v1899_v45 = vadd.f32 %v4153_v13, %v1765_v1  ;;  %v1639_v2 = vmul.f32 %v2357_v6, %v4114_v15  ;;  %v1382_v54 = vadd.f32 1e-05, %v1250_v47  ;;  %v1017_v60 = vpop.xlane.xlu1 %1016  ;;  %v2628_v1 = vld [vmem:[%s2913_s21 + $0x340] sm:$0xff] }
 0x1f0   : > { %v1015_v35 = vpop.xlane.xlu0 %1014  ;;  %v4264_v28 = vmul.f32 %v4242_v43, %v4242_v43  ;;  %v1898_v20 = vadd.f32 %v4153_v13, %v1764_v46  ;;  %v1638_v21 = vmul.f32 %v2359_v57, %v4114_v15  ;;  %v1253_v55 = vmul.f32 0.0078125, %v1017_v60  ;;  %v5430_v57 = vld [vmem:[#allocation67_spill] sm:$0xff] }
 0x1f1   : > { %2368 = vrsqrt.f32 %v1383_v7  ;;  %v4269_v50 = vsub.f32 %v2627_v33, %v699_v26  ;;  %2027 = vst [vmem:[%s4185_s23 + $0x48] sm:$0xff] %v1899_v45  ;;  %v1767_v42 = vmul.f32 %v1639_v2, %v5428_v27  ;;  %v1252_v23 = vmul.f32 0.0078125, %v1015_v35 }
 0x1f2   : > { %2370 = vrsqrt.f32 %v1382_v54  ;;  %v2361_v16 = vpop.eup %2360  ;;  %v4274_v47 = vsub.f32 %v2628_v1, %v698_v56  ;;  %v701_v6 = vmul.f32 0.0078125, %v3776_v59  ;;  %2026 = vst [vmem:[%s4185_s23 + $0x40] sm:$0xff] %v1898_v20  ;;  %v1766_v46 = vmul.f32 %v1638_v21, %v5429_v37  ;;  %1160 = vadd.xlane.f32.xlu1 %v4111_v29  ;;  %1158 = vadd.xlane.f32.xlu0 %v4118_v17  ;;  %v5431_v17 = vld [vmem:[#allocation91_spill] sm:$0xff] }
 0x1f3   : > { %v1385_v7 = vadd.f32 1e-05, %v1253_v55  ;;  %v2363_v26 = vpop.eup %2362  ;;  %v700_v45 = vmul.f32 0.0078125, %v5430_v57  ;;  %v1901_v2 = vadd.f32 %v4153_v13, %v1767_v42  ;;  %v1641_v56 = vmul.f32 %v2361_v16, %v4114_v15  ;;  %v1021_v59 = vpop.xlane.xlu1 %1020  ;;  %v2629_v42 = vld [vmem:[%s2913_s21 + $0x358] sm:$0xff]  ;;  %v5432_v16 = vld [vmem:[#allocation92_spill] sm:$0xff] }
 0x1f4   : > { %v1384_v54 = vadd.f32 1e-05, %v1252_v23  ;;  %v1019_v60 = vpop.xlane.xlu0 %1018  ;;  %v1900_v35 = vadd.f32 %v4153_v13, %v1766_v46  ;;  %v1640_v20 = vmul.f32 %v2363_v26, %v4114_v15  ;;  %v1255_v29 = vmul.f32 0.0078125, %v1021_v59  ;;  %v2630_v26 = vld [vmem:[%s2913_s21 + $0x350] sm:$0xff] }
 0x1f5   : > { %2372 = vrsqrt.f32 %v1385_v7  ;;  %2029 = vst [vmem:[%s4185_s23 + $0x58] sm:$0xff] %v1901_v2  ;;  %v1769_v21 = vmul.f32 %v1641_v56, %v5431_v17  ;;  %v1254_v55 = vmul.f32 0.0078125, %v1019_v60  ;;  %v4290_v33 = vmul.f32 %v4269_v50, %v4269_v50 }
 0x1f6   : > { %2374 = vrsqrt.f32 %v1384_v54  ;;  %v2365_v27 = vpop.eup %2364  ;;  %v4293_v23 = vsub.f32 %v2629_v42, %v701_v6  ;;  %2028 = vst [vmem:[%s4185_s23 + $0x50] sm:$0xff] %v1900_v35  ;;  %v1768_v1 = vmul.f32 %v1640_v20, %v5432_v16  ;;  %v1387_v37 = vadd.f32 1e-05, %v1255_v29  ;;  %1164 = vadd.xlane.f32.xlu1 %v4134_v18  ;;  %1162 = vadd.xlane.f32.xlu0 %v4141_v10  ;;  %v5433_v20 = vld [vmem:[#allocation93_spill] sm:$0xff] }
 0x1f7   : > { %v4301_v46 = vmul.f32 %v4274_v47, %v4274_v47  ;;  %v4304_v57 = vsub.f32 %v2630_v26, %v700_v45  ;;  %v1903_v6 = vadd.f32 %v4153_v13, %v1769_v21  ;;  %v1643_v2 = vmul.f32 %v2365_v27, %v4114_v15  ;;  %v1025_v54 = vpop.xlane.xlu1 %1024 }
 0x1f8   : > { %v2367_v7 = vpop.eup %2366  ;;  %v1386_v56 = vadd.f32 1e-05, %v1254_v55  ;;  %v1023_v59 = vpop.xlane.xlu0 %1022  ;;  %v1902_v18 = vadd.f32 %v4153_v13, %v1768_v1  ;;  %2376 = vrsqrt.f32 %v1387_v37  ;;  %v1257_v60 = vmul.f32 0.0078125, %v1025_v54  ;;  %v5434_v55 = vld [vmem:[#allocation94_spill] sm:$0xff] }
 0x1f9   : > { %v1642_v10 = vmul.f32 %v2367_v7, %v4114_v15  ;;  %v703_v35 = vmul.f32 0.0078125, %v3794_v31  ;;  %2031 = vst [vmem:[%s4185_s23 + $0x68] sm:$0xff] %v1903_v6  ;;  %v1771_v45 = vmul.f32 %v1643_v2, %v5433_v20  ;;  %v1256_v29 = vmul.f32 0.0078125, %v1023_v59  ;;  %v5435_v59 = vld [vmem:[#allocation95_spill] sm:$0xff]  ;;  %v2632_v20 = vld [vmem:[%s2913_s21 + $0x360] sm:$0xff] }
 0x1fa   : > { %2378 = vrsqrt.f32 %v1386_v56  ;;  %v702_v21 = vmul.f32 0.0078125, %v3796_v24  ;;  %2030 = vst [vmem:[%s4185_s23 + $0x60] sm:$0xff] %v1902_v18  ;;  %v1389_v42 = vadd.f32 1e-05, %v1257_v60  ;;  %1168 = vadd.xlane.f32.xlu1 %v4150_v34  ;;  %1166 = vadd.xlane.f32.xlu0 %v4159_v40  ;;  %v4320_v31 = vmul.f32 %v4293_v23, %v4293_v23  ;;  %v2631_v56 = vld [vmem:[%s2913_s21 + $0x368] sm:$0xff] }
 0x1fb   : > { %v2369_v17 = vpop.eup %2368  ;;  %v1770_v27 = vmul.f32 %v1642_v10, %v5434_v55  ;;  %v1905_v1 = vadd.f32 %v4153_v13, %v1771_v45  ;;  %v1388_v24 = vadd.f32 1e-05, %v1256_v29  ;;  %v1029_v7 = vpop.xlane.xlu1 %1028  ;;  %v4326_v34 = vmul.f32 %v4304_v57, %v4304_v57 }
 0x1fc   : > { %v2371_v16 = vpop.eup %2370  ;;  %v1645_v37 = vmul.f32 %v2369_v17, %v4114_v15  ;;  %v1027_v26 = vpop.xlane.xlu0 %1026  ;;  %2380 = vrsqrt.f32 %v1389_v42  ;;  %v1259_v2 = vmul.f32 0.0078125, %v1029_v7  ;;  %v4331_v54 = vsub.f32 %v2631_v56, %v703_v35  ;;  %v5436_v17 = vld [vmem:[#allocation96_spill] sm:$0xff] }
 0x1fd   : > { %v1904_v40 = vadd.f32 %v4153_v13, %v1770_v27  ;;  %v1644_v6 = vmul.f32 %v2371_v16, %v4114_v15  ;;  %2033 = vst [vmem:[%s4185_s23 + $0x78] sm:$0xff] %v1905_v1  ;;  %2382 = vrsqrt.f32 %v1388_v24  ;;  %v1258_v10 = vmul.f32 0.0078125, %v1027_v26 }
 0x1fe   : > { %v1773_v18 = vmul.f32 %v1645_v37, %v5435_v59  ;;  %v4336_v45 = vsub.f32 %v2632_v20, %v702_v21  ;;  %v705_v29 = vmul.f32 0.0078125, %v3814_v11  ;;  %v1391_v27 = vadd.f32 1e-05, %v1259_v2  ;;  %1172 = vadd.xlane.f32.xlu1 %v4163_v53  ;;  %1170 = vadd.xlane.f32.xlu0 %v4178_v63  ;;  %v5437_v63 = vld [vmem:[#allocation97_spill] sm:$0xff]  ;;  %v2633_v2 = vld [vmem:[%s2913_s21 + $0x378] sm:$0xff]  ;;  %v5438_v59 = vld [vmem:[#allocation98_spill] sm:$0xff] }
 0x1ff   : > { %v2373_v60 = vpop.eup %2372  ;;  %2032 = vst [vmem:[%s4185_s23 + $0x70] sm:$0xff] %v1904_v40  ;;  %v1772_v55 = vmul.f32 %v1644_v6, %v5436_v17  ;;  %v704_v42 = vmul.f32 0.0078125, %v3816_v58  ;;  %v1390_v1 = vadd.f32 1e-05, %v1258_v10  ;;  %v1033_v11 = vpop.xlane.xlu1 %1032  ;;  %v4352_v40 = vmul.f32 %v4331_v54, %v4331_v54  ;;  %v2634_v17 = vld [vmem:[%s2913_s21 + $0x370] sm:$0xff] }
 0x200   : > { %v2375_v35 = vpop.eup %2374  ;;  %v1907_v16 = vadd.f32 %v4153_v13, %v1773_v18  ;;  %v1647_v21 = vmul.f32 %v2373_v60, %v4114_v15  ;;  %v1031_v37 = vpop.xlane.xlu0 %1030  ;;  %2384 = vrsqrt.f32 %v1391_v27  ;;  %v1261_v53 = vmul.f32 0.0078125, %v1033_v11 }
 0x201   : > { %v1906_v24 = vadd.f32 %v4153_v13, %v1772_v55  ;;  %v1646_v7 = vmul.f32 %v2375_v35, %v4114_v15  ;;  %2386 = vrsqrt.f32 %v1390_v1  ;;  %v1260_v58 = vmul.f32 0.0078125, %v1031_v37  ;;  %v5439_v37 = vld [vmem:[#allocation99_spill] sm:$0xff] }
 0x202   : > { %2035 = vst [vmem:[%s4185_s23 + $0x88] sm:$0xff] %v1907_v16  ;;  %v1775_v26 = vmul.f32 %v1647_v21, %v5437_v63  ;;  %v2377_v6 = vpop.eup %2376  ;;  %v4355_v56 = vsub.f32 %v2633_v2, %v705_v29  ;;  %v1393_v10 = vadd.f32 1e-05, %v1261_v53  ;;  %1176 = vadd.xlane.f32.xlu1 %v4196_v4  ;;  %1174 = vadd.xlane.f32.xlu0 %v4202_v41  ;;  %v707_v11 = vmul.f32 0.0078125, %v3824_v38  ;;  %v5440_v63 = vld [vmem:[#allocation100_spill] sm:$0xff] }
 0x203   : > { %2034 = vst [vmem:[%s4185_s23 + $0x80] sm:$0xff] %v1906_v24  ;;  %v1774_v18 = vmul.f32 %v1646_v7, %v5438_v59  ;;  %v4363_v60 = vmul.f32 %v4336_v45, %v4336_v45  ;;  %v4366_v55 = vsub.f32 %v2634_v17, %v704_v42  ;;  %v1649_v27 = vmul.f32 %v2377_v6, %v4114_v15  ;;  %v1037_v16 = vpop.xlane.xlu1 %1036 }
 0x204   : > { %v2379_v20 = vpop.eup %2378  ;;  %v1909_v29 = vadd.f32 %v4153_v13, %v1775_v26  ;;  %v1392_v35 = vadd.f32 1e-05, %v1260_v58  ;;  %v1035_v21 = vpop.xlane.xlu0 %1034  ;;  %2388 = vrsqrt.f32 %v1393_v10  ;;  %v1263_v1 = vmul.f32 0.0078125, %v1037_v16 }
 0x205   : > { %v1908_v4 = vadd.f32 %v4153_v13, %v1774_v18  ;;  %v1648_v41 = vmul.f32 %v2379_v20, %v4114_v15  ;;  %v1777_v42 = vmul.f32 %v1649_v27, %v5439_v37  ;;  %v1262_v24 = vmul.f32 0.0078125, %v1035_v21 }
 0x206   : > { %2037 = vst [vmem:[%s4185_s23 + $0x98] sm:$0xff] %v1909_v29  ;;  %2390 = vrsqrt.f32 %v1392_v35  ;;  %v2381_v7 = vpop.eup %2380  ;;  %v706_v53 = vmul.f32 0.0078125, %v3826_v61  ;;  %v1395_v58 = vadd.f32 1e-05, %v1263_v1  ;;  %1180 = vadd.xlane.f32.xlu1 %v4228_v14  ;;  %1178 = vadd.xlane.f32.xlu0 %v4239_v52  ;;  %v4382_v38 = vmul.f32 %v4355_v56, %v4355_v56  ;;  %v2635_v29 = vld [vmem:[%s2913_s21 + $0x388] sm:$0xff] }
 0x207   : > { %2036 = vst [vmem:[%s4185_s23 + $0x90] sm:$0xff] %v1908_v4  ;;  %v1776_v26 = vmul.f32 %v1648_v41, %v5440_v63  ;;  %v2383_v6 = vpop.eup %2382  ;;  %v1911_v2 = vadd.f32 %v4153_v13, %v1777_v42  ;;  %v1651_v59 = vmul.f32 %v2381_v7, %v4114_v15  ;;  %v1394_v61 = vadd.f32 1e-05, %v1262_v24  ;;  %v1041_v18 = vpop.xlane.xlu1 %1040  ;;  %v5441_v35 = vld [vmem:[#allocation101_spill] sm:$0xff]  ;;  %v2636_v41 = vld [vmem:[%s2913_s21 + $0x380] sm:$0xff]  ;;  %v5442_v42 = vld [vmem:[#allocation102_spill] sm:$0xff] }
 0x208   : > { %v1039_v10 = vpop.xlane.xlu0 %1038  ;;  %v4388_v14 = vmul.f32 %v4366_v55, %v4366_v55  ;;  %v1650_v20 = vmul.f32 %v2383_v6, %v4114_v15  ;;  %2392 = vrsqrt.f32 %v1395_v58  ;;  %v1265_v17 = vmul.f32 0.0078125, %v1041_v18 }
 0x209   : > { %v1910_v52 = vadd.f32 %v4153_v13, %v1776_v26  ;;  %v4393_v27 = vsub.f32 %v2635_v29, %v707_v11  ;;  %2039 = vst [vmem:[%s4185_s23 + $0xa8] sm:$0xff] %v1911_v2  ;;  %v1779_v16 = vmul.f32 %v1651_v59, %v5441_v35  ;;  %2394 = vrsqrt.f32 %v1394_v61 }
 0x20a   : > { %v1264_v21 = vmul.f32 0.0078125, %v1039_v10  ;;  %v2385_v4 = vpop.eup %2384  ;;  %v4398_v1 = vsub.f32 %v2636_v41, %v706_v53  ;;  %v709_v37 = vmul.f32 0.0078125, %v3842_v62  ;;  %v1778_v24 = vmul.f32 %v1650_v20, %v5442_v42  ;;  %1184 = vadd.xlane.f32.xlu1 %v4258_v19  ;;  %1182 = vadd.xlane.f32.xlu0 %v4264_v28  ;;  %v5443_v28 = vld [vmem:[#allocation8_spill] sm:$0xff] }
 0x20b   : > { %2038 = vst [vmem:[%s4185_s23 + $0xa0] sm:$0xff] %v1910_v52  ;;  %v1397_v7 = vadd.f32 1e-05, %v1265_v17  ;;  %v2387_v11 = vpop.eup %2386  ;;  %v708_v63 = vmul.f32 0.0078125, %v3844_v36  ;;  %v1913_v26 = vadd.f32 %v4153_v13, %v1779_v16  ;;  %v1653_v53 = vmul.f32 %v2385_v4, %v4114_v15  ;;  %v1045_v62 = vpop.xlane.xlu1 %1044  ;;  %v2637_v52 = vld [vmem:[%s2913_s21 + $0x398] sm:$0xff]  ;;  %v5444_v17 = vld [vmem:[#allocation9_spill] sm:$0xff] }
 0x20c   : > { %v1396_v58 = vadd.f32 1e-05, %v1264_v21  ;;  %v1043_v6 = vpop.xlane.xlu0 %1042  ;;  %v1912_v2 = vadd.f32 %v4153_v13, %v1778_v24  ;;  %v1652_v59 = vmul.f32 %v2387_v11, %v4114_v15  ;;  %v1267_v19 = vmul.f32 0.0078125, %v1045_v62  ;;  %v2638_v4 = vld [vmem:[%s2913_s21 + $0x390] sm:$0xff] }
 0x20d   : > { %2396 = vrsqrt.f32 %v1397_v7  ;;  %2041 = vst [vmem:[%s4185_s23 + $0xb8] sm:$0xff] %v1913_v26  ;;  %v1781_v61 = vmul.f32 %v1653_v53, %v5443_v28  ;;  %v1266_v36 = vmul.f32 0.0078125, %v1043_v6  ;;  %v4414_v18 = vmul.f32 %v4393_v27, %v4393_v27 }
 0x20e   : > { %2398 = vrsqrt.f32 %v1396_v58  ;;  %v2389_v10 = vpop.eup %2388  ;;  %v4417_v20 = vsub.f32 %v2637_v52, %v709_v37  ;;  %2040 = vst [vmem:[%s4185_s23 + $0xb0] sm:$0xff] %v1912_v2  ;;  %v1780_v29 = vmul.f32 %v1652_v59, %v5444_v17  ;;  %v1399_v35 = vadd.f32 1e-05, %v1267_v19  ;;  %1188 = vadd.xlane.f32.xlu1 %v4290_v33  ;;  %1186 = vadd.xlane.f32.xlu0 %v4301_v46  ;;  %v5445_v58 = vld [vmem:[#allocation10_spill] sm:$0xff]  ;;  %v5446_v59 = vld [vmem:[#allocation11_spill] sm:$0xff] }
 0x20f   : > { %v4425_v16 = vmul.f32 %v4398_v1, %v4398_v1  ;;  %v4428_v41 = vsub.f32 %v2638_v4, %v708_v63  ;;  %v1915_v37 = vadd.f32 %v4153_v13, %v1781_v61  ;;  %v1655_v42 = vmul.f32 %v2389_v10, %v4114_v15  ;;  %v1049_v7 = vpop.xlane.xlu1 %1048 }
 0x210   : > { %v2391_v21 = vpop.eup %2390  ;;  %v1398_v24 = vadd.f32 1e-05, %v1266_v36  ;;  %v1047_v11 = vpop.xlane.xlu0 %1046  ;;  %v1914_v33 = vadd.f32 %v4153_v13, %v1780_v29  ;;  %2400 = vrsqrt.f32 %v1399_v35  ;;  %v1269_v26 = vmul.f32 0.0078125, %v1049_v7 }
 0x211   : > { %v1654_v46 = vmul.f32 %v2391_v21, %v4114_v15  ;;  %v711_v53 = vmul.f32 0.0078125, %v3862_v39  ;;  %2043 = vst [vmem:[%s4185_s23 + $0xc8] sm:$0xff] %v1915_v37  ;;  %v1783_v63 = vmul.f32 %v1655_v42, %v5445_v58  ;;  %v1268_v62 = vmul.f32 0.0078125, %v1047_v11  ;;  %v2639_v21 = vld [vmem:[%s2913_s21 + $0x3a8] sm:$0xff]  ;;  %v2640_v11 = vld [vmem:[%s2913_s21 + $0x3a0] sm:$0xff] }
 0x212   : > { %2402 = vrsqrt.f32 %v1398_v24  ;;  %v2393_v6 = vpop.eup %2392  ;;  %v710_v2 = vmul.f32 0.0078125, %v3864_v48  ;;  %2042 = vst [vmem:[%s4185_s23 + $0xc0] sm:$0xff] %v1914_v33  ;;  %v1401_v28 = vadd.f32 1e-05, %v1269_v26  ;;  %1192 = vadd.xlane.f32.xlu1 %v4320_v31  ;;  %1190 = vadd.xlane.f32.xlu0 %v4326_v34  ;;  %v4444_v39 = vmul.f32 %v4417_v20, %v4417_v20  ;;  %v5447_v37 = vld [vmem:[#allocation53_spill] sm:$0xff]  ;;  %v5448_v26 = vld [vmem:[#allocation54_spill] sm:$0xff] }
 0x213   : > { %v1782_v19 = vmul.f32 %v1654_v46, %v5446_v59  ;;  %v2395_v61 = vpop.eup %2394  ;;  %v1917_v36 = vadd.f32 %v4153_v13, %v1783_v63  ;;  %v1657_v10 = vmul.f32 %v2393_v6, %v4114_v15  ;;  %v1400_v48 = vadd.f32 1e-05, %v1268_v62  ;;  %v1053_v52 = vpop.xlane.xlu1 %1052 }
 0x214   : > { %v1051_v17 = vpop.xlane.xlu0 %1050  ;;  %v4450_v31 = vmul.f32 %v4428_v41, %v4428_v41  ;;  %v1656_v29 = vmul.f32 %v2395_v61, %v4114_v15  ;;  %2404 = vrsqrt.f32 %v1401_v28  ;;  %v1271_v35 = vmul.f32 0.0078125, %v1053_v52  ;;  %v2641_v52 = vld [vmem:[%s2913_s21 + $0x3b8] sm:$0xff] }
 0x215   : > { %v1916_v34 = vadd.f32 %v4153_v13, %v1782_v19  ;;  %v4455_v4 = vsub.f32 %v2639_v21, %v711_v53  ;;  %2045 = vst [vmem:[%s4185_s23 + $0xd8] sm:$0xff] %v1917_v36  ;;  %v1785_v42 = vmul.f32 %v1657_v10, %v5447_v37  ;;  %2406 = vrsqrt.f32 %v1400_v48 }
 0x216   : > { %v1270_v24 = vmul.f32 0.0078125, %v1051_v17  ;;  %v4460_v33 = vsub.f32 %v2640_v11, %v710_v2  ;;  %v713_v46 = vmul.f32 0.0078125, %v3872_v32  ;;  %v1784_v58 = vmul.f32 %v1656_v29, %v5448_v26  ;;  %1196 = vadd.xlane.f32.xlu1 %v4352_v40  ;;  %1194 = vadd.xlane.f32.xlu0 %v4363_v60  ;;  %v5449_v60 = vld [vmem:[#allocation12_spill] sm:$0xff] }
 0x217   : > { %v2397_v7 = vpop.eup %2396  ;;  %2044 = vst [vmem:[%s4185_s23 + $0xd0] sm:$0xff] %v1916_v34  ;;  %v1403_v63 = vadd.f32 1e-05, %v1271_v35  ;;  %v712_v62 = vmul.f32 0.0078125, %v3874_v22  ;;  %v1919_v6 = vadd.f32 %v4153_v13, %v1785_v42  ;;  %v1057_v32 = vpop.xlane.xlu1 %1056  ;;  %v4476_v10 = vmul.f32 %v4455_v4, %v4455_v4  ;;  %v5450_v34 = vld [vmem:[#allocation13_spill] sm:$0xff]  ;;  %v2642_v42 = vld [vmem:[%s2913_s21 + $0x3b0] sm:$0xff] }
 0x218   : > { %v2399_v53 = vpop.eup %2398  ;;  %v1659_v2 = vmul.f32 %v2397_v7, %v4114_v15  ;;  %v1402_v59 = vadd.f32 1e-05, %v1270_v24  ;;  %v1055_v19 = vpop.xlane.xlu0 %1054  ;;  %v1918_v28 = vadd.f32 %v4153_v13, %v1784_v58  ;;  %v1273_v40 = vmul.f32 0.0078125, %v1057_v32 }
 0x219   : > { %v1658_v61 = vmul.f32 %v2399_v53, %v4114_v15  ;;  %2408 = vrsqrt.f32 %v1403_v63  ;;  %2047 = vst [vmem:[%s4185_s23 + $0xe8] sm:$0xff] %v1919_v6  ;;  %v1272_v22 = vmul.f32 0.0078125, %v1055_v19  ;;  %v4479_v17 = vsub.f32 %v2641_v52, %v713_v46  ;;  %v5451_v6 = vld [vmem:[#allocation55_spill] sm:$0xff]  ;;  %v5452_v19 = vld [vmem:[#allocation56_spill] sm:$0xff] }
 0x21a   : > { %v1787_v36 = vmul.f32 %v1659_v2, %v5449_v60  ;;  %2410 = vrsqrt.f32 %v1402_v59  ;;  %v2401_v48 = vpop.eup %2400  ;;  %2046 = vst [vmem:[%s4185_s23 + $0xe0] sm:$0xff] %v1918_v28  ;;  %v1405_v35 = vadd.f32 1e-05, %v1273_v40  ;;  %1200 = vadd.xlane.f32.xlu1 %v4382_v38  ;;  %1198 = vadd.xlane.f32.xlu0 %v4388_v14  ;;  %v4487_v21 = vmul.f32 %v4460_v33, %v4460_v33 }
 0x21b   : > { %v1786_v29 = vmul.f32 %v1658_v61, %v5450_v34  ;;  %v4490_v24 = vsub.f32 %v2642_v42, %v712_v62  ;;  %v1661_v11 = vmul.f32 %v2401_v48, %v4114_v15  ;;  %v1404_v46 = vadd.f32 1e-05, %v1272_v22  ;;  %v1061_v26 = vpop.xlane.xlu1 %1060 }
 0x21c   : > { %v2403_v37 = vpop.eup %2402  ;;  %v1921_v7 = vadd.f32 %v4153_v13, %v1787_v36  ;;  %v1059_v58 = vpop.xlane.xlu0 %1058  ;;  %2412 = vrsqrt.f32 %v1405_v35  ;;  %v1275_v63 = vmul.f32 0.0078125, %v1061_v26  ;;  %v715_v53 = vmul.f32 0.0078125, %v3890_v51 }
 0x21d   : > { %v1920_v38 = vadd.f32 %v4153_v13, %v1786_v29  ;;  %v1660_v14 = vmul.f32 %v2403_v37, %v4114_v15  ;;  %v1789_v62 = vmul.f32 %v1661_v11, %v5451_v6  ;;  %2414 = vrsqrt.f32 %v1404_v46  ;;  %v2643_v29 = vld [vmem:[%s2913_s21 + $0x3c8] sm:$0xff]  ;;  %v2644_v46 = vld [vmem:[%s2913_s21 + $0x3c0] sm:$0xff] }
 0x21e   : > { %2049 = vst [vmem:[%s4185_s23 + $0xf8] sm:$0xff] %v1921_v7  ;;  %v1274_v2 = vmul.f32 0.0078125, %v1059_v58  ;;  %v2405_v59 = vpop.eup %2404  ;;  %v714_v32 = vmul.f32 0.0078125, %v3892_v0  ;;  %v1407_v61 = vadd.f32 1e-05, %v1275_v63  ;;  %1204 = vadd.xlane.f32.xlu1 %v4414_v18  ;;  %1202 = vadd.xlane.f32.xlu0 %v4425_v16  ;;  %v4506_v51 = vmul.f32 %v4479_v17, %v4479_v17  ;;  %v5453_v37 = vld [vmem:[#allocation57_spill] sm:$0xff] }
 0x21f   : > { %2048 = vst [vmem:[%s4185_s23 + $0xf0] sm:$0xff] %v1920_v38  ;;  %v1788_v28 = vmul.f32 %v1660_v14, %v5452_v19  ;;  %v2407_v40 = vpop.eup %2406  ;;  %v1923_v60 = vadd.f32 %v4153_v13, %v1789_v62  ;;  %v1663_v36 = vmul.f32 %v2405_v59, %v4114_v15  ;;  %v1065_v22 = vpop.xlane.xlu1 %1064  ;;  %v4512_v18 = vmul.f32 %v4490_v24, %v4490_v24  ;;  %v5454_v38 = vld [vmem:[#allocation58_spill] sm:$0xff] }
 0x220   : > { %v1406_v0 = vadd.f32 1e-05, %v1274_v2  ;;  %v1063_v48 = vpop.xlane.xlu0 %1062  ;;  %v1662_v52 = vmul.f32 %v2407_v40, %v4114_v15  ;;  %2416 = vrsqrt.f32 %v1407_v61  ;;  %v1277_v34 = vmul.f32 0.0078125, %v1065_v22  ;;  %v5456_v22 = vld [vmem:[#allocation15_spill] sm:$0xff] }
 0x221   : > { %v1922_v16 = vadd.f32 %v4153_v13, %v1788_v28  ;;  %v4517_v35 = vsub.f32 %v2643_v29, %v715_v53  ;;  %2051 = vst [vmem:[%s4185_s23 + $0x108] sm:$0xff] %v1923_v60  ;;  %v1791_v42 = vmul.f32 %v1663_v36, %v5453_v37  ;;  %v1276_v7 = vmul.f32 0.0078125, %v1063_v48  ;;  %v2645_v36 = vld [vmem:[%s2913_s21 + $0x3d8] sm:$0xff]  ;;  %v2646_v29 = vld [vmem:[%s2913_s21 + $0x3d0] sm:$0xff] }
 0x222   : > { %2418 = vrsqrt.f32 %v1406_v0  ;;  %v4522_v26 = vsub.f32 %v2644_v46, %v714_v32  ;;  %v717_v58 = vmul.f32 0.0078125, %v3913_v5  ;;  %v1790_v14 = vmul.f32 %v1662_v52, %v5454_v38  ;;  %1208 = vadd.xlane.f32.xlu1 %v4444_v39  ;;  %1206 = vadd.xlane.f32.xlu0 %v4450_v31  ;;  %v5455_v31 = vld [vmem:[#allocation14_spill] sm:$0xff] }
 0x223   : > { %v2409_v11 = vpop.eup %2408  ;;  %2050 = vst [vmem:[%s4185_s23 + $0x100] sm:$0xff] %v1922_v16  ;;  %v1409_v63 = vadd.f32 1e-05, %v1277_v34  ;;  %v716_v6 = vmul.f32 0.0078125, %v3915_v9  ;;  %v1925_v62 = vadd.f32 %v4153_v13, %v1791_v42  ;;  %v1408_v59 = vadd.f32 1e-05, %v1276_v7  ;;  %v1069_v5 = vpop.xlane.xlu1 %1068 }
 0x224   : > { %v2411_v53 = vpop.eup %2410  ;;  %v1665_v2 = vmul.f32 %v2409_v11, %v4114_v15  ;;  %v1067_v32 = vpop.xlane.xlu0 %1066  ;;  %v1924_v19 = vadd.f32 %v4153_v13, %v1790_v14  ;;  %v1279_v39 = vmul.f32 0.0078125, %v1069_v5  ;;  %v971_v40 = vmul.f32 %v4517_v35, %v4517_v35 }
 0x225   : > { %v1664_v28 = vmul.f32 %v2411_v53, %v4114_v15  ;;  %2420 = vrsqrt.f32 %v1409_v63  ;;  %2053 = vst [vmem:[%s4185_s23 + $0x118] sm:$0xff] %v1925_v62  ;;  %v1278_v9 = vmul.f32 0.0078125, %v1067_v32  ;;  %v4539_v0 = vsub.f32 %v2645_v36, %v717_v58  ;;  %v5457_v63 = vld [vmem:[#allocation16_spill] sm:$0xff]  ;;  %v2647_v36 = vld [vmem:[%s2913_s21 + $0x3e8] sm:$0xff] }
 0x226   : > { %v1793_v61 = vmul.f32 %v1665_v2, %v5455_v31  ;;  %2422 = vrsqrt.f32 %v1408_v59  ;;  %v2413_v60 = vpop.eup %2412  ;;  %2052 = vst [vmem:[%s4185_s23 + $0x110] sm:$0xff] %v1924_v19  ;;  %v1411_v16 = vadd.f32 1e-05, %v1279_v39  ;;  %1212 = vadd.xlane.f32.xlu1 %v4476_v10  ;;  %1210 = vadd.xlane.f32.xlu0 %v4487_v21  ;;  %v970_v52 = vmul.f32 %v4522_v26, %v4522_v26  ;;  %v5458_v59 = vld [vmem:[#allocation17_spill] sm:$0xff] }
 0x227   : > { %v1792_v48 = vmul.f32 %v1664_v28, %v5456_v22  ;;  %v2415_v34 = vpop.eup %2414  ;;  %v4548_v37 = vsub.f32 %v2646_v29, %v716_v6  ;;  %v1667_v7 = vmul.f32 %v2413_v60, %v4114_v15  ;;  %v1410_v11 = vadd.f32 1e-05, %v1278_v9  ;;  %v1073_v46 = vpop.xlane.xlu1 %1072 }
 0x228   : > { %v1927_v42 = vadd.f32 %v4153_v13, %v1793_v61  ;;  %v1071_v58 = vpop.xlane.xlu0 %1070  ;;  %v1666_v38 = vmul.f32 %v2415_v34, %v4114_v15  ;;  %2424 = vrsqrt.f32 %v1411_v16  ;;  %v1281_v21 = vmul.f32 0.0078125, %v1073_v46  ;;  %v5460_v46 = vld [vmem:[#allocation60_spill] sm:$0xff] }
 0x229   : > { %v1926_v10 = vadd.f32 %v4153_v13, %v1792_v48  ;;  %v719_v14 = vmul.f32 0.0078125, %v3938_v8  ;;  %v1795_v53 = vmul.f32 %v1667_v7, %v5457_v63  ;;  %2426 = vrsqrt.f32 %v1410_v11  ;;  %v5459_v48 = vld [vmem:[#allocation59_spill] sm:$0xff]  ;;  %v4584_v63 = vld [vmem:[%s4090_s8] ss:$0 sm:$0xff] }
 0x22a   : > { %2055 = vst [vmem:[%s4185_s23 + $0x128] sm:$0xff] %v1927_v42  ;;  %v1280_v6 = vmul.f32 0.0078125, %v1071_v58  ;;  %v2417_v62 = vpop.eup %2416  ;;  %v718_v2 = vmul.f32 0.0078125, %v3940_v30  ;;  %v1794_v5 = vmul.f32 %v1666_v38, %v5458_v59  ;;  %v1413_v32 = vadd.f32 1e-05, %v1281_v21  ;;  %1216 = vadd.xlane.f32.xlu1 %v4506_v51  ;;  %1214 = vadd.xlane.f32.xlu0 %v4512_v18  ;;  %v2648_v42 = vld [vmem:[%s2913_s21 + $0x3e0] sm:$0xff] }
 0x22b   : > { %2054 = vst [vmem:[%s4185_s23 + $0x120] sm:$0xff] %v1926_v10  ;;  %v973_v8 = vmul.f32 %v4539_v0, %v4539_v0  ;;  %v1929_v28 = vadd.f32 %v4153_v13, %v1795_v53  ;;  %v1669_v39 = vmul.f32 %v2417_v62, %v4114_v15  ;;  %v1077_v31 = vpop.xlane.xlu1 %1076  ;;  %v972_v9 = vmul.f32 %v4548_v37, %v4548_v37  ;;  %v5461_v38 = vld [vmem:[#allocation41_spill] sm:$0xff] }
 0x22c   : > { %v2419_v19 = vpop.eup %2418  ;;  %v1412_v30 = vadd.f32 1e-05, %v1280_v6  ;;  %v1075_v61 = vpop.xlane.xlu0 %1074  ;;  %v1928_v51 = vadd.f32 %v4153_v13, %v1794_v5  ;;  %2428 = vrsqrt.f32 %v1413_v32  ;;  %v1283_v60 = vmul.f32 0.0078125, %v1077_v31 }
 0x22d   : > { %v1668_v18 = vmul.f32 %v2419_v19, %v4114_v15  ;;  %v4571_v22 = vsub.f32 %v2647_v36, %v719_v14  ;;  %2057 = vst [vmem:[%s4185_s23 + $0x138] sm:$0xff] %v1929_v28  ;;  %v1797_v16 = vmul.f32 %v1669_v39, %v5459_v48  ;;  %v1282_v34 = vmul.f32 0.0078125, %v1075_v61  ;;  %v2650_v39 = vld [vmem:[%s2913_s21 + $0x3f8] sm:$0xff]  ;;  %v4604_v48 = vld [vmem:[%s4130_s22] ss:$0 sm:$0xff] }
 0x22e   : > { %2430 = vrsqrt.f32 %v1412_v30  ;;  %v4576_v7 = vsub.f32 %v2648_v42, %v718_v2  ;;  %v721_v11 = vmul.f32 0.0078125, %v3972_v12  ;;  %2056 = vst [vmem:[%s4185_s23 + $0x130] sm:$0xff] %v1928_v51  ;;  %v1415_v58 = vadd.f32 1e-05, %v1283_v60  ;;  %1220 = vadd.xlane.f32.xlu1 %v971_v40  ;;  %1218 = vadd.xlane.f32.xlu0 %v970_v52  ;;  %v5462_v52 = vld [vmem:[#allocation18_spill] sm:$0xff] }
 0x22f   : > { %v2421_v29 = vpop.eup %2420  ;;  %v1796_v15 = vmul.f32 %v1668_v18, %v5460_v46  ;;  %v720_v21 = vmul.f32 0.0078125, %v5461_v38  ;;  %v1931_v14 = vadd.f32 %v4153_v13, %v1797_v16  ;;  %v1414_v6 = vadd.f32 1e-05, %v1282_v34  ;;  %v1081_v12 = vpop.xlane.xlu1 %1080  ;;  %v2651_v60 = vld [vmem:[%s2913_s21 + $0x3f0] sm:$0xff]  ;;  %s2691_s21 = scalar_lea.vmem %s2690_s19, 32768 }
 0x230   : > { %v2423_v10 = vpop.eup %2422  ;;  %v1671_v53 = vmul.f32 %v4584_v63, %v2421_v29  ;;  %v1079_v62 = vpop.xlane.xlu0 %1078  ;;  %2432 = vrsqrt.f32 %v1415_v58  ;;  %v1285_v40 = vmul.f32 0.0078125, %v1081_v12  ;;  %v975_v19 = vmul.f32 %v4571_v22, %v4571_v22  ;;  %p2693_p13 = scmp.lt.s32.totalorder %s2691_s21, %s2685_s7 }
 0x231   : > { %v1930_v2 = vadd.f32 %v4153_v13, %v1796_v15  ;;  %v1670_v59 = vmul.f32 %v4584_v63, %v2423_v10  ;;  %2059 = vst [vmem:[%s4185_s23 + $0x148] sm:$0xff] %v1931_v14  ;;  %2434 = vrsqrt.f32 %v1414_v6  ;;  %v1284_v32 = vmul.f32 0.0078125, %v1079_v62  ;;  %v5463_v13 = vld [vmem:[#allocation19_spill] sm:$0xff]  ;;  %v5464_v15 = vld [vmem:[#allocation61_spill] sm:$0xff] }
 0x232   : > { %v1799_v5 = vmul.f32 %v1671_v53, %v5462_v52  ;;  %v2425_v28 = vpop.eup %2424  ;;  %v4594_v30 = vsub.f32 %v2650_v39, %v721_v11  ;;  %v1417_v61 = vadd.f32 1e-05, %v1285_v40  ;;  %1224 = vadd.xlane.f32.xlu1 %v973_v8  ;;  %1222 = vadd.xlane.f32.xlu0 %v972_v9  ;;  %v974_v51 = vmul.f32 %v4576_v7, %v4576_v7  ;;  %v5466_v39 = vld [vmem:[#allocation21_spill] sm:$0xff]  ;;  %p2694_p2 = por %p2693_p13, %p2692_p6 }
 0x233   : > { %2058 = vst [vmem:[%s4185_s23 + $0x140] sm:$0xff] %v1930_v2  ;;  %v1798_v31 = vmul.f32 %v1670_v59, %v5463_v13  ;;  %v2427_v18 = vpop.eup %2426  ;;  %v4601_v36 = vsub.f32 %v2651_v60, %v720_v21  ;;  %v1673_v34 = vmul.f32 %v4584_v63, %v2425_v28  ;;  %v1416_v29 = vadd.f32 1e-05, %v1284_v32  ;;  %v1085_v42 = vpop.xlane.xlu1 %1084  ;;  %v5465_v21 = vld [vmem:[#allocation62_spill] sm:$0xff] }
 0x234   : > { %v1933_v16 = vadd.f32 %v4604_v48, %v1799_v5  ;;  %v1083_v11 = vpop.xlane.xlu0 %1082  ;;  %v1672_v9 = vmul.f32 %v4584_v63, %v2427_v18  ;;  %2436 = vrsqrt.f32 %v1417_v61  ;;  %v1287_v46 = vmul.f32 0.0078125, %v1085_v42  ;;  %p2695_p5 = pnand %p2694_p2, %p2688_p0 }
 0x235   : > { %v1932_v8 = vadd.f32 %v4604_v48, %v1798_v31  ;;  %v1801_v58 = vmul.f32 %v1673_v34, %v5464_v15  ;;  %2438 = vrsqrt.f32 %v1416_v29  ;;  %v1286_v10 = vmul.f32 0.0078125, %v1083_v11 }
 0x236   : > { %2061 = vst [vmem:[%s4185_s23 + $0x158] sm:$0xff] %v1933_v16  ;;  %v2429_v38 = vpop.eup %2428  ;;  %v1800_v14 = vmul.f32 %v1672_v9, %v5465_v21  ;;  %v1419_v53 = vadd.f32 1e-05, %v1287_v46  ;;  %1228 = vadd.xlane.f32.xlu1 %v975_v19  ;;  %1226 = vadd.xlane.f32.xlu0 %v974_v51  ;;  %v977_v6 = vmul.f32 %v4594_v30, %v4594_v30  ;;  %v5467_v51 = vld [vmem:[#allocation22_spill] sm:$0xff] }
 0x237   : > { %2060 = vst [vmem:[%s4185_s23 + $0x150] sm:$0xff] %v1932_v8  ;;  %v1935_v62 = vadd.f32 %v4604_v48, %v1801_v58  ;;  %v1675_v2 = vmul.f32 %v4584_v63, %v2429_v38  ;;  %v1418_v59 = vadd.f32 1e-05, %v1286_v10  ;;  %v1089_v40 = vpop.xlane.xlu1 %1088  ;;  %v976_v5 = vmul.f32 %v4601_v36, %v4601_v36  ;;  %v5468_v58 = vld [vmem:[#allocation65_spill] sm:$0xff] }
 0x238   : > { %v2431_v12 = vpop.eup %2430  ;;  %v1087_v52 = vpop.xlane.xlu0 %1086  ;;  %v1934_v32 = vadd.f32 %v4604_v48, %v1800_v14  ;;  %2440 = vrsqrt.f32 %v1419_v53  ;;  %v1289_v28 = vmul.f32 0.0078125, %v1089_v40  ;;  %v5469_v14 = vld [vmem:[#allocation66_spill] sm:$0xff] }
 0x239   : > { %v1674_v19 = vmul.f32 %v4584_v63, %v2431_v12  ;;  %2063 = vst [vmem:[%s4185_s23 + $0x168] sm:$0xff] %v1935_v62  ;;  %v1803_v13 = vmul.f32 %v1675_v2, %v5466_v39  ;;  %2442 = vrsqrt.f32 %v1418_v59  ;;  %v1288_v31 = vmul.f32 0.0078125, %v1087_v52 }
 0x23a   : > { %v2433_v61 = vpop.eup %2432  ;;  %2062 = vst [vmem:[%s4185_s23 + $0x160] sm:$0xff] %v1934_v32  ;;  %v1421_v60 = vadd.f32 1e-05, %v1289_v28  ;;  %1232 = vadd.xlane.f32.xlu1 %v977_v6  ;;  %1230 = vadd.xlane.f32.xlu0 %v976_v5  ;;  %v5470_v28 = vld [vmem:[#allocation24_spill] sm:$0xff] }
 0x23b   : > { %v1802_v18 = vmul.f32 %v1674_v19, %v5467_v51  ;;  %v2435_v16 = vpop.eup %2434  ;;  %v1937_v34 = vadd.f32 %v4604_v48, %v1803_v13  ;;  %v1677_v29 = vmul.f32 %v4584_v63, %v2433_v61  ;;  %v1420_v42 = vadd.f32 1e-05, %v1288_v31  ;;  %v1093_v11 = vpop.xlane.xlu1 %1092  ;;  %v5471_v61 = vld [vmem:[#allocation25_spill] sm:$0xff] }
 0x23c   : > { %v1091_v8 = vpop.xlane.xlu0 %1090  ;;  %v1676_v46 = vmul.f32 %v4584_v63, %v2435_v16  ;;  %2444 = vrsqrt.f32 %v1421_v60  ;;  %v1291_v15 = vmul.f32 0.0078125, %v1093_v11 }
 0x23d   : > { %v1936_v9 = vadd.f32 %v4604_v48, %v1802_v18  ;;  %2065 = vst [vmem:[%s4185_s23 + $0x178] sm:$0xff] %v1937_v34  ;;  %v1805_v10 = vmul.f32 %v1677_v29, %v5468_v58  ;;  %2446 = vrsqrt.f32 %v1420_v42  ;;  %v1290_v38 = vmul.f32 0.0078125, %v1091_v8 }
 0x23e   : > { %v2437_v21 = vpop.eup %2436  ;;  %v1804_v53 = vmul.f32 %v1676_v46, %v5469_v14  ;;  %v1423_v6 = vadd.f32 1e-05, %v1291_v15  ;;  %v5472_v15 = vld [vmem:[#allocation68_spill] sm:$0xff] }
 0x23f   : > { %2064 = vst [vmem:[%s4185_s23 + $0x170] sm:$0xff] %v1936_v9  ;;  %v2439_v12 = vpop.eup %2438  ;;  %v1939_v62 = vadd.f32 %v4604_v48, %v1805_v10  ;;  %v1679_v2 = vmul.f32 %v4584_v63, %v2437_v21  ;;  %v1422_v59 = vadd.f32 1e-05, %v1290_v38  ;;  %v1097_v40 = vpop.xlane.xlu1 %1096  ;;  %v5473_v21 = vld [vmem:[#allocation69_spill] sm:$0xff] }
 0x240   : > { %v1095_v52 = vpop.xlane.xlu0 %1094  ;;  %v1938_v5 = vadd.f32 %v4604_v48, %v1804_v53  ;;  %v1678_v32 = vmul.f32 %v4584_v63, %v2439_v12  ;;  %2448 = vrsqrt.f32 %v1423_v6  ;;  %v1293_v19 = vmul.f32 0.0078125, %v1097_v40 }
 0x241   : > { %2067 = vst [vmem:[%s4185_s23 + $0x188] sm:$0xff] %v1939_v62  ;;  %v1807_v39 = vmul.f32 %v1679_v2, %v5470_v28  ;;  %2450 = vrsqrt.f32 %v1422_v59  ;;  %v1292_v13 = vmul.f32 0.0078125, %v1095_v52 }
 0x242   : > { %v2441_v31 = vpop.eup %2440  ;;  %2066 = vst [vmem:[%s4185_s23 + $0x180] sm:$0xff] %v1938_v5  ;;  %v1806_v51 = vmul.f32 %v1678_v32, %v5471_v61  ;;  %v1425_v18 = vadd.f32 1e-05, %v1293_v19  ;;  %v5474_v19 = vld [vmem:[#allocation70_spill] sm:$0xff] }
 0x243   : > { %v2443_v60 = vpop.eup %2442  ;;  %v1941_v16 = vadd.f32 %v4604_v48, %v1807_v39  ;;  %v1681_v34 = vmul.f32 %v4584_v63, %v2441_v31  ;;  %v1424_v29 = vadd.f32 1e-05, %v1292_v13  ;;  %v1101_v42 = vpop.xlane.xlu1 %1100  ;;  %v5475_v31 = vld [vmem:[#allocation26_spill] sm:$0xff] }
 0x244   : > { %v1099_v11 = vpop.xlane.xlu0 %1098  ;;  %v1940_v8 = vadd.f32 %v4604_v48, %v1806_v51  ;;  %v1680_v9 = vmul.f32 %v4584_v63, %v2443_v60  ;;  %2452 = vrsqrt.f32 %v1425_v18  ;;  %v1295_v46 = vmul.f32 0.0078125, %v1101_v42 }
 0x245   : > { %2069 = vst [vmem:[%s4185_s23 + $0x198] sm:$0xff] %v1941_v16  ;;  %v1809_v58 = vmul.f32 %v1681_v34, %v5472_v15  ;;  %2454 = vrsqrt.f32 %v1424_v29  ;;  %v1294_v10 = vmul.f32 0.0078125, %v1099_v11 }
 0x246   : > { %v2445_v38 = vpop.eup %2444  ;;  %2068 = vst [vmem:[%s4185_s23 + $0x190] sm:$0xff] %v1940_v8  ;;  %v1808_v14 = vmul.f32 %v1680_v9, %v5473_v21  ;;  %v1427_v53 = vadd.f32 1e-05, %v1295_v46  ;;  %v5476_v46 = vld [vmem:[#allocation27_spill] sm:$0xff] }
 0x247   : > { %v2447_v6 = vpop.eup %2446  ;;  %v1943_v12 = vadd.f32 %v4604_v48, %v1809_v58  ;;  %v1683_v62 = vmul.f32 %v4584_v63, %v2445_v38  ;;  %v1426_v2 = vadd.f32 1e-05, %v1294_v10  ;;  %v1105_v59 = vpop.xlane.xlu1 %1104  ;;  %v5477_v38 = vld [vmem:[#allocation28_spill] sm:$0xff] }
 0x248   : > { %v1103_v40 = vpop.xlane.xlu0 %1102  ;;  %v1942_v52 = vadd.f32 %v4604_v48, %v1808_v14  ;;  %v1682_v5 = vmul.f32 %v4584_v63, %v2447_v6  ;;  %2456 = vrsqrt.f32 %v1427_v53  ;;  %v1297_v32 = vmul.f32 0.0078125, %v1105_v59 }
 0x249   : > { %2071 = vst [vmem:[%s4185_s23 + $0x1a8] sm:$0xff] %v1943_v12  ;;  %v1811_v28 = vmul.f32 %v1683_v62, %v5474_v19  ;;  %2458 = vrsqrt.f32 %v1426_v2  ;;  %v1296_v39 = vmul.f32 0.0078125, %v1103_v40 }
 0x24a   : > { %v2449_v13 = vpop.eup %2448  ;;  %2070 = vst [vmem:[%s4185_s23 + $0x1a0] sm:$0xff] %v1942_v52  ;;  %v1810_v61 = vmul.f32 %v1682_v5, %v5475_v31  ;;  %v1429_v51 = vadd.f32 1e-05, %v1297_v32  ;;  %v5478_v32 = vld [vmem:[#allocation29_spill] sm:$0xff] }
 0x24b   : > { %v2451_v18 = vpop.eup %2450  ;;  %v1945_v60 = vadd.f32 %v4604_v48, %v1811_v28  ;;  %v1685_v16 = vmul.f32 %v4584_v63, %v2449_v13  ;;  %v1428_v34 = vadd.f32 1e-05, %v1296_v39  ;;  %v1109_v29 = vpop.xlane.xlu1 %1108  ;;  %v5479_v13 = vld [vmem:[#allocation71_spill] sm:$0xff] }
 0x24c   : > { %v1107_v42 = vpop.xlane.xlu0 %1106  ;;  %v1944_v11 = vadd.f32 %v4604_v48, %v1810_v61  ;;  %v1684_v8 = vmul.f32 %v4584_v63, %v2451_v18  ;;  %2460 = vrsqrt.f32 %v1429_v51  ;;  %v1299_v9 = vmul.f32 0.0078125, %v1109_v29 }
 0x24d   : > { %2073 = vst [vmem:[%s4185_s23 + $0x1b8] sm:$0xff] %v1945_v60  ;;  %v1813_v15 = vmul.f32 %v1685_v16, %v5476_v46  ;;  %2462 = vrsqrt.f32 %v1428_v34  ;;  %v1298_v58 = vmul.f32 0.0078125, %v1107_v42 }
 0x24e   : > { %v2453_v10 = vpop.eup %2452  ;;  %2072 = vst [vmem:[%s4185_s23 + $0x1b0] sm:$0xff] %v1944_v11  ;;  %v1812_v21 = vmul.f32 %v1684_v8, %v5477_v38  ;;  %v1431_v14 = vadd.f32 1e-05, %v1299_v9  ;;  %v5480_v9 = vld [vmem:[#allocation72_spill] sm:$0xff] }
 0x24f   : > { %v2455_v53 = vpop.eup %2454  ;;  %v1947_v6 = vadd.f32 %v4604_v48, %v1813_v15  ;;  %v1687_v12 = vmul.f32 %v4584_v63, %v2453_v10  ;;  %v1430_v62 = vadd.f32 1e-05, %v1298_v58  ;;  %v1113_v2 = vpop.xlane.xlu1 %1112  ;;  %v5481_v10 = vld [vmem:[#allocation30_spill] sm:$0xff] }
 0x250   : > { %v1111_v59 = vpop.xlane.xlu0 %1110  ;;  %v1946_v40 = vadd.f32 %v4604_v48, %v1812_v21  ;;  %v1686_v52 = vmul.f32 %v4584_v63, %v2455_v53  ;;  %2464 = vrsqrt.f32 %v1431_v14  ;;  %v1301_v5 = vmul.f32 0.0078125, %v1113_v2 }
 0x251   : > { %2075 = vst [vmem:[%s4185_s23 + $0x1c8] sm:$0xff] %v1947_v6  ;;  %v1815_v19 = vmul.f32 %v1687_v12, %v5478_v32  ;;  %2466 = vrsqrt.f32 %v1430_v62  ;;  %v1300_v28 = vmul.f32 0.0078125, %v1111_v59 }
 0x252   : > { %v2457_v39 = vpop.eup %2456  ;;  %2074 = vst [vmem:[%s4185_s23 + $0x1c0] sm:$0xff] %v1946_v40  ;;  %v1814_v31 = vmul.f32 %v1686_v52, %v5479_v13  ;;  %v1433_v61 = vadd.f32 1e-05, %v1301_v5  ;;  %v5482_v5 = vld [vmem:[#allocation31_spill] sm:$0xff] }
 0x253   : > { %v2459_v51 = vpop.eup %2458  ;;  %v1949_v18 = vadd.f32 %v4604_v48, %v1815_v19  ;;  %v1689_v60 = vmul.f32 %v4584_v63, %v2457_v39  ;;  %v1432_v16 = vadd.f32 1e-05, %v1300_v28  ;;  %v1117_v34 = vpop.xlane.xlu1 %1116  ;;  %v5483_v39 = vld [vmem:[#allocation73_spill] sm:$0xff] }
 0x254   : > { %v1115_v29 = vpop.xlane.xlu0 %1114  ;;  %v1948_v42 = vadd.f32 %v4604_v48, %v1814_v31  ;;  %v1688_v11 = vmul.f32 %v4584_v63, %v2459_v51  ;;  %2468 = vrsqrt.f32 %v1433_v61  ;;  %v1303_v8 = vmul.f32 0.0078125, %v1117_v34 }
 0x255   : > { %2077 = vst [vmem:[%s4185_s23 + $0x1d8] sm:$0xff] %v1949_v18  ;;  %v1817_v46 = vmul.f32 %v1689_v60, %v5480_v9  ;;  %2470 = vrsqrt.f32 %v1432_v16  ;;  %v1302_v15 = vmul.f32 0.0078125, %v1115_v29 }
 0x256   : > { %v2461_v58 = vpop.eup %2460  ;;  %2076 = vst [vmem:[%s4185_s23 + $0x1d0] sm:$0xff] %v1948_v42  ;;  %v1816_v38 = vmul.f32 %v1688_v11, %v5481_v10  ;;  %v1435_v21 = vadd.f32 1e-05, %v1303_v8  ;;  %v5484_v8 = vld [vmem:[#allocation74_spill] sm:$0xff] }
 0x257   : > { %v2463_v14 = vpop.eup %2462  ;;  %v1951_v53 = vadd.f32 %v4604_v48, %v1817_v46  ;;  %v1691_v6 = vmul.f32 %v4584_v63, %v2461_v58  ;;  %v1434_v12 = vadd.f32 1e-05, %v1302_v15  ;;  %v1121_v62 = vpop.xlane.xlu1 %1120  ;;  %v5485_v58 = vld [vmem:[#allocation75_spill] sm:$0xff] }
 0x258   : > { %v1119_v2 = vpop.xlane.xlu0 %1118  ;;  %v1950_v59 = vadd.f32 %v4604_v48, %v1816_v38  ;;  %v1690_v40 = vmul.f32 %v4584_v63, %v2463_v14  ;;  %2472 = vrsqrt.f32 %v1435_v21  ;;  %v1305_v52 = vmul.f32 0.0078125, %v1121_v62 }
 0x259   : > { %2079 = vst [vmem:[%s4185_s23 + $0x1e8] sm:$0xff] %v1951_v53  ;;  %v1819_v32 = vmul.f32 %v1691_v6, %v5482_v5  ;;  %2474 = vrsqrt.f32 %v1434_v12  ;;  %v1304_v19 = vmul.f32 0.0078125, %v1119_v2 }
 0x25a   : > { %v2465_v28 = vpop.eup %2464  ;;  %2078 = vst [vmem:[%s4185_s23 + $0x1e0] sm:$0xff] %v1950_v59  ;;  %v1818_v13 = vmul.f32 %v1690_v40, %v5483_v39  ;;  %v1437_v31 = vadd.f32 1e-05, %v1305_v52  ;;  %v5486_v52 = vld [vmem:[#allocation76_spill] sm:$0xff] }
 0x25b   : > { %v2467_v61 = vpop.eup %2466  ;;  %v1953_v51 = vadd.f32 %v4604_v48, %v1819_v32  ;;  %v1693_v18 = vmul.f32 %v4584_v63, %v2465_v28  ;;  %v1436_v60 = vadd.f32 1e-05, %v1304_v19  ;;  %v1125_v16 = vpop.xlane.xlu1 %1124  ;;  %v5487_v28 = vld [vmem:[#allocation32_spill] sm:$0xff] }
 0x25c   : > { %v1123_v34 = vpop.xlane.xlu0 %1122  ;;  %v1952_v29 = vadd.f32 %v4604_v48, %v1818_v13  ;;  %v1692_v42 = vmul.f32 %v4584_v63, %v2467_v61  ;;  %2476 = vrsqrt.f32 %v1437_v31  ;;  %v1307_v11 = vmul.f32 0.0078125, %v1125_v16 }
 0x25d   : > { %2081 = vst [vmem:[%s4185_s23 + $0x1f8] sm:$0xff] %v1953_v51  ;;  %v1821_v9 = vmul.f32 %v1693_v18, %v5484_v8  ;;  %2478 = vrsqrt.f32 %v1436_v60  ;;  %v1306_v46 = vmul.f32 0.0078125, %v1123_v34 }
 0x25e   : > { %v2469_v15 = vpop.eup %2468  ;;  %2080 = vst [vmem:[%s4185_s23 + $0x1f0] sm:$0xff] %v1952_v29  ;;  %v1820_v10 = vmul.f32 %v1692_v42, %v5485_v58  ;;  %v1439_v38 = vadd.f32 1e-05, %v1307_v11  ;;  %v5488_v11 = vld [vmem:[#allocation33_spill] sm:$0xff] }
 0x25f   : > { %v2471_v21 = vpop.eup %2470  ;;  %v1955_v14 = vadd.f32 %v4604_v48, %v1821_v9  ;;  %v1695_v53 = vmul.f32 %v4584_v63, %v2469_v15  ;;  %v1438_v6 = vadd.f32 1e-05, %v1306_v46  ;;  %v1129_v12 = vpop.xlane.xlu1 %1128  ;;  %v5489_v15 = vld [vmem:[#allocation34_spill] sm:$0xff] }
 0x260   : > { %v1127_v62 = vpop.xlane.xlu0 %1126  ;;  %v1954_v2 = vadd.f32 %v4604_v48, %v1820_v10  ;;  %v1694_v59 = vmul.f32 %v4584_v63, %v2471_v21  ;;  %2480 = vrsqrt.f32 %v1439_v38  ;;  %v1309_v40 = vmul.f32 0.0078125, %v1129_v12 }
 0x261   : > { %2083 = vst [vmem:[%s4185_s23 + $0x208] sm:$0xff] %v1955_v14  ;;  %v1823_v5 = vmul.f32 %v1695_v53, %v5486_v52  ;;  %2482 = vrsqrt.f32 %v1438_v6  ;;  %v1308_v32 = vmul.f32 0.0078125, %v1127_v62 }
 0x262   : > { %v2473_v19 = vpop.eup %2472  ;;  %2082 = vst [vmem:[%s4185_s23 + $0x200] sm:$0xff] %v1954_v2  ;;  %v1822_v39 = vmul.f32 %v1694_v59, %v5487_v28  ;;  %v1441_v13 = vadd.f32 1e-05, %v1309_v40  ;;  %v5490_v40 = vld [vmem:[#allocation35_spill] sm:$0xff] }
 0x263   : > { %v2475_v31 = vpop.eup %2474  ;;  %v1957_v61 = vadd.f32 %v4604_v48, %v1823_v5  ;;  %v1697_v51 = vmul.f32 %v4584_v63, %v2473_v19  ;;  %v1440_v18 = vadd.f32 1e-05, %v1308_v32  ;;  %v1133_v60 = vpop.xlane.xlu1 %1132  ;;  %v5491_v19 = vld [vmem:[#allocation77_spill] sm:$0xff] }
 0x264   : > { %v1131_v16 = vpop.xlane.xlu0 %1130  ;;  %v1956_v34 = vadd.f32 %v4604_v48, %v1822_v39  ;;  %v1696_v29 = vmul.f32 %v4584_v63, %v2475_v31  ;;  %2484 = vrsqrt.f32 %v1441_v13  ;;  %v1311_v42 = vmul.f32 0.0078125, %v1133_v60 }
 0x265   : > { %2085 = vst [vmem:[%s4185_s23 + $0x218] sm:$0xff] %v1957_v61  ;;  %v1825_v8 = vmul.f32 %v1697_v51, %v5488_v11  ;;  %2486 = vrsqrt.f32 %v1440_v18  ;;  %v1310_v9 = vmul.f32 0.0078125, %v1131_v16 }
 0x266   : > { %v2477_v46 = vpop.eup %2476  ;;  %2084 = vst [vmem:[%s4185_s23 + $0x210] sm:$0xff] %v1956_v34  ;;  %v1824_v58 = vmul.f32 %v1696_v29, %v5489_v15  ;;  %v1443_v10 = vadd.f32 1e-05, %v1311_v42  ;;  %v5492_v42 = vld [vmem:[#allocation78_spill] sm:$0xff] }
 0x267   : > { %v2479_v38 = vpop.eup %2478  ;;  %v1959_v21 = vadd.f32 %v4604_v48, %v1825_v8  ;;  %v1699_v14 = vmul.f32 %v4584_v63, %v2477_v46  ;;  %v1442_v53 = vadd.f32 1e-05, %v1310_v9  ;;  %v1137_v6 = vpop.xlane.xlu1 %1136 }
 0x268   : > { %v1135_v12 = vpop.xlane.xlu0 %1134  ;;  %v1958_v62 = vadd.f32 %v4604_v48, %v1824_v58  ;;  %v1698_v2 = vmul.f32 %v4584_v63, %v2479_v38  ;;  %2488 = vrsqrt.f32 %v1443_v10  ;;  %v1313_v59 = vmul.f32 0.0078125, %v1137_v6 }
 0x269   : > { %2087 = vst [vmem:[%s4185_s23 + $0x228] sm:$0xff] %v1959_v21  ;;  %v1827_v52 = vmul.f32 %v1699_v14, %v5490_v40  ;;  %2490 = vrsqrt.f32 %v1442_v53  ;;  %v1312_v5 = vmul.f32 0.0078125, %v1135_v12 }
 0x26a   : > { %v2481_v32 = vpop.eup %2480  ;;  %2086 = vst [vmem:[%s4185_s23 + $0x220] sm:$0xff] %v1958_v62  ;;  %v1826_v28 = vmul.f32 %v1698_v2, %v5491_v19  ;;  %v1445_v39 = vadd.f32 1e-05, %v1313_v59  ;;  %v5493_v2 = vld [vmem:[#allocation36_spill] sm:$0xff] }
 0x26b   : > { %v2483_v13 = vpop.eup %2482  ;;  %v1961_v31 = vadd.f32 %v4604_v48, %v1827_v52  ;;  %v1701_v61 = vmul.f32 %v4584_v63, %v2481_v32  ;;  %v1444_v51 = vadd.f32 1e-05, %v1312_v5  ;;  %v1141_v18 = vpop.xlane.xlu1 %1140  ;;  %v5494_v52 = vld [vmem:[#allocation37_spill] sm:$0xff] }
 0x26c   : > { %v1139_v60 = vpop.xlane.xlu0 %1138  ;;  %v1960_v16 = vadd.f32 %v4604_v48, %v1826_v28  ;;  %v1700_v34 = vmul.f32 %v4584_v63, %v2483_v13  ;;  %2492 = vrsqrt.f32 %v1445_v39  ;;  %v1315_v29 = vmul.f32 0.0078125, %v1141_v18 }
 0x26d   : > { %2089 = vst [vmem:[%s4185_s23 + $0x238] sm:$0xff] %v1961_v31  ;;  %v1829_v11 = vmul.f32 %v1701_v61, %v5492_v42  ;;  %2494 = vrsqrt.f32 %v1444_v51  ;;  %v1314_v8 = vmul.f32 0.0078125, %v1139_v60 }
 0x26e   : > { %v2485_v9 = vpop.eup %2484  ;;  %2088 = vst [vmem:[%s4185_s23 + $0x230] sm:$0xff] %v1960_v16  ;;  %v1828_v46 = vmul.f32 %v1700_v34, %v3945_v3  ;;  %v1447_v15 = vadd.f32 1e-05, %v1315_v29  ;;  %v5495_v16 = vld [vmem:[#allocation38_spill] sm:$0xff] }
 0x26f   : > { %v2487_v58 = vpop.eup %2486  ;;  %v1963_v10 = vadd.f32 %v4604_v48, %v1829_v11  ;;  %v1703_v38 = vmul.f32 %v4584_v63, %v2485_v9  ;;  %v1446_v21 = vadd.f32 1e-05, %v1314_v8  ;;  %v1145_v14 = vpop.xlane.xlu1 %1144  ;;  %v5496_v11 = vld [vmem:[#allocation39_spill] sm:$0xff] }
 0x270   : > { %v1143_v53 = vpop.xlane.xlu0 %1142  ;;  %v1962_v6 = vadd.f32 %v4604_v48, %v1828_v46  ;;  %v1702_v12 = vmul.f32 %v4584_v63, %v2487_v58  ;;  %2496 = vrsqrt.f32 %v1447_v15  ;;  %v1317_v62 = vmul.f32 0.0078125, %v1145_v14 }
 0x271   : > { %2091 = vst [vmem:[%s4185_s23 + $0x248] sm:$0xff] %v1963_v10  ;;  %v1831_v59 = vmul.f32 %v1703_v38, %v5493_v2  ;;  %2498 = vrsqrt.f32 %v1446_v21  ;;  %v1316_v3 = vmul.f32 0.0078125, %v1143_v53 }
 0x272   : > { %v2489_v40 = vpop.eup %2488  ;;  %2090 = vst [vmem:[%s4185_s23 + $0x240] sm:$0xff] %v1962_v6  ;;  %v1830_v5 = vmul.f32 %v1702_v12, %v5494_v52  ;;  %v1449_v32 = vadd.f32 1e-05, %v1317_v62  ;;  %v5497_v12 = vld [vmem:[#allocation40_spill] sm:$0xff] }
 0x273   : > { %v2491_v19 = vpop.eup %2490  ;;  %v1965_v28 = vadd.f32 %v4604_v48, %v1831_v59  ;;  %v1705_v39 = vmul.f32 %v4584_v63, %v2489_v40  ;;  %v1448_v13 = vadd.f32 1e-05, %v1316_v3  ;;  %v1149_v31 = vpop.xlane.xlu1 %1148  ;;  %v5498_v3 = vld [vmem:[#allocation42_spill] sm:$0xff] }
 0x274   : > { %v1147_v61 = vpop.xlane.xlu0 %1146  ;;  %v1964_v51 = vadd.f32 %v4604_v48, %v1830_v5  ;;  %v1704_v18 = vmul.f32 %v4584_v63, %v2491_v19  ;;  %2500 = vrsqrt.f32 %v1449_v32  ;;  %v1319_v60 = vmul.f32 0.0078125, %v1149_v31 }
 0x275   : > { %2093 = vst [vmem:[%s4185_s23 + $0x258] sm:$0xff] %v1965_v28  ;;  %v1833_v34 = vmul.f32 %v1705_v39, %v5495_v16  ;;  %2502 = vrsqrt.f32 %v1448_v13  ;;  %v1318_v29 = vmul.f32 0.0078125, %v1147_v61 }
 0x276   : > { %v2493_v42 = vpop.eup %2492  ;;  %2092 = vst [vmem:[%s4185_s23 + $0x250] sm:$0xff] %v1964_v51  ;;  %v1832_v8 = vmul.f32 %v1704_v18, %v5496_v11  ;;  %v1451_v9 = vadd.f32 1e-05, %v1319_v60  ;;  %v5499_v18 = vld [vmem:[#allocation43_spill] sm:$0xff] }
 0x277   : > { %v2495_v46 = vpop.eup %2494  ;;  %v1967_v15 = vadd.f32 %v4604_v48, %v1833_v34  ;;  %v1707_v58 = vmul.f32 %v4584_v63, %v2493_v42  ;;  %v1450_v10 = vadd.f32 1e-05, %v1318_v29  ;;  %v1153_v38 = vpop.xlane.xlu1 %1152  ;;  %v5500_v29 = vld [vmem:[#allocation44_spill] sm:$0xff] }
 0x278   : > { %v1151_v21 = vpop.xlane.xlu0 %1150  ;;  %v1966_v14 = vadd.f32 %v4604_v48, %v1832_v8  ;;  %v1706_v53 = vmul.f32 %v4584_v63, %v2495_v46  ;;  %2504 = vrsqrt.f32 %v1451_v9  ;;  %v1321_v6 = vmul.f32 0.0078125, %v1153_v38 }
 0x279   : > { %2095 = vst [vmem:[%s4185_s23 + $0x268] sm:$0xff] %v1967_v15  ;;  %v1835_v62 = vmul.f32 %v1707_v58, %v5497_v12  ;;  %2506 = vrsqrt.f32 %v1450_v10  ;;  %v1320_v2 = vmul.f32 0.0078125, %v1151_v21 }
 0x27a   : > { %v2497_v59 = vpop.eup %2496  ;;  %2094 = vst [vmem:[%s4185_s23 + $0x260] sm:$0xff] %v1966_v14  ;;  %v1834_v40 = vmul.f32 %v1706_v53, %v5498_v3  ;;  %v1453_v52 = vadd.f32 1e-05, %v1321_v6  ;;  %v5501_v53 = vld [vmem:[#allocation45_spill] sm:$0xff] }
 0x27b   : > { %v2499_v5 = vpop.eup %2498  ;;  %v1969_v32 = vadd.f32 %v4604_v48, %v1835_v62  ;;  %v1709_v19 = vmul.f32 %v4584_v63, %v2497_v59  ;;  %v1452_v28 = vadd.f32 1e-05, %v1320_v2  ;;  %v1157_v39 = vpop.xlane.xlu1 %1156  ;;  %v5502_v2 = vld [vmem:[#allocation46_spill] sm:$0xff] }
 0x27c   : > { %v1155_v13 = vpop.xlane.xlu0 %1154  ;;  %v1968_v31 = vadd.f32 %v4604_v48, %v1834_v40  ;;  %v1708_v61 = vmul.f32 %v4584_v63, %v2499_v5  ;;  %2508 = vrsqrt.f32 %v1453_v52  ;;  %v1323_v51 = vmul.f32 0.0078125, %v1157_v39 }
 0x27d   : > { %2097 = vst [vmem:[%s4185_s23 + $0x278] sm:$0xff] %v1969_v32  ;;  %v1837_v60 = vmul.f32 %v1709_v19, %v5499_v18  ;;  %2510 = vrsqrt.f32 %v1452_v28  ;;  %v1322_v16 = vmul.f32 0.0078125, %v1155_v13 }
 0x27e   : > { %v2501_v34 = vpop.eup %2500  ;;  %2096 = vst [vmem:[%s4185_s23 + $0x270] sm:$0xff] %v1968_v31  ;;  %v1836_v42 = vmul.f32 %v1708_v61, %v5500_v29  ;;  %v1455_v11 = vadd.f32 1e-05, %v1323_v51  ;;  %v5503_v61 = vld [vmem:[#allocation47_spill] sm:$0xff] }
 0x27f   : > { %v2503_v8 = vpop.eup %2502  ;;  %v1971_v9 = vadd.f32 %v4604_v48, %v1837_v60  ;;  %v1711_v46 = vmul.f32 %v4584_v63, %v2501_v34  ;;  %v1454_v15 = vadd.f32 1e-05, %v1322_v16  ;;  %v1161_v58 = vpop.xlane.xlu1 %1160  ;;  %v5504_v16 = vld [vmem:[#allocation48_spill] sm:$0xff] }
 0x280   : > { %v1159_v10 = vpop.xlane.xlu0 %1158  ;;  %v1970_v38 = vadd.f32 %v4604_v48, %v1836_v42  ;;  %v1710_v21 = vmul.f32 %v4584_v63, %v2503_v8  ;;  %2512 = vrsqrt.f32 %v1455_v11  ;;  %v1325_v14 = vmul.f32 0.0078125, %v1161_v58 }
 0x281   : > { %2099 = vst [vmem:[%s4185_s23 + $0x288] sm:$0xff] %v1971_v9  ;;  %v1839_v6 = vmul.f32 %v1711_v46, %v5501_v53  ;;  %2514 = vrsqrt.f32 %v1454_v15  ;;  %v1324_v12 = vmul.f32 0.0078125, %v1159_v10 }
 0x282   : > { %v2505_v62 = vpop.eup %2504  ;;  %2098 = vst [vmem:[%s4185_s23 + $0x280] sm:$0xff] %v1970_v38  ;;  %v1838_v59 = vmul.f32 %v1710_v21, %v5502_v2  ;;  %v1457_v3 = vadd.f32 1e-05, %v1325_v14  ;;  %v5505_v21 = vld [vmem:[#allocation49_spill] sm:$0xff] }
 0x283   : > { %v2507_v40 = vpop.eup %2506  ;;  %v1973_v52 = vadd.f32 %v4604_v48, %v1839_v6  ;;  %v1713_v5 = vmul.f32 %v4584_v63, %v2505_v62  ;;  %v1456_v32 = vadd.f32 1e-05, %v1324_v12  ;;  %v1165_v19 = vpop.xlane.xlu1 %1164  ;;  %v5506_v12 = vld [vmem:[#allocation50_spill] sm:$0xff] }
 0x284   : > { %v1163_v28 = vpop.xlane.xlu0 %1162  ;;  %v1972_v39 = vadd.f32 %v4604_v48, %v1838_v59  ;;  %v1712_v13 = vmul.f32 %v4584_v63, %v2507_v40  ;;  %2516 = vrsqrt.f32 %v1457_v3  ;;  %v1327_v31 = vmul.f32 0.0078125, %v1165_v19 }
 0x285   : > { %2101 = vst [vmem:[%s4185_s23 + $0x298] sm:$0xff] %v1973_v52  ;;  %v1841_v51 = vmul.f32 %v1713_v5, %v5503_v61  ;;  %2518 = vrsqrt.f32 %v1456_v32  ;;  %v1326_v18 = vmul.f32 0.0078125, %v1163_v28 }
 0x286   : > { %v2509_v60 = vpop.eup %2508  ;;  %2100 = vst [vmem:[%s4185_s23 + $0x290] sm:$0xff] %v1972_v39  ;;  %v1840_v34 = vmul.f32 %v1712_v13, %v5504_v16  ;;  %v1459_v29 = vadd.f32 1e-05, %v1327_v31  ;;  %v5507_v13 = vld [vmem:[#allocation51_spill] sm:$0xff] }
 0x287   : > { %v2511_v42 = vpop.eup %2510  ;;  %v1975_v11 = vadd.f32 %v4604_v48, %v1841_v51  ;;  %v1715_v8 = vmul.f32 %v4584_v63, %v2509_v60  ;;  %v1458_v9 = vadd.f32 1e-05, %v1326_v18  ;;  %v1169_v46 = vpop.xlane.xlu1 %1168  ;;  %v5508_v18 = vld [vmem:[#allocation52_spill] sm:$0xff] }
 0x288   : > { %v1167_v15 = vpop.xlane.xlu0 %1166  ;;  %v1974_v58 = vadd.f32 %v4604_v48, %v1840_v34  ;;  %v1714_v10 = vmul.f32 %v4584_v63, %v2511_v42  ;;  %2520 = vrsqrt.f32 %v1459_v29  ;;  %v1329_v38 = vmul.f32 0.0078125, %v1169_v46 }
 0x289   : > { %2103 = vst [vmem:[%s4185_s23 + $0x2a8] sm:$0xff] %v1975_v11  ;;  %v1843_v14 = vmul.f32 %v1715_v8, %v5505_v21  ;;  %2522 = vrsqrt.f32 %v1458_v9  ;;  %v1328_v53 = vmul.f32 0.0078125, %v1167_v15 }
 0x28a   : > { %v2513_v6 = vpop.eup %2512  ;;  %2102 = vst [vmem:[%s4185_s23 + $0x2a0] sm:$0xff] %v1974_v58  ;;  %v1842_v62 = vmul.f32 %v1714_v10, %v5506_v12  ;;  %v1461_v2 = vadd.f32 1e-05, %v1329_v38  ;;  %v5509_v10 = vld [vmem:[#allocation103_spill] sm:$0xff] }
 0x28b   : > { %v2515_v59 = vpop.eup %2514  ;;  %v1977_v3 = vadd.f32 %v4604_v48, %v1843_v14  ;;  %v1717_v40 = vmul.f32 %v4584_v63, %v2513_v6  ;;  %v1460_v52 = vadd.f32 1e-05, %v1328_v53  ;;  %v1173_v5 = vpop.xlane.xlu1 %1172  ;;  %v5510_v53 = vld [vmem:[#allocation104_spill] sm:$0xff] }
 0x28c   : > { %v1171_v32 = vpop.xlane.xlu0 %1170  ;;  %v1976_v19 = vadd.f32 %v4604_v48, %v1842_v62  ;;  %v1716_v28 = vmul.f32 %v4584_v63, %v2515_v59  ;;  %2524 = vrsqrt.f32 %v1461_v2  ;;  %v1331_v39 = vmul.f32 0.0078125, %v1173_v5 }
 0x28d   : > { %2105 = vst [vmem:[%s4185_s23 + $0x2b8] sm:$0xff] %v1977_v3  ;;  %v1845_v31 = vmul.f32 %v1717_v40, %v5507_v13  ;;  %2526 = vrsqrt.f32 %v1460_v52  ;;  %v1330_v61 = vmul.f32 0.0078125, %v1171_v32 }
 0x28e   : > { %v2517_v51 = vpop.eup %2516  ;;  %2104 = vst [vmem:[%s4185_s23 + $0x2b0] sm:$0xff] %v1976_v19  ;;  %v1844_v60 = vmul.f32 %v1716_v28, %v5508_v18  ;;  %v1463_v16 = vadd.f32 1e-05, %v1331_v39  ;;  %v5511_v28 = vld [vmem:[#allocation105_spill] sm:$0xff] }
 0x28f   : > { %v2519_v34 = vpop.eup %2518  ;;  %v1979_v29 = vadd.f32 %v4604_v48, %v1845_v31  ;;  %v1719_v42 = vmul.f32 %v4584_v63, %v2517_v51  ;;  %v1462_v11 = vadd.f32 1e-05, %v1330_v61  ;;  %v1177_v8 = vpop.xlane.xlu1 %1176  ;;  %v5512_v61 = vld [vmem:[#allocation106_spill] sm:$0xff] }
 0x290   : > { %v1175_v9 = vpop.xlane.xlu0 %1174  ;;  %v1978_v46 = vadd.f32 %v4604_v48, %v1844_v60  ;;  %v1718_v15 = vmul.f32 %v4584_v63, %v2519_v34  ;;  %2528 = vrsqrt.f32 %v1463_v16  ;;  %v1333_v58 = vmul.f32 0.0078125, %v1177_v8 }
 0x291   : > { %2107 = vst [vmem:[%s4185_s23 + $0x2c8] sm:$0xff] %v1979_v29  ;;  %v1847_v38 = vmul.f32 %v1719_v42, %v5509_v10  ;;  %2530 = vrsqrt.f32 %v1462_v11  ;;  %v1332_v21 = vmul.f32 0.0078125, %v1175_v9 }
 0x292   : > { %v2521_v14 = vpop.eup %2520  ;;  %2106 = vst [vmem:[%s4185_s23 + $0x2c0] sm:$0xff] %v1978_v46  ;;  %v1846_v6 = vmul.f32 %v1718_v15, %v5510_v53  ;;  %v1465_v12 = vadd.f32 1e-05, %v1333_v58  ;;  %v5513_v15 = vld [vmem:[#allocation107_spill] sm:$0xff] }
 0x293   : > { %v2523_v62 = vpop.eup %2522  ;;  %v1981_v2 = vadd.f32 %v4604_v48, %v1847_v38  ;;  %v1721_v59 = vmul.f32 %v4584_v63, %v2521_v14  ;;  %v1464_v3 = vadd.f32 1e-05, %v1332_v21  ;;  %v1181_v40 = vpop.xlane.xlu1 %1180  ;;  %v5514_v21 = vld [vmem:[#allocation108_spill] sm:$0xff] }
 0x294   : > { %v1179_v52 = vpop.xlane.xlu0 %1178  ;;  %v1980_v5 = vadd.f32 %v4604_v48, %v1846_v6  ;;  %v1720_v32 = vmul.f32 %v4584_v63, %v2523_v62  ;;  %2532 = vrsqrt.f32 %v1465_v12  ;;  %v1335_v19 = vmul.f32 0.0078125, %v1181_v40 }
 0x295   : > { %2109 = vst [vmem:[%s4185_s23 + $0x2d8] sm:$0xff] %v1981_v2  ;;  %v1849_v39 = vmul.f32 %v1721_v59, %v5511_v28  ;;  %2534 = vrsqrt.f32 %v1464_v3  ;;  %v1334_v13 = vmul.f32 0.0078125, %v1179_v52 }
 0x296   : > { %v2525_v31 = vpop.eup %2524  ;;  %2108 = vst [vmem:[%s4185_s23 + $0x2d0] sm:$0xff] %v1980_v5  ;;  %v1848_v51 = vmul.f32 %v1720_v32, %v5512_v61  ;;  %v1467_v18 = vadd.f32 1e-05, %v1335_v19  ;;  %v5515_v32 = vld [vmem:[#allocation109_spill] sm:$0xff] }
 0x297   : > { %v2527_v60 = vpop.eup %2526  ;;  %v1983_v16 = vadd.f32 %v4604_v48, %v1849_v39  ;;  %v1723_v34 = vmul.f32 %v4584_v63, %v2525_v31  ;;  %v1466_v29 = vadd.f32 1e-05, %v1334_v13  ;;  %v1185_v42 = vpop.xlane.xlu1 %1184  ;;  %v5516_v13 = vld [vmem:[#allocation110_spill] sm:$0xff] }
 0x298   : > { %v1183_v11 = vpop.xlane.xlu0 %1182  ;;  %v1982_v8 = vadd.f32 %v4604_v48, %v1848_v51  ;;  %v1722_v9 = vmul.f32 %v4584_v63, %v2527_v60  ;;  %2536 = vrsqrt.f32 %v1467_v18  ;;  %v1337_v46 = vmul.f32 0.0078125, %v1185_v42  ;;  %v4828_v60 = vld [vmem:[%s4090_s8] ss:$0 sm:$0xff] }
 0x299   : > { %2111 = vst [vmem:[%s4185_s23 + $0x2e8] sm:$0xff] %v1983_v16  ;;  %v1851_v58 = vmul.f32 %v1723_v34, %v5513_v15  ;;  %2538 = vrsqrt.f32 %v1466_v29  ;;  %v1336_v10 = vmul.f32 0.0078125, %v1183_v11 }
 0x29a   : > { %v2529_v38 = vpop.eup %2528  ;;  %2110 = vst [vmem:[%s4185_s23 + $0x2e0] sm:$0xff] %v1982_v8  ;;  %v1850_v14 = vmul.f32 %v1722_v9, %v5514_v21  ;;  %v1469_v53 = vadd.f32 1e-05, %v1337_v46  ;;  %v5517_v9 = vld [vmem:[#allocation63_spill] sm:$0xff] }
 0x29b   : > { %v2531_v6 = vpop.eup %2530  ;;  %v1985_v12 = vadd.f32 %v4604_v48, %v1851_v58  ;;  %v1725_v62 = vmul.f32 %v4584_v63, %v2529_v38  ;;  %v1468_v2 = vadd.f32 1e-05, %v1336_v10  ;;  %v1189_v59 = vpop.xlane.xlu1 %1188  ;;  %v5518_v10 = vld [vmem:[#allocation80_spill] sm:$0xff] }
 0x29c   : > { %v1187_v3 = vpop.xlane.xlu0 %1186  ;;  %v1984_v40 = vadd.f32 %v4604_v48, %v1850_v14  ;;  %v1724_v52 = vmul.f32 %v4584_v63, %v2531_v6  ;;  %2540 = vrsqrt.f32 %v1469_v53  ;;  %v1339_v5 = vmul.f32 0.0078125, %v1189_v59  ;;  %v4840_v59 = vld [vmem:[%s4130_s22] ss:$0 sm:$0xff] }
 0x29d   : > { %2113 = vst [vmem:[%s4185_s23 + $0x2f8] sm:$0xff] %v1985_v12  ;;  %v1853_v19 = vmul.f32 %v1725_v62, %v5515_v32  ;;  %2542 = vrsqrt.f32 %v1468_v2  ;;  %v1338_v28 = vmul.f32 0.0078125, %v1187_v3 }
 0x29e   : > { %v2533_v39 = vpop.eup %2532  ;;  %2112 = vst [vmem:[%s4185_s23 + $0x2f0] sm:$0xff] %v1984_v40  ;;  %v1852_v31 = vmul.f32 %v1724_v52, %v5516_v13  ;;  %v1471_v61 = vadd.f32 1e-05, %v1339_v5 }
 0x29f   : > { %v2535_v51 = vpop.eup %2534  ;;  %v1987_v18 = vadd.f32 %v4604_v48, %v1853_v19  ;;  %v1727_v63 = vmul.f32 %v4828_v60, %v2533_v39  ;;  %v1470_v16 = vadd.f32 1e-05, %v1338_v28  ;;  %v1193_v34 = vpop.xlane.xlu1 %1192 }
 0x2a0   : > { %v1191_v29 = vpop.xlane.xlu0 %1190  ;;  %v1986_v42 = vadd.f32 %v4604_v48, %v1852_v31  ;;  %v1726_v11 = vmul.f32 %v4828_v60, %v2535_v51  ;;  %2544 = vrsqrt.f32 %v1471_v61  ;;  %v1341_v8 = vmul.f32 0.0078125, %v1193_v34 }
 0x2a1   : > { %2115 = vst [vmem:[%s4185_s23 + $0x308] sm:$0xff] %v1987_v18  ;;  %v1855_v46 = vmul.f32 %v1727_v63, %v5517_v9  ;;  %2546 = vrsqrt.f32 %v1470_v16  ;;  %v1340_v15 = vmul.f32 0.0078125, %v1191_v29 }
 0x2a2   : > { %v2537_v58 = vpop.eup %2536  ;;  %2114 = vst [vmem:[%s4185_s23 + $0x300] sm:$0xff] %v1986_v42  ;;  %v1854_v38 = vmul.f32 %v1726_v11, %v5518_v10  ;;  %v1473_v21 = vadd.f32 1e-05, %v1341_v8 }
 0x2a3   : > { %v2539_v14 = vpop.eup %2538  ;;  %v1989_v53 = vadd.f32 %v4604_v48, %v1855_v46  ;;  %v1729_v6 = vmul.f32 %v4828_v60, %v2537_v58  ;;  %v1472_v12 = vadd.f32 1e-05, %v1340_v15  ;;  %v1197_v62 = vpop.xlane.xlu1 %1196 }
 0x2a4   : > { %v1195_v2 = vpop.xlane.xlu0 %1194  ;;  %v1988_v3 = vadd.f32 %v4840_v59, %v1854_v38  ;;  %v1728_v40 = vmul.f32 %v4828_v60, %v2539_v14  ;;  %2548 = vrsqrt.f32 %v1473_v21  ;;  %v1343_v52 = vmul.f32 0.0078125, %v1197_v62 }
 0x2a5   : > { %2117 = vst [vmem:[%s4185_s23 + $0x318] sm:$0xff] %v1989_v53  ;;  %v1857_v5 = vmul.f32 %v1729_v6, %v4207_v44  ;;  %2550 = vrsqrt.f32 %v1472_v12  ;;  %v1342_v32 = vmul.f32 0.0078125, %v1195_v2 }
 0x2a6   : > { %v2541_v48 = vpop.eup %2540  ;;  %2116 = vst [vmem:[%s4185_s23 + $0x310] sm:$0xff] %v1988_v3  ;;  %v1856_v19 = vmul.f32 %v1728_v40, %v4212_v25  ;;  %v1475_v28 = vadd.f32 1e-05, %v1343_v52 }
 0x2a7   : > { %v2543_v39 = vpop.eup %2542  ;;  %v1991_v13 = vadd.f32 %v4840_v59, %v1857_v5  ;;  %v1731_v31 = vmul.f32 %v4828_v60, %v2541_v48  ;;  %v1474_v61 = vadd.f32 1e-05, %v1342_v32  ;;  %v1201_v51 = vpop.xlane.xlu1 %1200 }
 0x2a8   : > { %v1199_v18 = vpop.xlane.xlu0 %1198  ;;  %v1990_v63 = vadd.f32 %v4840_v59, %v1856_v19  ;;  %v1730_v44 = vmul.f32 %v4828_v60, %v2543_v39  ;;  %2552 = vrsqrt.f32 %v1475_v28  ;;  %v1345_v16 = vmul.f32 0.0078125, %v1201_v51 }
 0x2a9   : > { %2119 = vst [vmem:[%s4185_s23 + $0x328] sm:$0xff] %v1991_v13  ;;  %v1859_v34 = vmul.f32 %v1731_v31, %v4231_v49  ;;  %2554 = vrsqrt.f32 %v1474_v61  ;;  %v1344_v25 = vmul.f32 0.0078125, %v1199_v18 }
 0x2aa   : > { %v2545_v29 = vpop.eup %2544  ;;  %2118 = vst [vmem:[%s4185_s23 + $0x320] sm:$0xff] %v1990_v63  ;;  %v1858_v42 = vmul.f32 %v1730_v44, %v4242_v43  ;;  %v1477_v11 = vadd.f32 1e-05, %v1345_v16 }
 0x2ab   : > { %v2547_v8 = vpop.eup %2546  ;;  %v1993_v9 = vadd.f32 %v4840_v59, %v1859_v34  ;;  %v1733_v46 = vmul.f32 %v4828_v60, %v2545_v29  ;;  %v1476_v15 = vadd.f32 1e-05, %v1344_v25  ;;  %v1205_v58 = vpop.xlane.xlu1 %1204 }
 0x2ac   : > { %v1203_v10 = vpop.xlane.xlu0 %1202  ;;  %v1992_v38 = vadd.f32 %v4840_v59, %v1858_v42  ;;  %v1732_v49 = vmul.f32 %v4828_v60, %v2547_v8  ;;  %2556 = vrsqrt.f32 %v1477_v11  ;;  %v1347_v21 = vmul.f32 0.0078125, %v1205_v58 }
 0x2ad   : > { %2121 = vst [vmem:[%s4185_s23 + $0x338] sm:$0xff] %v1993_v9  ;;  %v1861_v14 = vmul.f32 %v1733_v46, %v4269_v50  ;;  %2558 = vrsqrt.f32 %v1476_v15  ;;  %v1346_v43 = vmul.f32 0.0078125, %v1203_v10 }
 0x2ae   : > { %v2549_v53 = vpop.eup %2548  ;;  %2120 = vst [vmem:[%s4185_s23 + $0x330] sm:$0xff] %v1992_v38  ;;  %v1860_v6 = vmul.f32 %v1732_v49, %v4274_v47  ;;  %v1479_v12 = vadd.f32 1e-05, %v1347_v21 }
 0x2af   : > { %v2551_v62 = vpop.eup %2550  ;;  %v1995_v2 = vadd.f32 %v4840_v59, %v1861_v14  ;;  %v1735_v3 = vmul.f32 %v4828_v60, %v2549_v53  ;;  %v1478_v40 = vadd.f32 1e-05, %v1346_v43  ;;  %v1209_v52 = vpop.xlane.xlu1 %1208 }
 0x2b0   : > { %v1207_v5 = vpop.xlane.xlu0 %1206  ;;  %v1994_v32 = vadd.f32 %v4840_v59, %v1860_v6  ;;  %v1734_v50 = vmul.f32 %v4828_v60, %v2551_v62  ;;  %2560 = vrsqrt.f32 %v1479_v12  ;;  %v1349_v48 = vmul.f32 0.0078125, %v1209_v52 }
 0x2b1   : > { %2123 = vst [vmem:[%s4185_s23 + $0x348] sm:$0xff] %v1995_v2  ;;  %v1863_v19 = vmul.f32 %v1735_v3, %v4293_v23  ;;  %2562 = vrsqrt.f32 %v1478_v40  ;;  %v1348_v47 = vmul.f32 0.0078125, %v1207_v5 }
 0x2b2   : > { %v2553_v28 = vpop.eup %2552  ;;  %2122 = vst [vmem:[%s4185_s23 + $0x340] sm:$0xff] %v1994_v32  ;;  %v1862_v39 = vmul.f32 %v1734_v50, %v4304_v57  ;;  %v1481_v13 = vadd.f32 1e-05, %v1349_v48 }
 0x2b3   : > { %v2555_v31 = vpop.eup %2554  ;;  %v1997_v61 = vadd.f32 %v4840_v59, %v1863_v19  ;;  %v1737_v51 = vmul.f32 %v4828_v60, %v2553_v28  ;;  %v1480_v18 = vadd.f32 1e-05, %v1348_v47  ;;  %v1213_v63 = vpop.xlane.xlu1 %1212 }
 0x2b4   : > { %v1211_v44 = vpop.xlane.xlu0 %1210  ;;  %v1996_v16 = vadd.f32 %v4840_v59, %v1862_v39  ;;  %v1736_v23 = vmul.f32 %v4828_v60, %v2555_v31  ;;  %2564 = vrsqrt.f32 %v1481_v13  ;;  %v1351_v34 = vmul.f32 0.0078125, %v1213_v63 }
 0x2b5   : > { %2125 = vst [vmem:[%s4185_s23 + $0x358] sm:$0xff] %v1997_v61  ;;  %v1865_v25 = vmul.f32 %v1737_v51, %v4331_v54  ;;  %2566 = vrsqrt.f32 %v1480_v18  ;;  %v1350_v57 = vmul.f32 0.0078125, %v1211_v44 }
 0x2b6   : > { %v2557_v29 = vpop.eup %2556  ;;  %2124 = vst [vmem:[%s4185_s23 + $0x350] sm:$0xff] %v1996_v16  ;;  %v1864_v42 = vmul.f32 %v1736_v23, %v4336_v45  ;;  %v1483_v11 = vadd.f32 1e-05, %v1351_v34 }
 0x2b7   : > { %v2559_v8 = vpop.eup %2558  ;;  %v1999_v9 = vadd.f32 %v4840_v59, %v1865_v25  ;;  %v1739_v46 = vmul.f32 %v4828_v60, %v2557_v29  ;;  %v1482_v15 = vadd.f32 1e-05, %v1350_v57  ;;  %v1217_v58 = vpop.xlane.xlu1 %1216 }
 0x2b8   : > { %v1215_v10 = vpop.xlane.xlu0 %1214  ;;  %v1998_v38 = vadd.f32 %v4840_v59, %v1864_v42  ;;  %v1738_v54 = vmul.f32 %v4828_v60, %v2559_v8  ;;  %2568 = vrsqrt.f32 %v1483_v11  ;;  %v1353_v49 = vmul.f32 0.0078125, %v1217_v58 }
 0x2b9   : > { %2127 = vst [vmem:[%s4185_s23 + $0x368] sm:$0xff] %v1999_v9  ;;  %v1867_v21 = vmul.f32 %v1739_v46, %v4355_v56  ;;  %2570 = vrsqrt.f32 %v1482_v15  ;;  %v1352_v45 = vmul.f32 0.0078125, %v1215_v10 }
 0x2ba   : > { %v2561_v14 = vpop.eup %2560  ;;  %2126 = vst [vmem:[%s4185_s23 + $0x360] sm:$0xff] %v1998_v38  ;;  %v1866_v43 = vmul.f32 %v1738_v54, %v4366_v55  ;;  %v1485_v53 = vadd.f32 1e-05, %v1353_v49 }
 0x2bb   : > { %v2563_v6 = vpop.eup %2562  ;;  %v2001_v12 = vadd.f32 %v4840_v59, %v1867_v21  ;;  %v1741_v62 = vmul.f32 %v4828_v60, %v2561_v14  ;;  %v1484_v2 = vadd.f32 1e-05, %v1352_v45  ;;  %v1221_v3 = vpop.xlane.xlu1 %1220 }
 0x2bc   : > { %v1219_v40 = vpop.xlane.xlu0 %1218  ;;  %v2000_v52 = vadd.f32 %v4840_v59, %v1866_v43  ;;  %v1740_v56 = vmul.f32 %v4828_v60, %v2563_v6  ;;  %2572 = vrsqrt.f32 %v1485_v53  ;;  %v1355_v5 = vmul.f32 0.0078125, %v1221_v3 }
 0x2bd   : > { %2129 = vst [vmem:[%s4185_s23 + $0x378] sm:$0xff] %v2001_v12  ;;  %v1869_v32 = vmul.f32 %v1741_v62, %v4393_v27  ;;  %2574 = vrsqrt.f32 %v1484_v2  ;;  %v1354_v55 = vmul.f32 0.0078125, %v1219_v40 }
 0x2be   : > { %v2565_v50 = vpop.eup %2564  ;;  %2128 = vst [vmem:[%s4185_s23 + $0x370] sm:$0xff] %v2000_v52  ;;  %v1868_v48 = vmul.f32 %v1740_v56, %v4398_v1  ;;  %v1487_v19 = vadd.f32 1e-05, %v1355_v5 }
 0x2bf   : > { %v2567_v47 = vpop.eup %2566  ;;  %v2003_v28 = vadd.f32 %v4840_v59, %v1869_v32  ;;  %v1743_v39 = vmul.f32 %v4828_v60, %v2565_v50  ;;  %v1486_v13 = vadd.f32 1e-05, %v1354_v55  ;;  %v1225_v31 = vpop.xlane.xlu1 %1224 }
 0x2c0   : > { %v1223_v61 = vpop.xlane.xlu0 %1222  ;;  %v2002_v51 = vadd.f32 %v4840_v59, %v1868_v48  ;;  %v1742_v27 = vmul.f32 %v4828_v60, %v2567_v47  ;;  %2576 = vrsqrt.f32 %v1487_v19  ;;  %v1357_v18 = vmul.f32 0.0078125, %v1225_v31 }
 0x2c1   : > { %2131 = vst [vmem:[%s4185_s23 + $0x388] sm:$0xff] %v2003_v28  ;;  %v1871_v63 = vmul.f32 %v1743_v39, %v4417_v20  ;;  %2578 = vrsqrt.f32 %v1486_v13  ;;  %v1356_v1 = vmul.f32 0.0078125, %v1223_v61 }
 0x2c2   : > { %v2569_v44 = vpop.eup %2568  ;;  %2130 = vst [vmem:[%s4185_s23 + $0x380] sm:$0xff] %v2002_v51  ;;  %v1870_v16 = vmul.f32 %v1742_v27, %v4428_v41  ;;  %v1489_v23 = vadd.f32 1e-05, %v1357_v18 }
 0x2c3   : > { %v2571_v34 = vpop.eup %2570  ;;  %v2005_v25 = vadd.f32 %v4840_v59, %v1871_v63  ;;  %v1745_v57 = vmul.f32 %v4828_v60, %v2569_v44  ;;  %v1488_v29 = vadd.f32 1e-05, %v1356_v1  ;;  %v1229_v42 = vpop.xlane.xlu1 %1228 }
 0x2c4   : > { %v1227_v11 = vpop.xlane.xlu0 %1226  ;;  %v2004_v8 = vadd.f32 %v4840_v59, %v1870_v16  ;;  %v1744_v20 = vmul.f32 %v4828_v60, %v2571_v34  ;;  %2580 = vrsqrt.f32 %v1489_v23  ;;  %v1359_v9 = vmul.f32 0.0078125, %v1229_v42 }
 0x2c5   : > { %2133 = vst [vmem:[%s4185_s23 + $0x398] sm:$0xff] %v2005_v25  ;;  %v1873_v46 = vmul.f32 %v1745_v57, %v4455_v4  ;;  %2582 = vrsqrt.f32 %v1488_v29  ;;  %v1358_v41 = vmul.f32 0.0078125, %v1227_v11 }
 0x2c6   : > { %v2573_v15 = vpop.eup %2572  ;;  %2132 = vst [vmem:[%s4185_s23 + $0x390] sm:$0xff] %v2004_v8  ;;  %v1872_v58 = vmul.f32 %v1744_v20, %v4460_v33  ;;  %v1491_v10 = vadd.f32 1e-05, %v1359_v9 }
 0x2c7   : > { %v2575_v38 = vpop.eup %2574  ;;  %v2007_v54 = vadd.f32 %v4840_v59, %v1873_v46  ;;  %v1747_v49 = vmul.f32 %v4828_v60, %v2573_v15  ;;  %v1490_v21 = vadd.f32 1e-05, %v1358_v41  ;;  %v1233_v45 = vpop.xlane.xlu1 %1232 }
 0x2c8   : > { %v1231_v14 = vpop.xlane.xlu0 %1230  ;;  %v2006_v43 = vadd.f32 %v4840_v59, %v1872_v58  ;;  %v1746_v4 = vmul.f32 %v4828_v60, %v2575_v38  ;;  %2584 = vrsqrt.f32 %v1491_v10  ;;  %v1361_v53 = vmul.f32 0.0078125, %v1233_v45 }
 0x2c9   : > { %2135 = vst [vmem:[%s4185_s23 + $0x3a8] sm:$0xff] %v2007_v54  ;;  %v1875_v33 = vmul.f32 %v1747_v49, %v4479_v17  ;;  %2586 = vrsqrt.f32 %v1490_v21  ;;  %v1360_v6 = vmul.f32 0.0078125, %v1231_v14 }
 0x2ca   : > { %v2577_v12 = vpop.eup %2576  ;;  %2134 = vst [vmem:[%s4185_s23 + $0x3a0] sm:$0xff] %v2006_v43  ;;  %v1874_v62 = vmul.f32 %v1746_v4, %v4490_v24  ;;  %v1493_v2 = vadd.f32 1e-05, %v1361_v53 }
 0x2cb   : > { %v2579_v3 = vpop.eup %2578  ;;  %v2009_v40 = vadd.f32 %v4840_v59, %v1875_v33  ;;  %v1749_v52 = vmul.f32 %v4828_v60, %v2577_v12  ;;  %v1492_v56 = vadd.f32 1e-05, %v1360_v6 }
 0x2cc   : > { %v2008_v5 = vadd.f32 %v4840_v59, %v1874_v62  ;;  %v1748_v32 = vmul.f32 %v4828_v60, %v2579_v3  ;;  %2588 = vrsqrt.f32 %v1493_v2 }
 0x2cd   : > { %2137 = vst [vmem:[%s4185_s23 + $0x3b8] sm:$0xff] %v2009_v40  ;;  %v1877_v17 = vmul.f32 %v1749_v52, %v4517_v35  ;;  %2590 = vrsqrt.f32 %v1492_v56 }
 0x2ce   : > { %v2581_v55 = vpop.eup %2580  ;;  %2136 = vst [vmem:[%s4185_s23 + $0x3b0] sm:$0xff] %v2008_v5  ;;  %v1876_v24 = vmul.f32 %v1748_v32, %v4522_v26 }
 0x2cf   : > { %v2583_v50 = vpop.eup %2582  ;;  %v2011_v48 = vadd.f32 %v4840_v59, %v1877_v17  ;;  %v1751_v19 = vmul.f32 %v4828_v60, %v2581_v55 }
 0x2d0   : > { %v2010_v47 = vadd.f32 %v4840_v59, %v1876_v24  ;;  %v1750_v28 = vmul.f32 %v4828_v60, %v2583_v50 }
 0x2d1   : > { %2139 = vst [vmem:[%s4185_s23 + $0x3c8] sm:$0xff] %v2011_v48  ;;  %v1879_v39 = vmul.f32 %v1751_v19, %v4539_v0 }
 0x2d2   : > { %v2585_v35 = vpop.eup %2584  ;;  %2138 = vst [vmem:[%s4185_s23 + $0x3c0] sm:$0xff] %v2010_v47  ;;  %v1878_v13 = vmul.f32 %v1750_v28, %v4548_v37 }
 0x2d3   : > { %v2587_v26 = vpop.eup %2586  ;;  %v2013_v31 = vadd.f32 %v4840_v59, %v1879_v39  ;;  %v1753_v61 = vmul.f32 %v4828_v60, %v2585_v35 }
 0x2d4   : > { %v2012_v51 = vadd.f32 %v4840_v59, %v1878_v13  ;;  %v1752_v27 = vmul.f32 %v4828_v60, %v2587_v26 }
 0x2d5   : > { %2141 = vst [vmem:[%s4185_s23 + $0x3d8] sm:$0xff] %v2013_v31  ;;  %v1881_v0 = vmul.f32 %v1753_v61, %v4571_v22 }
 0x2d6   : > { %v2589_v18 = vpop.eup %2588  ;;  %2140 = vst [vmem:[%s4185_s23 + $0x3d0] sm:$0xff] %v2012_v51  ;;  %v1880_v37 = vmul.f32 %v1752_v27, %v4576_v7 }
 0x2d7   : > { %v2591_v63 = vpop.eup %2590  ;;  %v2015_v1 = vadd.f32 %v4840_v59, %v1881_v0  ;;  %v1755_v44 = vmul.f32 %v4828_v60, %v2589_v18 }
 0x2d8   : > { %v2014_v16 = vadd.f32 %v4840_v59, %v1880_v37  ;;  %v1754_v23 = vmul.f32 %v4828_v60, %v2591_v63 }
 0x2d9   : > { %2143 = vst [vmem:[%s4185_s23 + $0x3e8] sm:$0xff] %v2015_v1  ;;  %v1883_v22 = vmul.f32 %v1755_v44, %v4594_v30 }
 0x2da   : > { %2142 = vst [vmem:[%s4185_s23 + $0x3e0] sm:$0xff] %v2014_v16  ;;  %v1882_v7 = vmul.f32 %v1754_v23, %v4601_v36 }
 0x2db   : > { %v2017_v34 = vadd.f32 %v4840_v59, %v1883_v22 }
 0x2dc   : > { %v2016_v60 = vadd.f32 %v4840_v59, %v1882_v7 }
 0x2dd   : > { %2145 = vst [vmem:[%s4185_s23 + $0x3f8] sm:$0xff] %v2017_v34 }
 0x2de   : > { %2144 = vst [vmem:[%s4185_s23 + $0x3f0] sm:$0xff] %v2016_v60 }
 0x2df   : > { %2698 = shalt.err (!%p2695_p5)
}
 0x2e0   : > { %s2699_s24 = scalar_lea.hbm %s4958_s5, 16384  ;;  %s2703_s9 = scalar_lea.hbm %s5015_s3, 32768 }
 0x2e1   : > { %p2700_p4 = scmp.ne.s32.totalorder %s4958_s5, %s2699_s24  ;;  %p2704_p12 = scmp.lt.u32.totalorder %s4958_s5, %s5015_s3 }
 0x2e2   : > { %p2705_p1 = scmp.lt.u32.totalorder %s2703_s9, %s2699_s24  ;;  %p2707_p8 = scmp.lt.u32.totalorder %s2699_s24, %s4958_s5 }
 0x2e3   : > { %p2701_p7 = pnand %p2700_p4, %p5519_p9 }
 0x2e4   : > { %p2706_p3 = por %p2705_p1, %p2704_p12 }
 0x2e5   : > { %p2702_p10 = pneg %p2701_p7 }
 0x2e6   : > { %p2708_p11 = por %p2707_p8, %p2706_p3 }
 0x2e8   : > { %p2709_p0 = pnand %p2708_p11, %p2702_p10 }
 0x2ea   : > { %2712 = shalt.err (!%p2709_p0)
}
 0x2eb   : > { %s2773_s23 = smov 128   ;;  %s2774_s28 = smov 8  }
 0x2ec   : > { %2272 = dma.vmem_to_hbm [thread:$0]  (%p5519_p9), %s4960_s29, 16384, %s4958_s5, %s2147_s15, %s2773_s23, %s2773_s23, %s2774_s28  }
 0x2ed PF: > { %s2177_s30 = sand.u32 1, %s2747_s12   ;;  %p5520_p6 = scmp.ne.s32.totalorder %s5164_s27, 0 }
 0x2ee   : > { %p5521_p13 = scmp.ge.s32.totalorder %s2767_s17, 2  ;;  %s2178_s4 = scalar_lea.sflag [#allocation4], %s2177_s30 }
 0x2f0   : > { %p2279_p2 = pnand %p5521_p13, %p5520_p6 }
 0x2f2   : > { %2742 = dma.done.wait (!%p2279_p2), %s2178_s4, 16384  }
 0x2f3   : > { %2744 = vsyncadd (!%p2279_p2), %s2178_s4, 4294950912  ;;  %s19_s17 = sadd.s32 1, %s2767_s17   ;;  %s5522_s12 = smov %s2751_s13 }
 0x2f4   : > { %p16_p5 = scmp.ge.s32.totalorder %s19_s17, 4   ;;  %s5523_s13 = smov %s2755_s14 }
 0x2f5   : > { %s5524_s14 = smov %s2851_s26  ;;  %s5525_s15 = smov %s2763_s16 }
 0x2f6   : > { %s5526_s16 = smov %s5528_s20  ;;  %18 = sbr.rel (!%p16_p5) target bundleno = 6 (0x6), region = 79 }
 0x2fd   :  { %2183 = vsyncpa [#allocation3], 1 }
 0x2fe   :  { %2185 = vsyncpa [#allocation3 + $0x1], 1 }
 0x2ff   :  { %2186 = vsyncpa [#allocation4], 1 }
 0x300   :  { %2188 = vsyncpa [#allocation4 + $0x1], 1 }

</bundles_post_ra>
